<compile_context>
chip_gen: v6e
topology: v6e:2x2x1
jax: 0.10.0
libtpu: 0.0.40
codegen_flags: <defaults>
</compile_context>

<pallas_src>
import math

import jax
import jax.numpy as jnp
from jax.experimental import pallas as pl
from jax.experimental.pallas import tpu as pltpu


def numerical_classifier_kernel(
        x_taps_ref,   # (TB, F, 8)  per-sample 7-tap (+1 zero) input windows
        sa_w_ref,     # (2, 7)      spatial-attention conv taps, in SMEM
        msc_w_ref,    # (8, CP)     fused multi-scale conv weights (tap-major)
        ca_w1_ref,    # (CP, 16)    channel-attention FC1 (pre-transposed, padded)
        ca_w2_ref,    # (16, CP)    channel-attention FC2
        nc1_w_ref,    # (3, CP, C1) conv1 (+BN folded), tap-major, (Ci, Co)
        nc2_w_ref,    # (3, C1, C2)
        fc1_w_ref,    # (C2, 256)
        fc2_w_ref,    # (256, 128)
        cls1_w_ref,   # (128, 256)
        cls2_w_ref,   # (256, NLP)
        bias_ref,     # (8, CP)     rows: msc, nc1, nc2, fc1, fc2, cls1, cls2
        o_ref):       # (TB, NLP)
    f32 = jnp.float32
    TB, F, _ = x_taps_ref.shape
    CP = msc_w_ref.shape[1]
    C1 = nc1_w_ref.shape[2]
    C2 = nc2_w_ref.shape[2]
    NLP = o_ref.shape[1]
    M = TB * F

    def sigmoid(v):
        # exp on the EUP + approximate reciprocal (also EUP) -> no VPU divide.
        return pl.reciprocal(1.0 + jnp.exp(-v), approx=True)

    # Per-row position within each length-F sample (for shift boundary masks).
    f_idx = jax.lax.broadcasted_iota(jnp.int32, (M, 1), 0) % F

    def shift_rows(v, d):
        # out[r] = v[r + d] within each length-F sample; zeros at the borders.
        if d == 0:
            return v
        rolled = pltpu.roll(v, (-d) % M, axis=0)
        valid = jnp.logical_and(f_idx + d >= 0, f_idx + d <= F - 1)
        return jnp.where(valid, rolled, 0.0)

    # --- multi-scale Conv1d(1->64, k=3/5/7) branches: one (M,8)@(8,CP) matmul
    x_taps = x_taps_ref[...].reshape(M, 8)
    comb = jnp.dot(x_taps, msc_w_ref[...], preferred_element_type=f32)
    comb = jnp.maximum(comb + bias_ref[0:1, :], 0.0)                     # (M, CP)
    comb3 = comb.reshape(TB, F, CP)

    # --- ChannelAttention: mean over F -> FC -> ReLU -> FC -> sigmoid gate
    y = jnp.sum(comb3, axis=1) * (1.0 / F)                               # (TB, CP)
    h = jnp.maximum(jnp.dot(y, ca_w1_ref[...], preferred_element_type=f32), 0.0)
    gate = sigmoid(jnp.dot(h, ca_w2_ref[...], preferred_element_type=f32))
    xca = (comb3 * gate[:, None, :]).reshape(M, CP)                      # (M, CP)

    # --- SpatialAttention: channel mean/max -> 7-tap conv over F -> sigmoid
    # (sum over all CP lanes equals sum over the 192 real channels because the
    #  padded channels are exactly zero; xca >= 0 so the max is unaffected too)
    avg_col = jnp.sum(xca, axis=-1, keepdims=True) * (1.0 / 192.0)       # (M, 1)
    max_col = jnp.max(xca, axis=-1, keepdims=True)                       # (M, 1)
    att = jnp.zeros((M, 1), f32)
    for c, col in ((0, avg_col), (1, max_col)):
        for j in range(7):
            att = att + sa_w_ref[c, j] * shift_rows(col, j - 3)
    xsa = xca * sigmoid(att)                                             # (M, CP)

    # --- num_conv block 1: Conv1d(CP->C1, k=3, pad=1) + folded BN + ReLU
    acc1 = jnp.dot(shift_rows(xsa, -1), nc1_w_ref[0], preferred_element_type=f32)
    acc1 = acc1 + jnp.dot(xsa, nc1_w_ref[1], preferred_element_type=f32)
    acc1 = acc1 + jnp.dot(shift_rows(xsa, 1), nc1_w_ref[2],
                          preferred_element_type=f32)
    h1 = jnp.maximum(acc1 + bias_ref[1:2, :C1], 0.0)                     # (M, C1)

    # --- num_conv block 2: Conv1d(C1->C2, k=3, pad=1) + folded BN + ReLU
    acc2 = jnp.dot(shift_rows(h1, -1), nc2_w_ref[0], preferred_element_type=f32)
    acc2 = acc2 + jnp.dot(h1, nc2_w_ref[1], preferred_element_type=f32)
    acc2 = acc2 + jnp.dot(shift_rows(h1, 1), nc2_w_ref[2],
                          preferred_element_type=f32)
    h2 = jnp.maximum(acc2 + bias_ref[2:3, :C2], 0.0)                     # (M, C2)

    # --- AdaptiveMaxPool1d(1) over F
    pooled = jnp.max(h2.reshape(TB, F, C2), axis=1)                      # (TB, C2)

    # --- num_fc + classifier (dropout = identity at inference)
    z = jnp.maximum(jnp.dot(pooled, fc1_w_ref[...], preferred_element_type=f32)
                    + bias_ref[3:4, :256], 0.0)
    z = jnp.maximum(jnp.dot(z, fc2_w_ref[...], preferred_element_type=f32)
                    + bias_ref[4:5, :128], 0.0)
    z = jnp.maximum(jnp.dot(z, cls1_w_ref[...], preferred_element_type=f32)
                    + bias_ref[5:6, :256], 0.0)
    logits = (jnp.dot(z, cls2_w_ref[...], preferred_element_type=f32)
              + bias_ref[6:7, :NLP])
    o_ref[...] = logits.astype(o_ref.dtype)


# ------------------------------ host-side packing ----------------------------

_CP = 256     # 192 real concat channels padded to two full lane tiles
_NLP = 128    # padded label dim -> unmasked lane-dense output stores
_HCA = 16     # channel-attention hidden dim (12) padded


def pack_params(p, num_labels):
    """Convert PyTorch-layout parameters into the kernel's layout."""
    eps = 1e-5
    f32 = jnp.float32

    # fused multi-scale conv weights, tap-major (row i = shift d = i - 3),
    # channel blocks [conv1(k3) | conv2(k5) | conv3(k7) | zero pad].
    msc_w = jnp.zeros((8, _CP), f32)
    msc_w = msc_w.at[2:5, 0:64].set(p['w1'][:, 0, :].T)
    msc_w = msc_w.at[1:6, 64:128].set(p['w2'][:, 0, :].T)
    msc_w = msc_w.at[0:7, 128:192].set(p['w3'][:, 0, :].T)

    ca_w1 = jnp.zeros((_CP, _HCA), f32).at[:192, :12].set(p['ca_w1'].T)
    ca_w2 = jnp.zeros((_HCA, _CP), f32).at[:12, :192].set(p['ca_w2'].T)

    sa_w = jnp.asarray(p['sa_w'][0], f32)                      # (2, 7)

    def fold_bn(w, b, g, beta, m, v, ci_pad):
        scale = g / jnp.sqrt(v + eps)
        w_f = jnp.transpose(w * scale[:, None, None], (2, 1, 0))   # (k, Ci, Co)
        b_f = (b - m) * scale + beta
        k, ci, co = w_f.shape
        w_p = jnp.zeros((k, ci_pad, co), f32).at[:, :ci, :].set(w_f)
        return w_p, b_f

    nc1_w, nc1_b = fold_bn(p['nc1_w'], p['nc1_b'], p['bn1_g'], p['bn1_b'],
                           p['bn1_m'], p['bn1_v'], _CP)
    nc2_w, nc2_b = fold_bn(p['nc2_w'], p['nc2_b'], p['bn2_g'], p['bn2_b'],
                           p['bn2_m'], p['bn2_v'], 128)

    cls2_w = jnp.zeros((256, _NLP), f32).at[:, :num_labels].set(p['cls2_w'].T)

    biases = jnp.zeros((8, _CP), f32)
    biases = biases.at[0, :192].set(jnp.concatenate([p['b1'], p['b2'], p['b3']]))
    biases = biases.at[1, :128].set(nc1_b)
    biases = biases.at[2, :128].set(nc2_b)
    biases = biases.at[3, :256].set(p['fc1_b'])
    biases = biases.at[4, :128].set(p['fc2_b'])
    biases = biases.at[5, :256].set(p['cls1_b'])
    biases = biases.at[6, :num_labels].set(p['cls2_b'])

    return {
        'sa_w': sa_w, 'msc_w': msc_w, 'ca_w1': ca_w1, 'ca_w2': ca_w2,
        'nc1_w': nc1_w, 'nc2_w': nc2_w,
        'fc1_w': jnp.asarray(p['fc1_w'].T, f32),
        'fc2_w': jnp.asarray(p['fc2_w'].T, f32),
        'cls1_w': jnp.asarray(p['cls1_w'].T, f32),
        'cls2_w': cls2_w, 'biases': biases,
    }


def numerical_classifier_forward(numerical, packed, num_labels, *, batch_tile=64):
    """numerical: (B, F) float array; returns (B, num_labels) logits."""
    assert batch_tile % 8 == 0, "batch_tile must be a multiple of 8"
    B, F = numerical.shape
    NLP = packed['cls2_w'].shape[-1]
    out_dtype = numerical.dtype

    # Batch tiling: TB samples per grid step (pad B up to a multiple of TB).
    tb = batch_tile if B >= batch_tile else B
    b_pad = int(pl.cdiv(B, tb)) * tb
    x = numerical.astype(jnp.float32)
    if b_pad != B:
        x = jnp.pad(x, ((0, b_pad - B), (0, 0)))

    # Host-side tap expansion (pure layout plumbing):
    #   x_taps[b, t, j] = x[b, t + j - 3] (zero outside), tap 7 is zero so the
    #   fused multi-scale conv is a single K=8 matmul inside the kernel.
    xp = jnp.pad(x, ((0, 0), (3, 3)))
    x_taps = jnp.stack([xp[:, j:j + F] for j in range(7)], axis=-1)
    x_taps = jnp.pad(x_taps, ((0, 0), (0, 0), (0, 1)))          # (b_pad, F, 8)

    weight_names = ['msc_w', 'ca_w1', 'ca_w2', 'nc1_w', 'nc2_w',
                    'fc1_w', 'fc2_w', 'cls1_w', 'cls2_w', 'biases']
    weights = [packed[k] for k in weight_names]

    def rep_spec(shape):
        rank = len(shape)
        return pl.BlockSpec(shape, lambda b, _r=rank: (0,) * _r)

    in_specs = ([pl.BlockSpec((tb, F, 8), lambda b: (b, 0, 0)),
                 pl.BlockSpec(memory_space=pltpu.MemorySpace.SMEM)]   # sa_w taps
                + [rep_spec(w.shape) for w in weights])
    out_specs = pl.BlockSpec((tb, NLP), lambda b: (b, 0))

    flops_per_sample = (
        2 * F * 8 * _CP                                    # fused multi-scale conv
        + 2 * (_CP * _HCA + _HCA * _CP)                    # channel-attention FCs
        + 8 * F * _CP                                      # attention gating / SA taps
        + 3 * 2 * F * _CP * 128                            # num_conv 1
        + 3 * 2 * F * 128 * 128                            # num_conv 2
        + 2 * (128 * 256 + 256 * 128 + 128 * 256 + 256 * NLP))  # MLP head
    weight_bytes = sum(int(w.size) * 4 for w in weights) + int(packed['sa_w'].size) * 4
    cost = pl.CostEstimate(
        flops=int(b_pad * flops_per_sample),
        transcendentals=int(b_pad * (_CP + F)),
        bytes_accessed=int(x_taps.size * 4 + weight_bytes + b_pad * NLP * 4))

    out = pl.pallas_call(
        numerical_classifier_kernel,
        out_shape=jax.ShapeDtypeStruct((b_pad, NLP), jnp.float32),
        grid=(b_pad // tb,),
        in_specs=in_specs,
        out_specs=out_specs,
        compiler_params=pltpu.CompilerParams(
            dimension_semantics=("parallel",),
            vmem_limit_bytes=24 * 1024 * 1024),
        cost_estimate=cost,
    )(x_taps, packed['sa_w'], *weights)
    return out[:B, :num_labels].astype(out_dtype)


# ------------------------------ pure-JAX reference ---------------------------

def reference_forward(numerical, p):
    B, F = numerical.shape

    def conv1d(xc, w, b, pad):
        # xc: (B, Ci, F); w: (Co, Ci, k); PyTorch cross-correlation, stride 1.
        k = w.shape[-1]
        xp = jnp.pad(xc, ((0, 0), (0, 0), (pad, pad)))
        cols = jnp.stack([xp[:, :, j:j + F] for j in range(k)], axis=-1)
        out = jnp.einsum('bifj,oij->bof', cols, w)
        if b is not None:
            out = out + b[None, :, None]
        return out

    def bn(xc, g, beta, m, v):
        return ((xc - m[None, :, None]) / jnp.sqrt(v[None, :, None] + 1e-5)
                * g[None, :, None] + beta[None, :, None])

    xin = numerical[:, None, :]
    c1 = jax.nn.relu(conv1d(xin, p['w1'], p['b1'], 1))
    c2 = jax.nn.relu(conv1d(xin, p['w2'], p['b2'], 2))
    c3 = jax.nn.relu(conv1d(xin, p['w3'], p['b3'], 3))
    comb = jnp.concatenate([c1, c2, c3], axis=1)                    # (B, 192, F)

    y = comb.mean(axis=2)
    h = jax.nn.relu(y @ p['ca_w1'].T)
    s = jax.nn.sigmoid(h @ p['ca_w2'].T)
    comb = comb * s[:, :, None]

    avg = comb.mean(axis=1, keepdims=True)
    mx = comb.max(axis=1, keepdims=True)
    att = jax.nn.sigmoid(conv1d(jnp.concatenate([avg, mx], axis=1), p['sa_w'], None, 3))
    comb = comb * att

    t1 = jax.nn.relu(bn(conv1d(comb, p['nc1_w'], p['nc1_b'], 1),
                        p['bn1_g'], p['bn1_b'], p['bn1_m'], p['bn1_v']))
    t2 = jax.nn.relu(bn(conv1d(t1, p['nc2_w'], p['nc2_b'], 1),
                        p['bn2_g'], p['bn2_b'], p['bn2_m'], p['bn2_v']))
    pooled = t2.max(axis=2)                                          # (B, 128)

    z = jax.nn.relu(pooled @ p['fc1_w'].T + p['fc1_b'])
    z = jax.nn.relu(z @ p['fc2_w'].T + p['fc2_b'])
    z = jax.nn.relu(z @ p['cls1_w'].T + p['cls1_b'])
    return z @ p['cls2_w'].T + p['cls2_b']


if __name__ == "__main__":
    B, F, NL = 2, 16, 4           # batch, num_numerical_features, num_labels
    key = jax.random.PRNGKey(0)
    ks = iter(jax.random.split(key, 40))

    def u(shape, fan_in):
        bound = 1.0 / math.sqrt(fan_in)
        return jax.random.uniform(next(ks), shape, minval=-bound, maxval=bound,
                                  dtype=jnp.float32)

    p = {
        'w1': u((64, 1, 3), 3), 'b1': u((64,), 3),
        'w2': u((64, 1, 5), 5), 'b2': u((64,), 5),
        'w3': u((64, 1, 7), 7), 'b3': u((64,), 7),
        'ca_w1': u((12, 192), 192), 'ca_w2': u((192, 12), 12),
        'sa_w': u((1, 2, 7), 14),
        'nc1_w': u((128, 192, 3), 192 * 3), 'nc1_b': u((128,), 192 * 3),
        'bn1_g': jax.random.uniform(next(ks), (128,), minval=0.5, maxval=1.5),
        'bn1_b': jax.random.uniform(next(ks), (128,), minval=-0.5, maxval=0.5),
        'bn1_m': 0.1 * jax.random.normal(next(ks), (128,)),
        'bn1_v': jax.random.uniform(next(ks), (128,), minval=0.5, maxval=1.5),
        'nc2_w': u((128, 128, 3), 128 * 3), 'nc2_b': u((128,), 128 * 3),
        'bn2_g': jax.random.uniform(next(ks), (128,), minval=0.5, maxval=1.5),
        'bn2_b': jax.random.uniform(next(ks), (128,), minval=-0.5, maxval=0.5),
        'bn2_m': 0.1 * jax.random.normal(next(ks), (128,)),
        'bn2_v': jax.random.uniform(next(ks), (128,), minval=0.5, maxval=1.5),
        'fc1_w': u((256, 128), 128), 'fc1_b': u((256,), 128),
        'fc2_w': u((128, 256), 256), 'fc2_b': u((128,), 256),
        'cls1_w': u((256, 128), 128), 'cls1_b': u((256,), 128),
        'cls2_w': u((NL, 256), 256), 'cls2_b': u((NL,), 256),
    }
    packed = pack_params(p, NL)

    # Case 1: tiny batch (single grid step, TB == B).
    numerical = jax.random.normal(next(ks), (B, F), dtype=jnp.float32)
    logits = numerical_classifier_forward(numerical, packed, NL)
    jax.block_until_ready(logits)
    with jax.default_matmul_precision("highest"):
        ref = jax.block_until_ready(reference_forward(numerical, p))
    assert logits.shape == (B, NL)
    assert bool(jnp.allclose(logits, ref, atol=2e-2, rtol=2e-2)), (
        "case1 mismatch: max abs err = "
        f"{float(jnp.max(jnp.abs(logits - ref)))}")

    # Case 2: larger batch exercising the batch-tiled, padded multi-step grid.
    B2 = 20
    numerical2 = jax.random.normal(next(ks), (B2, F), dtype=jnp.float32)
    logits2 = numerical_classifier_forward(numerical2, packed, NL, batch_tile=8)
    jax.block_until_ready(logits2)
    with jax.default_matmul_precision("highest"):
        ref2 = jax.block_until_ready(reference_forward(numerical2, p))
    assert logits2.shape == (B2, NL)
    assert bool(jnp.allclose(logits2, ref2, atol=2e-2, rtol=2e-2)), (
        "case2 mismatch: max abs err = "
        f"{float(jnp.max(jnp.abs(logits2 - ref2)))}")

    print("KERNEL_OK")
</pallas_src>

<mosaic_0001>
module attributes {stable_mosaic.version = 11 : i64} {
  func.func @numerical_classifier_kernel(%arg0: i32, %arg1: memref<2x16x8xf32, #tpu.memory_space<vmem>>, %arg2: memref<2x7xf32, #tpu.memory_space<smem>>, %arg3: memref<8x256xf32, #tpu.memory_space<vmem>>, %arg4: memref<256x16xf32, #tpu.memory_space<vmem>>, %arg5: memref<16x256xf32, #tpu.memory_space<vmem>>, %arg6: memref<3x256x128xf32, #tpu.memory_space<vmem>>, %arg7: memref<3x128x128xf32, #tpu.memory_space<vmem>>, %arg8: memref<128x256xf32, #tpu.memory_space<vmem>>, %arg9: memref<256x128xf32, #tpu.memory_space<vmem>>, %arg10: memref<128x256xf32, #tpu.memory_space<vmem>>, %arg11: memref<256x128xf32, #tpu.memory_space<vmem>>, %arg12: memref<8x256xf32, #tpu.memory_space<vmem>>, %arg13: memref<2x128xf32, #tpu.memory_space<vmem>>) attributes {dimension_semantics = [#tpu.dimension_semantics<parallel>], iteration_bounds = array<i64: 1>, scalar_prefetch = 0 : i64, scratch_operands = 0 : i64, tpu.core_type = #tpu.core_type<tc>, window_params = [{transform_indices = @transform_0, window_bounds = array<i64: 2, 16, 8>}, {transform_indices = @transform_1, window_bounds = array<i64: 2, 7>}, {pipeline_mode = #tpu.pipeline_mode<synchronous>, transform_indices = @transform_2, window_bounds = array<i64: 8, 256>}, {pipeline_mode = #tpu.pipeline_mode<synchronous>, transform_indices = @transform_3, window_bounds = array<i64: 256, 16>}, {pipeline_mode = #tpu.pipeline_mode<synchronous>, transform_indices = @transform_4, window_bounds = array<i64: 16, 256>}, {pipeline_mode = #tpu.pipeline_mode<synchronous>, transform_indices = @transform_5, window_bounds = array<i64: 3, 256, 128>}, {pipeline_mode = #tpu.pipeline_mode<synchronous>, transform_indices = @transform_6, window_bounds = array<i64: 3, 128, 128>}, {pipeline_mode = #tpu.pipeline_mode<synchronous>, transform_indices = @transform_7, window_bounds = array<i64: 128, 256>}, {pipeline_mode = #tpu.pipeline_mode<synchronous>, transform_indices = @transform_8, window_bounds = array<i64: 256, 128>}, {pipeline_mode = #tpu.pipeline_mode<synchronous>, transform_indices = @transform_9, window_bounds = array<i64: 128, 256>}, {pipeline_mode = #tpu.pipeline_mode<synchronous>, transform_indices = @transform_10, window_bounds = array<i64: 256, 128>}, {pipeline_mode = #tpu.pipeline_mode<synchronous>, transform_indices = @transform_11, window_bounds = array<i64: 8, 256>}, {transform_indices = @transform_12, window_bounds = array<i64: 2, 128>}]} {
    %0 = tpu.iota {dimensions = array<i32: 0>} : vector<32x1xi32>
    %c16_i32 = arith.constant 16 : i32
    %c0_i32 = arith.constant 0 : i32
    %1 = arith.cmpi eq, %c16_i32, %c0_i32 : i32
    %c1_i32 = arith.constant 1 : i32
    %2 = arith.select %1, %c1_i32, %c16_i32 : i32
    %3 = vector.broadcast %2 : i32 to vector<32x1xi32>
    %4 = arith.remsi %0, %3 : vector<32x1xi32>
    %c0_i32_0 = arith.constant 0 : i32
    %5 = vector.broadcast %c0_i32_0 : i32 to vector<32x1xi32>
    %6 = arith.cmpi ne, %4, %5 : vector<32x1xi32>
    %c0_i32_1 = arith.constant 0 : i32
    %7 = vector.broadcast %c0_i32_1 : i32 to vector<32x1xi32>
    %8 = arith.cmpi slt, %4, %7 : vector<32x1xi32>
    %c0_i32_2 = arith.constant 0 : i32
    %9 = arith.cmpi slt, %2, %c0_i32_2 : i32
    %10 = vector.broadcast %9 : i1 to vector<32x1xi1>
    %11 = vector.broadcast %10 : vector<32x1xi1> to vector<32x1xi1>
    %12 = arith.xori %8, %11 : vector<32x1xi1>
    %13 = arith.andi %12, %6 : vector<32x1xi1>
    %14 = vector.broadcast %2 : i32 to vector<32x1xi32>
    %15 = arith.addi %4, %14 : vector<32x1xi32>
    %16 = arith.select %13, %15, %4 : vector<32x1xi1>, vector<32x1xi32>
    %c0 = arith.constant 0 : index
    %c0_3 = arith.constant 0 : index
    %c0_4 = arith.constant 0 : index
    %17 = vector.load %arg1[%c0, %c0_3, %c0_4] : memref<2x16x8xf32, #tpu.memory_space<vmem>>, vector<2x16x8xf32>
    %18 = vector.shape_cast %17 : vector<2x16x8xf32> to vector<32x8xf32>
    %c0_5 = arith.constant 0 : index
    %c0_6 = arith.constant 0 : index
    %19 = vector.load %arg3[%c0_5, %c0_6] : memref<8x256xf32, #tpu.memory_space<vmem>>, vector<8x256xf32>
    %cst = arith.constant dense<0.000000e+00> : vector<32x256xf32>
    %20 = tpu.matmul %18, %19, %cst {dimension_numbers = #tpu.dot_dimension_numbers<[1], [0], [0], [1], [0, 0, 1, 1], [], []>} : vector<32x8xf32>, vector<8x256xf32>, vector<32x256xf32> -> vector<32x256xf32>
    %c0_7 = arith.constant 0 : index
    %c0_8 = arith.constant 0 : index
    %21 = vector.load %arg12[%c0_7, %c0_8] : memref<8x256xf32, #tpu.memory_space<vmem>>, vector<1x256xf32>
    %22 = vector.broadcast %21 : vector<1x256xf32> to vector<32x256xf32>
    %23 = arith.addf %20, %22 : vector<32x256xf32>
    %cst_9 = arith.constant 0.000000e+00 : f32
    %24 = vector.broadcast %cst_9 : f32 to vector<32x256xf32>
    %25 = arith.maximumf %23, %24 : vector<32x256xf32>
    %26 = vector.shape_cast %25 : vector<32x256xf32> to vector<2x16x256xf32>
    %cst_10 = arith.constant dense<0.000000e+00> : vector<2x256xf32>
    %27 = vector.multi_reduction <add>, %26, %cst_10 [1] : vector<2x16x256xf32> to vector<2x256xf32>
    %cst_11 = arith.constant 6.250000e-02 : f32
    %28 = vector.broadcast %cst_11 : f32 to vector<2x256xf32>
    %29 = arith.mulf %27, %28 : vector<2x256xf32>
    %c0_12 = arith.constant 0 : index
    %c0_13 = arith.constant 0 : index
    %30 = vector.load %arg4[%c0_12, %c0_13] : memref<256x16xf32, #tpu.memory_space<vmem>>, vector<256x16xf32>
    %cst_14 = arith.constant dense<0.000000e+00> : vector<2x16xf32>
    %31 = tpu.matmul %29, %30, %cst_14 {dimension_numbers = #tpu.dot_dimension_numbers<[1], [0], [0], [1], [0, 0, 1, 1], [], []>} : vector<2x256xf32>, vector<256x16xf32>, vector<2x16xf32> -> vector<2x16xf32>
    %cst_15 = arith.constant 0.000000e+00 : f32
    %32 = vector.broadcast %cst_15 : f32 to vector<2x16xf32>
    %33 = arith.maximumf %31, %32 : vector<2x16xf32>
    %c0_16 = arith.constant 0 : index
    %c0_17 = arith.constant 0 : index
    %34 = vector.load %arg5[%c0_16, %c0_17] : memref<16x256xf32, #tpu.memory_space<vmem>>, vector<16x256xf32>
    %cst_18 = arith.constant dense<0.000000e+00> : vector<2x256xf32>
    %35 = tpu.matmul %33, %34, %cst_18 {dimension_numbers = #tpu.dot_dimension_numbers<[1], [0], [0], [1], [0, 0, 1, 1], [], []>} : vector<2x16xf32>, vector<16x256xf32>, vector<2x256xf32> -> vector<2x256xf32>
    %cst_19 = arith.constant 0.000000e+00 : f32
    %36 = vector.broadcast %cst_19 : f32 to vector<2x256xf32>
    %37 = arith.subf %36, %35 : vector<2x256xf32>
    %38 = math.exp %37 : vector<2x256xf32>
    %cst_20 = arith.constant 1.000000e+00 : f32
    %39 = vector.broadcast %cst_20 : f32 to vector<2x256xf32>
    %40 = arith.addf %39, %38 : vector<2x256xf32>
    %41 = tpu.reciprocal %40 {approx = true} : vector<2x256xf32> -> vector<2x256xf32>
    %42 = vector.shape_cast %41 : vector<2x256xf32> to vector<2x1x256xf32>
    %43 = vector.broadcast %42 : vector<2x1x256xf32> to vector<2x16x256xf32>
    %44 = arith.mulf %26, %43 : vector<2x16x256xf32>
    %45 = vector.shape_cast %44 : vector<2x16x256xf32> to vector<32x256xf32>
    %cst_21 = arith.constant dense<0.000000e+00> : vector<32xf32>
    %46 = vector.multi_reduction <add>, %45, %cst_21 [1] : vector<32x256xf32> to vector<32xf32>
    %47 = vector.shape_cast %46 : vector<32xf32> to vector<32x1xf32>
    %cst_22 = arith.constant 0.00520833349 : f32
    %48 = vector.broadcast %cst_22 : f32 to vector<32x1xf32>
    %49 = arith.mulf %47, %48 : vector<32x1xf32>
    %cst_23 = arith.constant dense<0xFF800000> : vector<32xf32>
    %50 = vector.multi_reduction <maximumf>, %45, %cst_23 [1] : vector<32x256xf32> to vector<32xf32>
    %51 = vector.shape_cast %50 : vector<32xf32> to vector<32x1xf32>
    %cst_24 = arith.constant 0.000000e+00 : f32
    %52 = vector.broadcast %cst_24 : f32 to vector<32x1xf32>
    %c0_25 = arith.constant 0 : index
    %c0_26 = arith.constant 0 : index
    %53 = memref.load %arg2[%c0_25, %c0_26] : memref<2x7xf32, #tpu.memory_space<smem>>
    %c3_i32 = arith.constant 3 : i32
    %54 = tpu.dynamic_rotate %49 by %c3_i32 dim 0 : vector<32x1xf32>, i32 -> vector<32x1xf32>
    %c-3_i32 = arith.constant -3 : i32
    %55 = vector.broadcast %c-3_i32 : i32 to vector<32x1xi32>
    %56 = arith.addi %16, %55 : vector<32x1xi32>
    %c0_i32_27 = arith.constant 0 : i32
    %57 = vector.broadcast %c0_i32_27 : i32 to vector<32x1xi32>
    %58 = arith.cmpi sge, %56, %57 : vector<32x1xi32>
    %c-3_i32_28 = arith.constant -3 : i32
    %59 = vector.broadcast %c-3_i32_28 : i32 to vector<32x1xi32>
    %60 = arith.addi %16, %59 : vector<32x1xi32>
    %c15_i32 = arith.constant 15 : i32
    %61 = vector.broadcast %c15_i32 : i32 to vector<32x1xi32>
    %62 = arith.cmpi sle, %60, %61 : vector<32x1xi32>
    %63 = arith.andi %58, %62 : vector<32x1xi1>
    %cst_29 = arith.constant 0.000000e+00 : f32
    %64 = vector.broadcast %cst_29 : f32 to vector<32x1xf32>
    %65 = arith.select %63, %54, %64 : vector<32x1xi1>, vector<32x1xf32>
    %66 = vector.broadcast %53 : f32 to vector<32x1xf32>
    %67 = arith.mulf %66, %65 : vector<32x1xf32>
    %68 = arith.addf %52, %67 : vector<32x1xf32>
    %c0_30 = arith.constant 0 : index
    %c1 = arith.constant 1 : index
    %69 = memref.load %arg2[%c0_30, %c1] : memref<2x7xf32, #tpu.memory_space<smem>>
    %c2_i32 = arith.constant 2 : i32
    %70 = tpu.dynamic_rotate %49 by %c2_i32 dim 0 : vector<32x1xf32>, i32 -> vector<32x1xf32>
    %c-2_i32 = arith.constant -2 : i32
    %71 = vector.broadcast %c-2_i32 : i32 to vector<32x1xi32>
    %72 = arith.addi %16, %71 : vector<32x1xi32>
    %c0_i32_31 = arith.constant 0 : i32
    %73 = vector.broadcast %c0_i32_31 : i32 to vector<32x1xi32>
    %74 = arith.cmpi sge, %72, %73 : vector<32x1xi32>
    %c-2_i32_32 = arith.constant -2 : i32
    %75 = vector.broadcast %c-2_i32_32 : i32 to vector<32x1xi32>
    %76 = arith.addi %16, %75 : vector<32x1xi32>
    %c15_i32_33 = arith.constant 15 : i32
    %77 = vector.broadcast %c15_i32_33 : i32 to vector<32x1xi32>
    %78 = arith.cmpi sle, %76, %77 : vector<32x1xi32>
    %79 = arith.andi %74, %78 : vector<32x1xi1>
    %cst_34 = arith.constant 0.000000e+00 : f32
    %80 = vector.broadcast %cst_34 : f32 to vector<32x1xf32>
    %81 = arith.select %79, %70, %80 : vector<32x1xi1>, vector<32x1xf32>
    %82 = vector.broadcast %69 : f32 to vector<32x1xf32>
    %83 = arith.mulf %82, %81 : vector<32x1xf32>
    %84 = arith.addf %68, %83 : vector<32x1xf32>
    %c0_35 = arith.constant 0 : index
    %c2 = arith.constant 2 : index
    %85 = memref.load %arg2[%c0_35, %c2] : memref<2x7xf32, #tpu.memory_space<smem>>
    %c1_i32_36 = arith.constant 1 : i32
    %86 = tpu.dynamic_rotate %49 by %c1_i32_36 dim 0 : vector<32x1xf32>, i32 -> vector<32x1xf32>
    %c-1_i32 = arith.constant -1 : i32
    %87 = vector.broadcast %c-1_i32 : i32 to vector<32x1xi32>
    %88 = arith.addi %16, %87 : vector<32x1xi32>
    %c0_i32_37 = arith.constant 0 : i32
    %89 = vector.broadcast %c0_i32_37 : i32 to vector<32x1xi32>
    %90 = arith.cmpi sge, %88, %89 : vector<32x1xi32>
    %c-1_i32_38 = arith.constant -1 : i32
    %91 = vector.broadcast %c-1_i32_38 : i32 to vector<32x1xi32>
    %92 = arith.addi %16, %91 : vector<32x1xi32>
    %c15_i32_39 = arith.constant 15 : i32
    %93 = vector.broadcast %c15_i32_39 : i32 to vector<32x1xi32>
    %94 = arith.cmpi sle, %92, %93 : vector<32x1xi32>
    %95 = arith.andi %90, %94 : vector<32x1xi1>
    %cst_40 = arith.constant 0.000000e+00 : f32
    %96 = vector.broadcast %cst_40 : f32 to vector<32x1xf32>
    %97 = arith.select %95, %86, %96 : vector<32x1xi1>, vector<32x1xf32>
    %98 = vector.broadcast %85 : f32 to vector<32x1xf32>
    %99 = arith.mulf %98, %97 : vector<32x1xf32>
    %100 = arith.addf %84, %99 : vector<32x1xf32>
    %c0_41 = arith.constant 0 : index
    %c3 = arith.constant 3 : index
    %101 = memref.load %arg2[%c0_41, %c3] : memref<2x7xf32, #tpu.memory_space<smem>>
    %102 = vector.broadcast %101 : f32 to vector<32x1xf32>
    %103 = arith.mulf %102, %49 : vector<32x1xf32>
    %104 = arith.addf %100, %103 : vector<32x1xf32>
    %c0_42 = arith.constant 0 : index
    %c4 = arith.constant 4 : index
    %105 = memref.load %arg2[%c0_42, %c4] : memref<2x7xf32, #tpu.memory_space<smem>>
    %c31_i32 = arith.constant 31 : i32
    %106 = tpu.dynamic_rotate %49 by %c31_i32 dim 0 : vector<32x1xf32>, i32 -> vector<32x1xf32>
    %c1_i32_43 = arith.constant 1 : i32
    %107 = vector.broadcast %c1_i32_43 : i32 to vector<32x1xi32>
    %108 = arith.addi %16, %107 : vector<32x1xi32>
    %c0_i32_44 = arith.constant 0 : i32
    %109 = vector.broadcast %c0_i32_44 : i32 to vector<32x1xi32>
    %110 = arith.cmpi sge, %108, %109 : vector<32x1xi32>
    %c1_i32_45 = arith.constant 1 : i32
    %111 = vector.broadcast %c1_i32_45 : i32 to vector<32x1xi32>
    %112 = arith.addi %16, %111 : vector<32x1xi32>
    %c15_i32_46 = arith.constant 15 : i32
    %113 = vector.broadcast %c15_i32_46 : i32 to vector<32x1xi32>
    %114 = arith.cmpi sle, %112, %113 : vector<32x1xi32>
    %115 = arith.andi %110, %114 : vector<32x1xi1>
    %cst_47 = arith.constant 0.000000e+00 : f32
    %116 = vector.broadcast %cst_47 : f32 to vector<32x1xf32>
    %117 = arith.select %115, %106, %116 : vector<32x1xi1>, vector<32x1xf32>
    %118 = vector.broadcast %105 : f32 to vector<32x1xf32>
    %119 = arith.mulf %118, %117 : vector<32x1xf32>
    %120 = arith.addf %104, %119 : vector<32x1xf32>
    %c0_48 = arith.constant 0 : index
    %c5 = arith.constant 5 : index
    %121 = memref.load %arg2[%c0_48, %c5] : memref<2x7xf32, #tpu.memory_space<smem>>
    %c30_i32 = arith.constant 30 : i32
    %122 = tpu.dynamic_rotate %49 by %c30_i32 dim 0 : vector<32x1xf32>, i32 -> vector<32x1xf32>
    %c2_i32_49 = arith.constant 2 : i32
    %123 = vector.broadcast %c2_i32_49 : i32 to vector<32x1xi32>
    %124 = arith.addi %16, %123 : vector<32x1xi32>
    %c0_i32_50 = arith.constant 0 : i32
    %125 = vector.broadcast %c0_i32_50 : i32 to vector<32x1xi32>
    %126 = arith.cmpi sge, %124, %125 : vector<32x1xi32>
    %c2_i32_51 = arith.constant 2 : i32
    %127 = vector.broadcast %c2_i32_51 : i32 to vector<32x1xi32>
    %128 = arith.addi %16, %127 : vector<32x1xi32>
    %c15_i32_52 = arith.constant 15 : i32
    %129 = vector.broadcast %c15_i32_52 : i32 to vector<32x1xi32>
    %130 = arith.cmpi sle, %128, %129 : vector<32x1xi32>
    %131 = arith.andi %126, %130 : vector<32x1xi1>
    %cst_53 = arith.constant 0.000000e+00 : f32
    %132 = vector.broadcast %cst_53 : f32 to vector<32x1xf32>
    %133 = arith.select %131, %122, %132 : vector<32x1xi1>, vector<32x1xf32>
    %134 = vector.broadcast %121 : f32 to vector<32x1xf32>
    %135 = arith.mulf %134, %133 : vector<32x1xf32>
    %136 = arith.addf %120, %135 : vector<32x1xf32>
    %c0_54 = arith.constant 0 : index
    %c6 = arith.constant 6 : index
    %137 = memref.load %arg2[%c0_54, %c6] : memref<2x7xf32, #tpu.memory_space<smem>>
    %c29_i32 = arith.constant 29 : i32
    %138 = tpu.dynamic_rotate %49 by %c29_i32 dim 0 : vector<32x1xf32>, i32 -> vector<32x1xf32>
    %c3_i32_55 = arith.constant 3 : i32
    %139 = vector.broadcast %c3_i32_55 : i32 to vector<32x1xi32>
    %140 = arith.addi %16, %139 : vector<32x1xi32>
    %c0_i32_56 = arith.constant 0 : i32
    %141 = vector.broadcast %c0_i32_56 : i32 to vector<32x1xi32>
    %142 = arith.cmpi sge, %140, %141 : vector<32x1xi32>
    %c3_i32_57 = arith.constant 3 : i32
    %143 = vector.broadcast %c3_i32_57 : i32 to vector<32x1xi32>
    %144 = arith.addi %16, %143 : vector<32x1xi32>
    %c15_i32_58 = arith.constant 15 : i32
    %145 = vector.broadcast %c15_i32_58 : i32 to vector<32x1xi32>
    %146 = arith.cmpi sle, %144, %145 : vector<32x1xi32>
    %147 = arith.andi %142, %146 : vector<32x1xi1>
    %cst_59 = arith.constant 0.000000e+00 : f32
    %148 = vector.broadcast %cst_59 : f32 to vector<32x1xf32>
    %149 = arith.select %147, %138, %148 : vector<32x1xi1>, vector<32x1xf32>
    %150 = vector.broadcast %137 : f32 to vector<32x1xf32>
    %151 = arith.mulf %150, %149 : vector<32x1xf32>
    %152 = arith.addf %136, %151 : vector<32x1xf32>
    %c1_60 = arith.constant 1 : index
    %c0_61 = arith.constant 0 : index
    %153 = memref.load %arg2[%c1_60, %c0_61] : memref<2x7xf32, #tpu.memory_space<smem>>
    %c3_i32_62 = arith.constant 3 : i32
    %154 = tpu.dynamic_rotate %51 by %c3_i32_62 dim 0 : vector<32x1xf32>, i32 -> vector<32x1xf32>
    %c-3_i32_63 = arith.constant -3 : i32
    %155 = vector.broadcast %c-3_i32_63 : i32 to vector<32x1xi32>
    %156 = arith.addi %16, %155 : vector<32x1xi32>
    %c0_i32_64 = arith.constant 0 : i32
    %157 = vector.broadcast %c0_i32_64 : i32 to vector<32x1xi32>
    %158 = arith.cmpi sge, %156, %157 : vector<32x1xi32>
    %c-3_i32_65 = arith.constant -3 : i32
    %159 = vector.broadcast %c-3_i32_65 : i32 to vector<32x1xi32>
    %160 = arith.addi %16, %159 : vector<32x1xi32>
    %c15_i32_66 = arith.constant 15 : i32
    %161 = vector.broadcast %c15_i32_66 : i32 to vector<32x1xi32>
    %162 = arith.cmpi sle, %160, %161 : vector<32x1xi32>
    %163 = arith.andi %158, %162 : vector<32x1xi1>
    %cst_67 = arith.constant 0.000000e+00 : f32
    %164 = vector.broadcast %cst_67 : f32 to vector<32x1xf32>
    %165 = arith.select %163, %154, %164 : vector<32x1xi1>, vector<32x1xf32>
    %166 = vector.broadcast %153 : f32 to vector<32x1xf32>
    %167 = arith.mulf %166, %165 : vector<32x1xf32>
    %168 = arith.addf %152, %167 : vector<32x1xf32>
    %c1_68 = arith.constant 1 : index
    %c1_69 = arith.constant 1 : index
    %169 = memref.load %arg2[%c1_68, %c1_69] : memref<2x7xf32, #tpu.memory_space<smem>>
    %c2_i32_70 = arith.constant 2 : i32
    %170 = tpu.dynamic_rotate %51 by %c2_i32_70 dim 0 : vector<32x1xf32>, i32 -> vector<32x1xf32>
    %c-2_i32_71 = arith.constant -2 : i32
    %171 = vector.broadcast %c-2_i32_71 : i32 to vector<32x1xi32>
    %172 = arith.addi %16, %171 : vector<32x1xi32>
    %c0_i32_72 = arith.constant 0 : i32
    %173 = vector.broadcast %c0_i32_72 : i32 to vector<32x1xi32>
    %174 = arith.cmpi sge, %172, %173 : vector<32x1xi32>
    %c-2_i32_73 = arith.constant -2 : i32
    %175 = vector.broadcast %c-2_i32_73 : i32 to vector<32x1xi32>
    %176 = arith.addi %16, %175 : vector<32x1xi32>
    %c15_i32_74 = arith.constant 15 : i32
    %177 = vector.broadcast %c15_i32_74 : i32 to vector<32x1xi32>
    %178 = arith.cmpi sle, %176, %177 : vector<32x1xi32>
    %179 = arith.andi %174, %178 : vector<32x1xi1>
    %cst_75 = arith.constant 0.000000e+00 : f32
    %180 = vector.broadcast %cst_75 : f32 to vector<32x1xf32>
    %181 = arith.select %179, %170, %180 : vector<32x1xi1>, vector<32x1xf32>
    %182 = vector.broadcast %169 : f32 to vector<32x1xf32>
    %183 = arith.mulf %182, %181 : vector<32x1xf32>
    %184 = arith.addf %168, %183 : vector<32x1xf32>
    %c1_76 = arith.constant 1 : index
    %c2_77 = arith.constant 2 : index
    %185 = memref.load %arg2[%c1_76, %c2_77] : memref<2x7xf32, #tpu.memory_space<smem>>
    %c1_i32_78 = arith.constant 1 : i32
    %186 = tpu.dynamic_rotate %51 by %c1_i32_78 dim 0 : vector<32x1xf32>, i32 -> vector<32x1xf32>
    %c-1_i32_79 = arith.constant -1 : i32
    %187 = vector.broadcast %c-1_i32_79 : i32 to vector<32x1xi32>
    %188 = arith.addi %16, %187 : vector<32x1xi32>
    %c0_i32_80 = arith.constant 0 : i32
    %189 = vector.broadcast %c0_i32_80 : i32 to vector<32x1xi32>
    %190 = arith.cmpi sge, %188, %189 : vector<32x1xi32>
    %c-1_i32_81 = arith.constant -1 : i32
    %191 = vector.broadcast %c-1_i32_81 : i32 to vector<32x1xi32>
    %192 = arith.addi %16, %191 : vector<32x1xi32>
    %c15_i32_82 = arith.constant 15 : i32
    %193 = vector.broadcast %c15_i32_82 : i32 to vector<32x1xi32>
    %194 = arith.cmpi sle, %192, %193 : vector<32x1xi32>
    %195 = arith.andi %190, %194 : vector<32x1xi1>
    %cst_83 = arith.constant 0.000000e+00 : f32
    %196 = vector.broadcast %cst_83 : f32 to vector<32x1xf32>
    %197 = arith.select %195, %186, %196 : vector<32x1xi1>, vector<32x1xf32>
    %198 = vector.broadcast %185 : f32 to vector<32x1xf32>
    %199 = arith.mulf %198, %197 : vector<32x1xf32>
    %200 = arith.addf %184, %199 : vector<32x1xf32>
    %c1_84 = arith.constant 1 : index
    %c3_85 = arith.constant 3 : index
    %201 = memref.load %arg2[%c1_84, %c3_85] : memref<2x7xf32, #tpu.memory_space<smem>>
    %202 = vector.broadcast %201 : f32 to vector<32x1xf32>
    %203 = arith.mulf %202, %51 : vector<32x1xf32>
    %204 = arith.addf %200, %203 : vector<32x1xf32>
    %c1_86 = arith.constant 1 : index
    %c4_87 = arith.constant 4 : index
    %205 = memref.load %arg2[%c1_86, %c4_87] : memref<2x7xf32, #tpu.memory_space<smem>>
    %c31_i32_88 = arith.constant 31 : i32
    %206 = tpu.dynamic_rotate %51 by %c31_i32_88 dim 0 : vector<32x1xf32>, i32 -> vector<32x1xf32>
    %c1_i32_89 = arith.constant 1 : i32
    %207 = vector.broadcast %c1_i32_89 : i32 to vector<32x1xi32>
    %208 = arith.addi %16, %207 : vector<32x1xi32>
    %c0_i32_90 = arith.constant 0 : i32
    %209 = vector.broadcast %c0_i32_90 : i32 to vector<32x1xi32>
    %210 = arith.cmpi sge, %208, %209 : vector<32x1xi32>
    %c1_i32_91 = arith.constant 1 : i32
    %211 = vector.broadcast %c1_i32_91 : i32 to vector<32x1xi32>
    %212 = arith.addi %16, %211 : vector<32x1xi32>
    %c15_i32_92 = arith.constant 15 : i32
    %213 = vector.broadcast %c15_i32_92 : i32 to vector<32x1xi32>
    %214 = arith.cmpi sle, %212, %213 : vector<32x1xi32>
    %215 = arith.andi %210, %214 : vector<32x1xi1>
    %cst_93 = arith.constant 0.000000e+00 : f32
    %216 = vector.broadcast %cst_93 : f32 to vector<32x1xf32>
    %217 = arith.select %215, %206, %216 : vector<32x1xi1>, vector<32x1xf32>
    %218 = vector.broadcast %205 : f32 to vector<32x1xf32>
    %219 = arith.mulf %218, %217 : vector<32x1xf32>
    %220 = arith.addf %204, %219 : vector<32x1xf32>
    %c1_94 = arith.constant 1 : index
    %c5_95 = arith.constant 5 : index
    %221 = memref.load %arg2[%c1_94, %c5_95] : memref<2x7xf32, #tpu.memory_space<smem>>
    %c30_i32_96 = arith.constant 30 : i32
    %222 = tpu.dynamic_rotate %51 by %c30_i32_96 dim 0 : vector<32x1xf32>, i32 -> vector<32x1xf32>
    %c2_i32_97 = arith.constant 2 : i32
    %223 = vector.broadcast %c2_i32_97 : i32 to vector<32x1xi32>
    %224 = arith.addi %16, %223 : vector<32x1xi32>
    %c0_i32_98 = arith.constant 0 : i32
    %225 = vector.broadcast %c0_i32_98 : i32 to vector<32x1xi32>
    %226 = arith.cmpi sge, %224, %225 : vector<32x1xi32>
    %c2_i32_99 = arith.constant 2 : i32
    %227 = vector.broadcast %c2_i32_99 : i32 to vector<32x1xi32>
    %228 = arith.addi %16, %227 : vector<32x1xi32>
    %c15_i32_100 = arith.constant 15 : i32
    %229 = vector.broadcast %c15_i32_100 : i32 to vector<32x1xi32>
    %230 = arith.cmpi sle, %228, %229 : vector<32x1xi32>
    %231 = arith.andi %226, %230 : vector<32x1xi1>
    %cst_101 = arith.constant 0.000000e+00 : f32
    %232 = vector.broadcast %cst_101 : f32 to vector<32x1xf32>
    %233 = arith.select %231, %222, %232 : vector<32x1xi1>, vector<32x1xf32>
    %234 = vector.broadcast %221 : f32 to vector<32x1xf32>
    %235 = arith.mulf %234, %233 : vector<32x1xf32>
    %236 = arith.addf %220, %235 : vector<32x1xf32>
    %c1_102 = arith.constant 1 : index
    %c6_103 = arith.constant 6 : index
    %237 = memref.load %arg2[%c1_102, %c6_103] : memref<2x7xf32, #tpu.memory_space<smem>>
    %c29_i32_104 = arith.constant 29 : i32
    %238 = tpu.dynamic_rotate %51 by %c29_i32_104 dim 0 : vector<32x1xf32>, i32 -> vector<32x1xf32>
    %c3_i32_105 = arith.constant 3 : i32
    %239 = vector.broadcast %c3_i32_105 : i32 to vector<32x1xi32>
    %240 = arith.addi %16, %239 : vector<32x1xi32>
    %c0_i32_106 = arith.constant 0 : i32
    %241 = vector.broadcast %c0_i32_106 : i32 to vector<32x1xi32>
    %242 = arith.cmpi sge, %240, %241 : vector<32x1xi32>
    %c3_i32_107 = arith.constant 3 : i32
    %243 = vector.broadcast %c3_i32_107 : i32 to vector<32x1xi32>
    %244 = arith.addi %16, %243 : vector<32x1xi32>
    %c15_i32_108 = arith.constant 15 : i32
    %245 = vector.broadcast %c15_i32_108 : i32 to vector<32x1xi32>
    %246 = arith.cmpi sle, %244, %245 : vector<32x1xi32>
    %247 = arith.andi %242, %246 : vector<32x1xi1>
    %cst_109 = arith.constant 0.000000e+00 : f32
    %248 = vector.broadcast %cst_109 : f32 to vector<32x1xf32>
    %249 = arith.select %247, %238, %248 : vector<32x1xi1>, vector<32x1xf32>
    %250 = vector.broadcast %237 : f32 to vector<32x1xf32>
    %251 = arith.mulf %250, %249 : vector<32x1xf32>
    %252 = arith.addf %236, %251 : vector<32x1xf32>
    %cst_110 = arith.constant 0.000000e+00 : f32
    %253 = vector.broadcast %cst_110 : f32 to vector<32x1xf32>
    %254 = arith.subf %253, %252 : vector<32x1xf32>
    %255 = math.exp %254 : vector<32x1xf32>
    %cst_111 = arith.constant 1.000000e+00 : f32
    %256 = vector.broadcast %cst_111 : f32 to vector<32x1xf32>
    %257 = arith.addf %256, %255 : vector<32x1xf32>
    %258 = tpu.reciprocal %257 {approx = true} : vector<32x1xf32> -> vector<32x1xf32>
    %259 = vector.broadcast %258 : vector<32x1xf32> to vector<32x256xf32>
    %260 = arith.mulf %45, %259 : vector<32x256xf32>
    %c1_i32_112 = arith.constant 1 : i32
    %261 = tpu.dynamic_rotate %260 by %c1_i32_112 dim 0 : vector<32x256xf32>, i32 -> vector<32x256xf32>
    %c-1_i32_113 = arith.constant -1 : i32
    %262 = vector.broadcast %c-1_i32_113 : i32 to vector<32x1xi32>
    %263 = arith.addi %16, %262 : vector<32x1xi32>
    %c0_i32_114 = arith.constant 0 : i32
    %264 = vector.broadcast %c0_i32_114 : i32 to vector<32x1xi32>
    %265 = arith.cmpi sge, %263, %264 : vector<32x1xi32>
    %c-1_i32_115 = arith.constant -1 : i32
    %266 = vector.broadcast %c-1_i32_115 : i32 to vector<32x1xi32>
    %267 = arith.addi %16, %266 : vector<32x1xi32>
    %c15_i32_116 = arith.constant 15 : i32
    %268 = vector.broadcast %c15_i32_116 : i32 to vector<32x1xi32>
    %269 = arith.cmpi sle, %267, %268 : vector<32x1xi32>
    %270 = arith.andi %265, %269 : vector<32x1xi1>
    %cst_117 = arith.constant 0.000000e+00 : f32
    %271 = vector.shape_cast %270 : vector<32x1xi1> to vector<32x1xi1>
    %272 = vector.broadcast %271 : vector<32x1xi1> to vector<32x256xi1>
    %273 = vector.broadcast %cst_117 : f32 to vector<32x256xf32>
    %274 = arith.select %272, %261, %273 : vector<32x256xi1>, vector<32x256xf32>
    %c0_118 = arith.constant 0 : index
    %c0_119 = arith.constant 0 : index
    %c0_120 = arith.constant 0 : index
    %275 = vector.load %arg6[%c0_118, %c0_119, %c0_120] : memref<3x256x128xf32, #tpu.memory_space<vmem>>, vector<1x256x128xf32>
    %276 = vector.shape_cast %275 : vector<1x256x128xf32> to vector<256x128xf32>
    %cst_121 = arith.constant dense<0.000000e+00> : vector<32x128xf32>
    %277 = tpu.matmul %274, %276, %cst_121 {dimension_numbers = #tpu.dot_dimension_numbers<[1], [0], [0], [1], [0, 0, 1, 1], [], []>} : vector<32x256xf32>, vector<256x128xf32>, vector<32x128xf32> -> vector<32x128xf32>
    %c1_122 = arith.constant 1 : index
    %c0_123 = arith.constant 0 : index
    %c0_124 = arith.constant 0 : index
    %278 = vector.load %arg6[%c1_122, %c0_123, %c0_124] : memref<3x256x128xf32, #tpu.memory_space<vmem>>, vector<1x256x128xf32>
    %279 = vector.shape_cast %278 : vector<1x256x128xf32> to vector<256x128xf32>
    %cst_125 = arith.constant dense<0.000000e+00> : vector<32x128xf32>
    %280 = tpu.matmul %260, %279, %cst_125 {dimension_numbers = #tpu.dot_dimension_numbers<[1], [0], [0], [1], [0, 0, 1, 1], [], []>} : vector<32x256xf32>, vector<256x128xf32>, vector<32x128xf32> -> vector<32x128xf32>
    %281 = arith.addf %277, %280 : vector<32x128xf32>
    %c31_i32_126 = arith.constant 31 : i32
    %282 = tpu.dynamic_rotate %260 by %c31_i32_126 dim 0 : vector<32x256xf32>, i32 -> vector<32x256xf32>
    %c1_i32_127 = arith.constant 1 : i32
    %283 = vector.broadcast %c1_i32_127 : i32 to vector<32x1xi32>
    %284 = arith.addi %16, %283 : vector<32x1xi32>
    %c0_i32_128 = arith.constant 0 : i32
    %285 = vector.broadcast %c0_i32_128 : i32 to vector<32x1xi32>
    %286 = arith.cmpi sge, %284, %285 : vector<32x1xi32>
    %c1_i32_129 = arith.constant 1 : i32
    %287 = vector.broadcast %c1_i32_129 : i32 to vector<32x1xi32>
    %288 = arith.addi %16, %287 : vector<32x1xi32>
    %c15_i32_130 = arith.constant 15 : i32
    %289 = vector.broadcast %c15_i32_130 : i32 to vector<32x1xi32>
    %290 = arith.cmpi sle, %288, %289 : vector<32x1xi32>
    %291 = arith.andi %286, %290 : vector<32x1xi1>
    %cst_131 = arith.constant 0.000000e+00 : f32
    %292 = vector.shape_cast %291 : vector<32x1xi1> to vector<32x1xi1>
    %293 = vector.broadcast %292 : vector<32x1xi1> to vector<32x256xi1>
    %294 = vector.broadcast %cst_131 : f32 to vector<32x256xf32>
    %295 = arith.select %293, %282, %294 : vector<32x256xi1>, vector<32x256xf32>
    %c2_132 = arith.constant 2 : index
    %c0_133 = arith.constant 0 : index
    %c0_134 = arith.constant 0 : index
    %296 = vector.load %arg6[%c2_132, %c0_133, %c0_134] : memref<3x256x128xf32, #tpu.memory_space<vmem>>, vector<1x256x128xf32>
    %297 = vector.shape_cast %296 : vector<1x256x128xf32> to vector<256x128xf32>
    %cst_135 = arith.constant dense<0.000000e+00> : vector<32x128xf32>
    %298 = tpu.matmul %295, %297, %cst_135 {dimension_numbers = #tpu.dot_dimension_numbers<[1], [0], [0], [1], [0, 0, 1, 1], [], []>} : vector<32x256xf32>, vector<256x128xf32>, vector<32x128xf32> -> vector<32x128xf32>
    %299 = arith.addf %281, %298 : vector<32x128xf32>
    %c1_136 = arith.constant 1 : index
    %c0_137 = arith.constant 0 : index
    %300 = vector.load %arg12[%c1_136, %c0_137] : memref<8x256xf32, #tpu.memory_space<vmem>>, vector<1x128xf32>
    %301 = vector.broadcast %300 : vector<1x128xf32> to vector<32x128xf32>
    %302 = arith.addf %299, %301 : vector<32x128xf32>
    %cst_138 = arith.constant 0.000000e+00 : f32
    %303 = vector.broadcast %cst_138 : f32 to vector<32x128xf32>
    %304 = arith.maximumf %302, %303 : vector<32x128xf32>
    %c1_i32_139 = arith.constant 1 : i32
    %305 = tpu.dynamic_rotate %304 by %c1_i32_139 dim 0 : vector<32x128xf32>, i32 -> vector<32x128xf32>
    %c-1_i32_140 = arith.constant -1 : i32
    %306 = vector.broadcast %c-1_i32_140 : i32 to vector<32x1xi32>
    %307 = arith.addi %16, %306 : vector<32x1xi32>
    %c0_i32_141 = arith.constant 0 : i32
    %308 = vector.broadcast %c0_i32_141 : i32 to vector<32x1xi32>
    %309 = arith.cmpi sge, %307, %308 : vector<32x1xi32>
    %c-1_i32_142 = arith.constant -1 : i32
    %310 = vector.broadcast %c-1_i32_142 : i32 to vector<32x1xi32>
    %311 = arith.addi %16, %310 : vector<32x1xi32>
    %c15_i32_143 = arith.constant 15 : i32
    %312 = vector.broadcast %c15_i32_143 : i32 to vector<32x1xi32>
    %313 = arith.cmpi sle, %311, %312 : vector<32x1xi32>
    %314 = arith.andi %309, %313 : vector<32x1xi1>
    %cst_144 = arith.constant 0.000000e+00 : f32
    %315 = vector.shape_cast %314 : vector<32x1xi1> to vector<32x1xi1>
    %316 = vector.broadcast %315 : vector<32x1xi1> to vector<32x128xi1>
    %317 = vector.broadcast %cst_144 : f32 to vector<32x128xf32>
    %318 = arith.select %316, %305, %317 : vector<32x128xi1>, vector<32x128xf32>
    %c0_145 = arith.constant 0 : index
    %c0_146 = arith.constant 0 : index
    %c0_147 = arith.constant 0 : index
    %319 = vector.load %arg7[%c0_145, %c0_146, %c0_147] : memref<3x128x128xf32, #tpu.memory_space<vmem>>, vector<1x128x128xf32>
    %320 = vector.shape_cast %319 : vector<1x128x128xf32> to vector<128x128xf32>
    %cst_148 = arith.constant dense<0.000000e+00> : vector<32x128xf32>
    %321 = tpu.matmul %318, %320, %cst_148 {dimension_numbers = #tpu.dot_dimension_numbers<[1], [0], [0], [1], [0, 0, 1, 1], [], []>} : vector<32x128xf32>, vector<128x128xf32>, vector<32x128xf32> -> vector<32x128xf32>
    %c1_149 = arith.constant 1 : index
    %c0_150 = arith.constant 0 : index
    %c0_151 = arith.constant 0 : index
    %322 = vector.load %arg7[%c1_149, %c0_150, %c0_151] : memref<3x128x128xf32, #tpu.memory_space<vmem>>, vector<1x128x128xf32>
    %323 = vector.shape_cast %322 : vector<1x128x128xf32> to vector<128x128xf32>
    %cst_152 = arith.constant dense<0.000000e+00> : vector<32x128xf32>
    %324 = tpu.matmul %304, %323, %cst_152 {dimension_numbers = #tpu.dot_dimension_numbers<[1], [0], [0], [1], [0, 0, 1, 1], [], []>} : vector<32x128xf32>, vector<128x128xf32>, vector<32x128xf32> -> vector<32x128xf32>
    %325 = arith.addf %321, %324 : vector<32x128xf32>
    %c31_i32_153 = arith.constant 31 : i32
    %326 = tpu.dynamic_rotate %304 by %c31_i32_153 dim 0 : vector<32x128xf32>, i32 -> vector<32x128xf32>
    %c1_i32_154 = arith.constant 1 : i32
    %327 = vector.broadcast %c1_i32_154 : i32 to vector<32x1xi32>
    %328 = arith.addi %16, %327 : vector<32x1xi32>
    %c0_i32_155 = arith.constant 0 : i32
    %329 = vector.broadcast %c0_i32_155 : i32 to vector<32x1xi32>
    %330 = arith.cmpi sge, %328, %329 : vector<32x1xi32>
    %c1_i32_156 = arith.constant 1 : i32
    %331 = vector.broadcast %c1_i32_156 : i32 to vector<32x1xi32>
    %332 = arith.addi %16, %331 : vector<32x1xi32>
    %c15_i32_157 = arith.constant 15 : i32
    %333 = vector.broadcast %c15_i32_157 : i32 to vector<32x1xi32>
    %334 = arith.cmpi sle, %332, %333 : vector<32x1xi32>
    %335 = arith.andi %330, %334 : vector<32x1xi1>
    %cst_158 = arith.constant 0.000000e+00 : f32
    %336 = vector.shape_cast %335 : vector<32x1xi1> to vector<32x1xi1>
    %337 = vector.broadcast %336 : vector<32x1xi1> to vector<32x128xi1>
    %338 = vector.broadcast %cst_158 : f32 to vector<32x128xf32>
    %339 = arith.select %337, %326, %338 : vector<32x128xi1>, vector<32x128xf32>
    %c2_159 = arith.constant 2 : index
    %c0_160 = arith.constant 0 : index
    %c0_161 = arith.constant 0 : index
    %340 = vector.load %arg7[%c2_159, %c0_160, %c0_161] : memref<3x128x128xf32, #tpu.memory_space<vmem>>, vector<1x128x128xf32>
    %341 = vector.shape_cast %340 : vector<1x128x128xf32> to vector<128x128xf32>
    %cst_162 = arith.constant dense<0.000000e+00> : vector<32x128xf32>
    %342 = tpu.matmul %339, %341, %cst_162 {dimension_numbers = #tpu.dot_dimension_numbers<[1], [0], [0], [1], [0, 0, 1, 1], [], []>} : vector<32x128xf32>, vector<128x128xf32>, vector<32x128xf32> -> vector<32x128xf32>
    %343 = arith.addf %325, %342 : vector<32x128xf32>
    %c2_163 = arith.constant 2 : index
    %c0_164 = arith.constant 0 : index
    %344 = vector.load %arg12[%c2_163, %c0_164] : memref<8x256xf32, #tpu.memory_space<vmem>>, vector<1x128xf32>
    %345 = vector.broadcast %344 : vector<1x128xf32> to vector<32x128xf32>
    %346 = arith.addf %343, %345 : vector<32x128xf32>
    %cst_165 = arith.constant 0.000000e+00 : f32
    %347 = vector.broadcast %cst_165 : f32 to vector<32x128xf32>
    %348 = arith.maximumf %346, %347 : vector<32x128xf32>
    %349 = vector.shape_cast %348 : vector<32x128xf32> to vector<2x16x128xf32>
    %cst_166 = arith.constant dense<0xFF800000> : vector<2x128xf32>
    %350 = vector.multi_reduction <maximumf>, %349, %cst_166 [1] : vector<2x16x128xf32> to vector<2x128xf32>
    %c0_167 = arith.constant 0 : index
    %c0_168 = arith.constant 0 : index
    %351 = vector.load %arg8[%c0_167, %c0_168] : memref<128x256xf32, #tpu.memory_space<vmem>>, vector<128x256xf32>
    %cst_169 = arith.constant dense<0.000000e+00> : vector<2x256xf32>
    %352 = tpu.matmul %350, %351, %cst_169 {dimension_numbers = #tpu.dot_dimension_numbers<[1], [0], [0], [1], [0, 0, 1, 1], [], []>} : vector<2x128xf32>, vector<128x256xf32>, vector<2x256xf32> -> vector<2x256xf32>
    %c3_170 = arith.constant 3 : index
    %c0_171 = arith.constant 0 : index
    %353 = vector.load %arg12[%c3_170, %c0_171] : memref<8x256xf32, #tpu.memory_space<vmem>>, vector<1x256xf32>
    %354 = vector.broadcast %353 : vector<1x256xf32> to vector<2x256xf32>
    %355 = arith.addf %352, %354 : vector<2x256xf32>
    %cst_172 = arith.constant 0.000000e+00 : f32
    %356 = vector.broadcast %cst_172 : f32 to vector<2x256xf32>
    %357 = arith.maximumf %355, %356 : vector<2x256xf32>
    %c0_173 = arith.constant 0 : index
    %c0_174 = arith.constant 0 : index
    %358 = vector.load %arg9[%c0_173, %c0_174] : memref<256x128xf32, #tpu.memory_space<vmem>>, vector<256x128xf32>
    %cst_175 = arith.constant dense<0.000000e+00> : vector<2x128xf32>
    %359 = tpu.matmul %357, %358, %cst_175 {dimension_numbers = #tpu.dot_dimension_numbers<[1], [0], [0], [1], [0, 0, 1, 1], [], []>} : vector<2x256xf32>, vector<256x128xf32>, vector<2x128xf32> -> vector<2x128xf32>
    %c4_176 = arith.constant 4 : index
    %c0_177 = arith.constant 0 : index
    %360 = vector.load %arg12[%c4_176, %c0_177] : memref<8x256xf32, #tpu.memory_space<vmem>>, vector<1x128xf32>
    %361 = vector.broadcast %360 : vector<1x128xf32> to vector<2x128xf32>
    %362 = arith.addf %359, %361 : vector<2x128xf32>
    %cst_178 = arith.constant 0.000000e+00 : f32
    %363 = vector.broadcast %cst_178 : f32 to vector<2x128xf32>
    %364 = arith.maximumf %362, %363 : vector<2x128xf32>
    %c0_179 = arith.constant 0 : index
    %c0_180 = arith.constant 0 : index
    %365 = vector.load %arg10[%c0_179, %c0_180] : memref<128x256xf32, #tpu.memory_space<vmem>>, vector<128x256xf32>
    %cst_181 = arith.constant dense<0.000000e+00> : vector<2x256xf32>
    %366 = tpu.matmul %364, %365, %cst_181 {dimension_numbers = #tpu.dot_dimension_numbers<[1], [0], [0], [1], [0, 0, 1, 1], [], []>} : vector<2x128xf32>, vector<128x256xf32>, vector<2x256xf32> -> vector<2x256xf32>
    %c5_182 = arith.constant 5 : index
    %c0_183 = arith.constant 0 : index
    %367 = vector.load %arg12[%c5_182, %c0_183] : memref<8x256xf32, #tpu.memory_space<vmem>>, vector<1x256xf32>
    %368 = vector.broadcast %367 : vector<1x256xf32> to vector<2x256xf32>
    %369 = arith.addf %366, %368 : vector<2x256xf32>
    %cst_184 = arith.constant 0.000000e+00 : f32
    %370 = vector.broadcast %cst_184 : f32 to vector<2x256xf32>
    %371 = arith.maximumf %369, %370 : vector<2x256xf32>
    %c0_185 = arith.constant 0 : index
    %c0_186 = arith.constant 0 : index
    %372 = vector.load %arg11[%c0_185, %c0_186] : memref<256x128xf32, #tpu.memory_space<vmem>>, vector<256x128xf32>
    %cst_187 = arith.constant dense<0.000000e+00> : vector<2x128xf32>
    %373 = tpu.matmul %371, %372, %cst_187 {dimension_numbers = #tpu.dot_dimension_numbers<[1], [0], [0], [1], [0, 0, 1, 1], [], []>} : vector<2x256xf32>, vector<256x128xf32>, vector<2x128xf32> -> vector<2x128xf32>
    %c6_188 = arith.constant 6 : index
    %c0_189 = arith.constant 0 : index
    %374 = vector.load %arg12[%c6_188, %c0_189] : memref<8x256xf32, #tpu.memory_space<vmem>>, vector<1x128xf32>
    %375 = vector.broadcast %374 : vector<1x128xf32> to vector<2x128xf32>
    %376 = arith.addf %373, %375 : vector<2x128xf32>
    %c0_190 = arith.constant 0 : index
    %c0_191 = arith.constant 0 : index
    %377 = vector.load %arg13[%c0_190, %c0_191] : memref<2x128xf32, #tpu.memory_space<vmem>>, vector<2x128xf32>
    tpu.vector_store %arg13[%c0_190, %c0_191], %376 {strides = array<i32>} : memref<2x128xf32, #tpu.memory_space<vmem>>, vector<2x128xf32>,
    return
  }
  func.func @transform_0(%arg0: i32) -> (i32, i32, i32) {
    %c0_i32 = arith.constant 0 : i32
    %c0_i32_0 = arith.constant 0 : i32
    %c0_i32_1 = arith.constant 0 : i32
    return %arg0, %c0_i32, %c0_i32_0 : i32, i32, i32
  }
  func.func @transform_1(%arg0: i32) -> (i32, i32) {
    %c0_i32 = arith.constant 0 : i32
    %c0_i32_0 = arith.constant 0 : i32
    %c0_i32_1 = arith.constant 0 : i32
    return %c0_i32, %c0_i32_0 : i32, i32
  }
  func.func @transform_2(%arg0: i32) -> (i32, i32) {
    %c0_i32 = arith.constant 0 : i32
    %c0_i32_0 = arith.constant 0 : i32
    %c0_i32_1 = arith.constant 0 : i32
    return %c0_i32, %c0_i32_0 : i32, i32
  }
  func.func @transform_3(%arg0: i32) -> (i32, i32) {
    %c0_i32 = arith.constant 0 : i32
    %c0_i32_0 = arith.constant 0 : i32
    %c0_i32_1 = arith.constant 0 : i32
    return %c0_i32, %c0_i32_0 : i32, i32
  }
  func.func @transform_4(%arg0: i32) -> (i32, i32) {
    %c0_i32 = arith.constant 0 : i32
    %c0_i32_0 = arith.constant 0 : i32
    %c0_i32_1 = arith.constant 0 : i32
    return %c0_i32, %c0_i32_0 : i32, i32
  }
  func.func @transform_5(%arg0: i32) -> (i32, i32, i32) {
    %c0_i32 = arith.constant 0 : i32
    %c0_i32_0 = arith.constant 0 : i32
    %c0_i32_1 = arith.constant 0 : i32
    %c0_i32_2 = arith.constant 0 : i32
    return %c0_i32, %c0_i32_0, %c0_i32_1 : i32, i32, i32
  }
  func.func @transform_6(%arg0: i32) -> (i32, i32, i32) {
    %c0_i32 = arith.constant 0 : i32
    %c0_i32_0 = arith.constant 0 : i32
    %c0_i32_1 = arith.constant 0 : i32
    %c0_i32_2 = arith.constant 0 : i32
    return %c0_i32, %c0_i32_0, %c0_i32_1 : i32, i32, i32
  }
  func.func @transform_7(%arg0: i32) -> (i32, i32) {
    %c0_i32 = arith.constant 0 : i32
    %c0_i32_0 = arith.constant 0 : i32
    %c0_i32_1 = arith.constant 0 : i32
    return %c0_i32, %c0_i32_0 : i32, i32
  }
  func.func @transform_8(%arg0: i32) -> (i32, i32) {
    %c0_i32 = arith.constant 0 : i32
    %c0_i32_0 = arith.constant 0 : i32
    %c0_i32_1 = arith.constant 0 : i32
    return %c0_i32, %c0_i32_0 : i32, i32
  }
  func.func @transform_9(%arg0: i32) -> (i32, i32) {
    %c0_i32 = arith.constant 0 : i32
    %c0_i32_0 = arith.constant 0 : i32
    %c0_i32_1 = arith.constant 0 : i32
    return %c0_i32, %c0_i32_0 : i32, i32
  }
  func.func @transform_10(%arg0: i32) -> (i32, i32) {
    %c0_i32 = arith.constant 0 : i32
    %c0_i32_0 = arith.constant 0 : i32
    %c0_i32_1 = arith.constant 0 : i32
    return %c0_i32, %c0_i32_0 : i32, i32
  }
  func.func @transform_11(%arg0: i32) -> (i32, i32) {
    %c0_i32 = arith.constant 0 : i32
    %c0_i32_0 = arith.constant 0 : i32
    %c0_i32_1 = arith.constant 0 : i32
    return %c0_i32, %c0_i32_0 : i32, i32
  }
  func.func @transform_12(%arg0: i32) -> (i32, i32) {
    %c0_i32 = arith.constant 0 : i32
    %c0_i32_0 = arith.constant 0 : i32
    return %arg0, %c0_i32 : i32, i32
  }
}

</mosaic_0001>

<bundles_post_ra>
// kernel: tpu_custom_call.1
= control target key start
LH: loop header
LB: loop body
LE: loop exit
PB: predicated region body
PF: predicated region fallthrough
CT: control target
= control target key end

     0   :  { %17 = vsyncpa [#allocation5], 0  ;;  %s4095_s0 = inlined_call_operand.vmem [shape: f32[2,16,8], index: 0, kind: input, shape index: {}]   ;;  %s4096_s1 = inlined_call_operand.vmem [shape: f32[2,7], index: 1, kind: input, shape index: {}]   ;;  %s4097_s2 = inlined_call_operand.vmem [shape: f32[8,256], index: 2, kind: input, shape index: {}]   ;;  %s4098_s3 = inlined_call_operand.vmem [shape: f32[256,16], index: 3, kind: input, shape index: {}]   ;;  %s4099_s4 = inlined_call_operand.vmem [shape: f32[16,256], index: 4, kind: input, shape index: {}]   ;;  %s4100_s5 = inlined_call_operand.hbm [shape: f32[3,256,128], index: 5, kind: input, shape index: {}]   ;;  %s4101_s6 = inlined_call_operand.hbm [shape: f32[3,128,128], index: 6, kind: input, shape index: {}]   ;;  %s4102_s7 = inlined_call_operand.vmem [shape: f32[128,256], index: 7, kind: input, shape index: {}]   ;;  %s4103_s8 = inlined_call_operand.hbm [shape: f32[256,128], index: 8, kind: input, shape index: {}]   ;;  %s4104_s9 = inlined_call_operand.hbm [shape: f32[128,256], index: 9, kind: input, shape index: {}]   ;;  %s4105_s10 = inlined_call_operand.hbm [shape: f32[256,128], index: 10, kind: input, shape index: {}]   ;;  %s4106_s11 = inlined_call_operand.vmem [shape: f32[8,256], index: 11, kind: input, shape index: {}]   ;;  %s4107_s12 = inlined_call_operand.hbm [shape: f32[2,128], index: 12, kind: output, shape index: {}]  }
   0x1   :  { %18 = vsyncpa [#allocation3], 0 }
   0x2   :  { %19 = vsyncpa [#allocation8], 0 }
   0x3   :  { %20 = vsyncpa [#allocation11], 0 }
   0x4   :  { %21 = vsyncpa [#allocation4], 0  ;;  %s2929_s21 = smov [#allocation7]   ;;  %s2930_s23 = smov [#allocation10]  }
   0x5   :  { %s57_s22 = sshll.u32 %s2929_s21, 4  ;;  %s83_s24 = sshll.u32 %s2930_s23, 4  ;;  %s58_s22 = int_to_ptr.vmem [resolvable:$true] %s57_s22  ;;  %s84_s24 = int_to_ptr.vmem [resolvable:$true] %s83_s24 }
   0x6   :  { %s2795_s25 = scalar_lea.vmem %s58_s22, 6144  ;;  %p2800_p1 = scmp.lt.s32.totalorder %s58_s22, %s58_s22 }
   0x7   :  { %p2796_p0 = scmp.ne.s32.totalorder %s58_s22, %s2795_s25  ;;  %p2801_p2 = scmp.lt.s32.totalorder %s2795_s25, %s2795_s25 }
   0x9   :  { %p2802_p3 = por %p2801_p2, %p2800_p1 }
   0xb   :  { %p2803_p4 = pnand %p2802_p3, %p2796_p0 }
   0xd   :  { %2806 = shalt.err (!%p2803_p4)
}
   0xe   :  { %s2931_s26 = smov 128   ;;  %s2932_s27 = smov 8  }
   0xf   :  { %63 = dma.hbm_to_vmem [thread:$0]  %s4101_s6, 6144, %s58_s22, [#allocation8], %s2931_s26, %s2931_s26, %s2932_s27  }
  0x10   :  { %s2815_s30 = scalar_lea.vmem %s84_s24, 4096  ;;  %p2820_p6 = scmp.lt.s32.totalorder %s84_s24, %s84_s24 }
  0x11   :  { %p2816_p5 = scmp.ne.s32.totalorder %s84_s24, %s2815_s30  ;;  %p2821_p7 = scmp.lt.s32.totalorder %s2815_s30, %s2815_s30 }
  0x13   :  { %p2822_p8 = por %p2821_p7, %p2820_p6 }
  0x15   :  { %p2823_p9 = pnand %p2822_p8, %p2816_p5 }
  0x17   :  { %2826 = shalt.err (!%p2823_p9)
}
  0x18   :  { %s2933_s13 = smov 256   ;;  %s2934_s14 = smov 16  }
  0x19   :  { %89 = dma.hbm_to_vmem [thread:$0]  %s4104_s9, 4096, %s84_s24, [#allocation11], %s2933_s13, %s2933_s13, %s2934_s14  }
  0x1a   :  { %s30_s19 = sshll.u32 %s4096_s1, 4  ;;  %s31_s19 = int_to_ptr.vmem [resolvable:$true] %s30_s19 }
  0x1b   :  { %s2827_s20 = scalar_lea.vmem %s31_s19, 32  ;;  %p2832_p11 = scmp.lt.s32.totalorder %s31_s19, %s31_s19 }
  0x1c   :  { %p2828_p10 = scmp.ne.s32.totalorder %s31_s19, %s2827_s20  ;;  %p2833_p12 = scmp.lt.s32.totalorder %s2827_s20, %s2827_s20 }
  0x1e   :  { %p2834_p13 = por %p2833_p12, %p2832_p11 }
  0x20   :  { %p2835_p0 = pnand %p2834_p13, %p2828_p10 }
  0x22   :  { %2838 = shalt.err (!%p2835_p0)
}
  0x23   :  { %s2935_s6 = smov [#allocation2]   ;;  %s2936_s21 = smov [#allocation6]  }
  0x24   :  { %33 = dma.vmem_to_smem %s31_s19, 32, %s2935_s6, [#allocation5]  }
  0x25   :  { %s45_s22 = sshll.u32 %s2936_s21, 4  ;;  %s2937_s23 = smov [#allocation9]   ;;  %s46_s22 = int_to_ptr.vmem [resolvable:$true] %s45_s22 }
  0x26   :  { %s71_s25 = sshll.u32 %s2937_s23, 4  ;;  %s2847_s9 = scalar_lea.vmem %s46_s22, 12288  ;;  %s72_s25 = int_to_ptr.vmem [resolvable:$true] %s71_s25 }
  0x27   :  { %p2848_p1 = scmp.ne.s32.totalorder %s46_s22, %s2847_s9  ;;  %p2852_p2 = scmp.lt.s32.totalorder %s46_s22, %s46_s22 }
  0x28   :  { %p2853_p3 = scmp.lt.s32.totalorder %s2847_s9, %s2847_s9 }
  0x2a   :  { %p2854_p4 = por %p2853_p3, %p2852_p2 }
  0x2c   :  { %p2855_p5 = pnand %p2854_p4, %p2848_p1 }
  0x2e   :  { %2858 = shalt.err (!%p2855_p5)
}
  0x2f   :  { %51 = dma.hbm_to_vmem [thread:$0]  %s4100_s5, 12288, %s46_s22, [#allocation3], %s2931_s26, %s2931_s26, %s2932_s27  }
  0x30   :  { %s2867_s28 = scalar_lea.vmem %s72_s25, 4096  ;;  %p2872_p7 = scmp.lt.s32.totalorder %s72_s25, %s72_s25 }
  0x31   :  { %p2868_p6 = scmp.ne.s32.totalorder %s72_s25, %s2867_s28  ;;  %p2873_p8 = scmp.lt.s32.totalorder %s2867_s28, %s2867_s28 }
  0x33   :  { %p2874_p9 = por %p2873_p8, %p2872_p7 }
  0x35   :  { %p2875_p10 = pnand %p2874_p9, %p2868_p6 }
  0x37   :  { %2878 = shalt.err (!%p2875_p10)
}
  0x38   :  { %77 = dma.hbm_to_vmem [thread:$0]  %s4103_s8, 4096, %s72_s25, [#allocation8], %s2931_s26, %s2931_s26, %s2932_s27  }
  0x39   :  { %s2938_s13 = smov [#allocation12]  }
  0x3a   :  { %s95_s14 = sshll.u32 %s2938_s13, 4  ;;  %s96_s14 = int_to_ptr.vmem [resolvable:$true] %s95_s14 }
  0x3b   :  { %s2887_s15 = scalar_lea.vmem %s96_s14, 4096  ;;  %p2892_p12 = scmp.lt.s32.totalorder %s96_s14, %s96_s14 }
  0x3c   :  { %p2888_p11 = scmp.ne.s32.totalorder %s96_s14, %s2887_s15  ;;  %p2893_p13 = scmp.lt.s32.totalorder %s2887_s15, %s2887_s15 }
  0x3e   :  { %p2894_p0 = por %p2893_p13, %p2892_p12 }
  0x40   :  { %p2895_p1 = pnand %p2894_p0, %p2888_p11 }
  0x42   :  { %2898 = shalt.err (!%p2895_p1)
}
  0x43   :  { %101 = dma.hbm_to_vmem [thread:$0]  %s4105_s10, 4096, %s96_s14, [#allocation11], %s2931_s26, %s2931_s26, %s2932_s27  }
  0x44   :  { %2919 = dma.done.wait [#allocation5], 32  }
  0x45   :  { %2920 = vsyncadd [#allocation5], 4294967264 }
  0x46   :  { %2921 = dma.done.wait [#allocation3], 12288  }
  0x47   :  { %2922 = vsyncadd [#allocation3], 4294955008 }
  0x48   :  { %2923 = dma.done.wait [#allocation8], 10240  }
  0x49   :  { %2924 = vsyncadd [#allocation8], 4294957056 }
  0x4a   :  { %2925 = dma.done.wait [#allocation11], 8192  }
  0x4b   :  { %2926 = vsyncadd [#allocation11], 4294959104 }
  0x4c   :  { %122 = sfence }
  0x4d   :  { %v181_v0 = vld [vmem:[%s4097_s2 + $0x8] sm:$0xff]  ;;  %v180_v1 = vld [vmem:[%s4097_s2] sm:$0xff]  ;;  %vm194_vm0 = vcmask 64512   ;;  %v4108_v3 = vmov 0.0   ;;  %v178_v5 = vld [vmem:[%s4095_s0 + $0x10] sm:$0xff]  ;;  %v123_v43 = vlaneseq  ;;  %vm372_vm1 = vcmask 1041409  }
  0x4e   :  { %v176_v2 = vld [vmem:[%s4095_s0] sm:$0xff]  ;;  %237 = vmatprep.subr.mxu0 %v181_v0  ;;  %271 = vmatprep.mubr.f32.mxu0 %v4108_v3  ;;  %v177_v4 = vld [vmem:[%s4095_s0 + $0x8] sm:$0xff]  ;;  %v179_v6 = vld [vmem:[%s4095_s0 + $0x18] sm:$0xff]  ;;  %vm452_vm2 = vcmask 130048   ;;  %s3279_s26 = sld [smem:[#allocation2 + $0x2]] }
  0x4f   :  { %238 = vmatpush1.msra.mxu0 %v180_v1  ;;  %v367_v7 = vld [vmem:[%s4098_s3 + $0xf8] sm:$0xff]  ;;  %v366_v9 = vld [vmem:[%s4098_s3 + $0xf0] sm:$0xff]  ;;  %v365_v11 = vld [vmem:[%s4098_s3 + $0xe8] sm:$0xff]  ;;  %v3169_v44 = vshrl.u32 %v123_v43, 7  ;;  %s3281_s2 = sld [smem:[#allocation2 + $0x4]] }
  0x50   :  { %2304 = vmatmul.mubr.msk.f32.vlgmr.msra.gmra.mxu0 %vm194_vm0, %v176_v2  ;;  %2336 = vmatprep.subr.mxu1 %v367_v7  ;;  %v351_v8 = vld [vmem:[%s4098_s3 + $0x78] sm:$0xff]  ;;  %v350_v10 = vld [vmem:[%s4098_s3 + $0x70] sm:$0xff]  ;;  %v349_v12 = vld [vmem:[%s4098_s3 + $0x68] sm:$0xff]  ;;  %s3283_s27 = sld [smem:[#allocation2 + $0x83]] }
  0x51   :  { %277 = vmatprep.mubr.f32.mxu0 %v4108_v3  ;;  %2337 = vmatpush3.msra.mxu1 %v351_v8  ;;  %v364_v13 = vld [vmem:[%s4098_s3 + $0xe0] sm:$0xff]  ;;  %v363_v15 = vld [vmem:[%s4098_s3 + $0xd8] sm:$0xff]  ;;  %v362_v17 = vld [vmem:[%s4098_s3 + $0xd0] sm:$0xff]  ;;  %v3172_v45 = vsub.s32 0, %v3169_v44  ;;  %v3178_v47 = vsub.s32 1, %v3169_v44  ;;  %s3285_s21 = sld [smem:[#allocation2]] }
  0x52   :  { %2338 = vmatprep.subr.mxu1 %v366_v9  ;;  %v348_v14 = vld [vmem:[%s4098_s3 + $0x60] sm:$0xff]  ;;  %v347_v16 = vld [vmem:[%s4098_s3 + $0x58] sm:$0xff]  ;;  %v346_v18 = vld [vmem:[%s4098_s3 + $0x50] sm:$0xff]  ;;  %s3287_s22 = sld [smem:[#allocation2 + $0x1]]  ;;  %vm701_vm3 = vcmp.lt.s32.totalorder %v3169_v44, 1  ;;  %vm623_vm4 = vcmp.lt.s32.totalorder %v3169_v44, 3 }
  0x53   :  { %2339 = vmatpush3.msra.mxu1 %v350_v10  ;;  %v361_v19 = vld [vmem:[%s4098_s3 + $0xc8] sm:$0xff]  ;;  %v360_v21 = vld [vmem:[%s4098_s3 + $0xc0] sm:$0xff]  ;;  %v359_v23 = vld [vmem:[%s4098_s3 + $0xb8] sm:$0xff]  ;;  %4137 = vst [vmem:[#allocation19_spill] sm:$0xff] %v3172_v45  ;;  %s3289_s23 = sld [smem:[#allocation2 + $0x5]]  ;;  %vm750_vm5 = vcmp.lt.s32.totalorder %v3169_v44, 7 }
  0x54   :  { %2305 = vmatmul.mubr.msk.f32.gmra.mxu0 %vm194_vm0, %v177_v4  ;;  %2340 = vmatprep.subr.mxu1 %v365_v11  ;;  %v345_v20 = vld [vmem:[%s4098_s3 + $0x48] sm:$0xff]  ;;  %v344_v22 = vld [vmem:[%s4098_s3 + $0x40] sm:$0xff]  ;;  %v343_v24 = vld [vmem:[%s4098_s3 + $0x38] sm:$0xff]  ;;  %4138 = vst [vmem:[#allocation20_spill] sm:$0xff] %v3178_v47  ;;  %s3291_s25 = sld [smem:[#allocation2 + $0x6]]  ;;  %vm662_vm6 = vcmp.lt.s32.totalorder %v3169_v44, 2 }
  0x55   :  { %283 = vmatprep.mubr.f32.mxu0 %v4108_v3  ;;  %2341 = vmatpush3.msra.mxu1 %v349_v12  ;;  %v358_v25 = vld [vmem:[%s4098_s3 + $0xb0] sm:$0xff]  ;;  %v357_v27 = vld [vmem:[%s4098_s3 + $0xa8] sm:$0xff]  ;;  %v356_v29 = vld [vmem:[%s4098_s3 + $0xa0] sm:$0xff]  ;;  %s3293_s9 = sld [smem:[#allocation2 + $0x80]]  ;;  %vm789_vm7 = vcmp.lt.s32.totalorder %v3169_v44, 6  ;;  %vm828_vm11 = vcmp.lt.s32.totalorder %v3169_v44, 5 }
  0x56   :  { %2342 = vmatprep.subr.mxu1 %v364_v13  ;;  %v342_v26 = vld [vmem:[%s4098_s3 + $0x30] sm:$0xff]  ;;  %v341_v28 = vld [vmem:[%s4098_s3 + $0x28] sm:$0xff]  ;;  %v340_v30 = vld [vmem:[%s4098_s3 + $0x20] sm:$0xff]  ;;  %s3295_s1 = sld [smem:[#allocation2 + $0x81]] }
  0x57   :  { %2343 = vmatpush3.msra.mxu1 %v348_v14  ;;  %v355_v31 = vld [vmem:[%s4098_s3 + $0x98] sm:$0xff]  ;;  %v354_v33 = vld [vmem:[%s4098_s3 + $0x90] sm:$0xff]  ;;  %v353_v35 = vld [vmem:[%s4098_s3 + $0x88] sm:$0xff]  ;;  %s3297_s24 = sld [smem:[#allocation2 + $0x82]] }
  0x58   :  { %2306 = vmatmul.mubr.msk.f32.gmra.mxu0 %vm194_vm0, %v178_v5  ;;  %2344 = vmatprep.subr.mxu1 %v363_v15  ;;  %v339_v32 = vld [vmem:[%s4098_s3 + $0x18] sm:$0xff]  ;;  %v338_v34 = vld [vmem:[%s4098_s3 + $0x10] sm:$0xff]  ;;  %v337_v36 = vld [vmem:[%s4098_s3 + $0x8] sm:$0xff]  ;;  %s3300_s28 = sld [smem:[#allocation2 + $0x84]] }
  0x59   :  { %289 = vmatprep.mubr.f32.mxu0 %v4108_v3  ;;  %2345 = vmatpush3.msra.mxu1 %v347_v16  ;;  %v352_v37 = vld [vmem:[%s4098_s3 + $0x80] sm:$0xff]  ;;  %v451_v39 = vld [vmem:[%s4099_s4 + $0x18] sm:$0xff]  ;;  %v450_v40 = vld [vmem:[%s4099_s4 + $0x10] sm:$0xff]  ;;  %s3302_s29 = sld [smem:[#allocation2 + $0x85]] }
  0x5a   :  { %2346 = vmatprep.subr.mxu1 %v362_v17  ;;  %v336_v38 = vld [vmem:[%s4098_s3] sm:$0xff]  ;;  %v449_v41 = vld [vmem:[%s4099_s4 + $0x8] sm:$0xff]  ;;  %484 = vmatprep.subr.mxu0 %v451_v39  ;;  %s3304_s0 = sld [smem:[#allocation2 + $0x86]] }
  0x5b   :  { %2347 = vmatpush3.msra.mxu1 %v346_v18  ;;  %v448_v42 = vld [vmem:[%s4099_s4] sm:$0xff]  ;;  %485 = vmatpush1.msra.mxu0 %v450_v40  ;;  %s3277_s4 = sld [smem:[#allocation2 + $0x3]] }
  0x5c   :  { %2307 = vmatmul.mubr.msk.f32.gmra.mxu0 %vm194_vm0, %v179_v6  ;;  %2348 = vmatprep.subr.mxu1 %v361_v19  ;;  %v182_v46 = vld [vmem:[%s4106_s11] ss:$8 sm:$0x3] }
  0x5d   :  { %520 = vmatprep.mubr.f32.mxu0 %v4108_v3  ;;  %2349 = vmatpush3.msra.mxu1 %v345_v20  ;;  %v187_v48 = vrot.slane %v182_v46, %v3172_v45  ;;  %v191_v50 = vrot.slane %v182_v46, %v3178_v47 }
  0x5e   :  { %2350 = vmatprep.subr.mxu1 %v360_v21  ;;  %486 = vmatprep.subr.mxu0 %v449_v41 }
  0x5f   :  { %2351 = vmatpush3.msra.mxu1 %v344_v22  ;;  %487 = vmatpush1.msra.mxu0 %v448_v42 }
  0x60   :  { %2352 = vmatprep.subr.mxu1 %v359_v23 }
  0x61   :  { %2353 = vmatpush3.msra.mxu1 %v343_v24 }
  0x62   :  { %2354 = vmatprep.subr.mxu1 %v358_v25 }
  0x63   :  { %2355 = vmatpush3.msra.mxu1 %v342_v26 }
  0x64   :  { %2356 = vmatprep.subr.mxu1 %v357_v27 }
  0x65   :  { %2357 = vmatpush3.msra.mxu1 %v341_v28 }
  0x66   :  { %2358 = vmatprep.subr.mxu1 %v356_v29 }
  0x67   :  { %2359 = vmatpush3.msra.mxu1 %v340_v30 }
  0x68   :  { %2360 = vmatprep.subr.mxu1 %v355_v31 }
  0x69   :  { %2361 = vmatpush3.msra.mxu1 %v339_v32 }
  0x6a   :  { %2362 = vmatprep.subr.mxu1 %v354_v33 }
  0x6b   :  { %2363 = vmatpush3.msra.mxu1 %v338_v34 }
  0x6c   :  { %2364 = vmatprep.subr.mxu1 %v353_v35 }
  0x6d   :  { %2365 = vmatpush3.msra.mxu1 %v337_v36 }
  0x6e   :  { %2366 = vmatprep.subr.mxu1 %v352_v37 }
  0x6f   :  { %2367 = vmatpush3.msra.mxu1 %v336_v38 }
 0x110   :  { %v273_v49 = vpop.f32.mrf.mxu0 }
 0x111   :  { %v3182_v52 = vadd.f32 %v273_v49, %v187_v48 }
 0x112   :  { %v275_v51 = vpop.f32.mrf.mxu0 }
 0x113   :  { %v3184_v54 = vadd.f32 %v275_v51, %v191_v50  ;;  %v296_v57 = vmax.f32 %v3182_v52, 0.0 }
 0x114   :  { %v279_v53 = vpop.f32.mrf.mxu0 }
 0x115   :  { %v3186_v55 = vadd.f32 %v279_v53, %v187_v48  ;;  %v297_v61 = vmax.f32 %v3184_v54, 0.0 }
 0x116   :  { %v281_v56 = vpop.f32.mrf.mxu0 }
 0x117   :  { %v298_v58 = vmax.f32 %v3186_v55, 0.0  ;;  %v3190_v59 = vadd.f32 %v281_v56, %v191_v50 }
 0x118   :  { %v285_v60 = vpop.f32.mrf.mxu0 }
 0x119   :  { %v304_v62 = vadd.f32 %v298_v58, %v296_v57  ;;  %v299_v63 = vmax.f32 %v3190_v59, 0.0  ;;  %v3202_v4 = vadd.f32 %v285_v60, %v187_v48 }
 0x11a   :  { %v287_v0 = vpop.f32.mrf.mxu0 }
 0x11b   :  { %v305_v1 = vrot.slane %v304_v62, 4  ;;  %v311_v2 = vadd.f32 %v299_v63, %v297_v61  ;;  %v3204_v7 = vadd.f32 %v287_v0, %v191_v50  ;;  %v300_v12 = vmax.f32 %v3202_v4, 0.0 }
 0x11c   :  { %v291_v5 = vpop.f32.mrf.mxu0 }
 0x11d   :  { %v312_v6 = vrot.slane %v311_v2, 4  ;;  %v3206_v8 = vadd.f32 %v291_v5, %v187_v48  ;;  %v306_v9 = vadd.f32 %v305_v1, %v304_v62  ;;  %v301_v16 = vmax.f32 %v3204_v7, 0.0 }
 0x11e   :  { %v293_v10 = vpop.f32.mrf.mxu0  ;;  %v2941_v7 = vmov 0  }
 0x11f   :  { %v313_v11 = vadd.f32 %v312_v6, %v311_v2  ;;  %v302_v13 = vmax.f32 %v3206_v8, 0.0  ;;  %v3210_v14 = vadd.f32 %v293_v10, %v191_v50  ;;  %v307_v19 = vrot.slane %v306_v9, 2  ;;  %2762 = vset.pattern.permute.xlu1 %v2941_v7  ;;  %2761 = vset.pattern.permute.xlu0 %v2941_v7 }
 0x120   :  { %v2940_v10 = vmov 1966171168  }
 0x121   :  { %v314_v15 = vrot.slane %v313_v11, 2  ;;  %v318_v17 = vadd.f32 %v302_v13, %v300_v12  ;;  %v303_v18 = vmax.f32 %v3210_v14, 0.0  ;;  %v308_v25 = vadd.f32 %v307_v19, %v306_v9 }
 0x123   :  { %v319_v20 = vrot.slane %v318_v17, 4  ;;  %v325_v21 = vadd.f32 %v303_v18, %v301_v16  ;;  %v315_v24 = vadd.f32 %v314_v15, %v313_v11  ;;  %v309_v31 = vrot.slane %v308_v25, 1 }
 0x124   :  { %v541_v11 = vunpack.c.l.s4 %v2940_v10  ;;  %v1094_v10 = vld [vmem:[#allocation6 + $0x50] sm:$0xff] }
 0x125   :  { %v320_v22 = vadd.f32 %v319_v20, %v318_v17  ;;  %v326_v23 = vrot.slane %v325_v21, 4  ;;  %v316_v30 = vrot.slane %v315_v24, 1  ;;  %v310_v37 = vadd.f32 %v309_v31, %v308_v25 }
 0x126   :  { %v542_v15 = vunpack.c.0.s8 %v541_v11  ;;  %v1140_v11 = vld [vmem:[#allocation6 + $0x1b8] sm:$0xff] }
 0x127   :  { %v321_v26 = vrot.slane %v320_v22, 2  ;;  %v327_v27 = vadd.f32 %v326_v23, %v325_v21  ;;  %v317_v34 = vadd.f32 %v316_v30, %v315_v24  ;;  %v332_v42 = vmul.f32 0.0625, %v310_v37  ;;  %v1145_v37 = vld [vmem:[#allocation6 + $0x1e0] sm:$0xff] }
 0x128   :  { %v545_v19 = vsub.s32 %v542_v15, %v3169_v44  ;;  %v1109_v15 = vld [vmem:[#allocation6 + $0xc8] sm:$0xff] }
 0x129   :  { %v322_v28 = vadd.f32 %v321_v26, %v320_v22  ;;  %v328_v29 = vrot.slane %v327_v27, 2  ;;  %v333_v40 = vmul.f32 0.0625, %v317_v34  ;;  %v1131_v34 = vld [vmem:[#allocation6 + $0x170] sm:$0xff] }
 0x12b   :  { %v329_v32 = vadd.f32 %v328_v29, %v327_v27  ;;  %v323_v33 = vrot.slane %v322_v28, 1 }
 0x12d   :  { %v330_v35 = vrot.slane %v329_v32, 1  ;;  %v324_v36 = vadd.f32 %v323_v33, %v322_v28 }
 0x12f   :  { %v331_v38 = vadd.f32 %v330_v35, %v329_v32  ;;  %v334_v39 = vmul.f32 0.0625, %v324_v36  ;;  %v1146_v35 = vld [vmem:[#allocation6 + $0x1e8] sm:$0xff] }
 0x130   :  { %v1130_v36 = vld [vmem:[#allocation6 + $0x168] sm:$0xff] }
 0x131   :  { %v335_v41 = vmul.f32 0.0625, %v331_v38  ;;  %v373_v46 = vsel %vm372_vm1, %v334_v39, %v332_v42  ;;  %v1115_v38 = vld [vmem:[#allocation6 + $0xf8] sm:$0xff]  ;;  %v1129_v39 = vld [vmem:[#allocation6 + $0x160] sm:$0xff] }
 0x132   :  { %2415 = vmatprep.subr.mxu1 %v1115_v38  ;;  %v1144_v42 = vld [vmem:[#allocation6 + $0x1d8] sm:$0xff]  ;;  %v3346_v38 = vstv %s3291_s25 }
 0x133   :  { %v374_v43 = vsel %vm372_vm1, %v335_v41, %v333_v40  ;;  %v1099_v40 = vld [vmem:[#allocation6 + $0x78] sm:$0xff]  ;;  %v1114_v41 = vld [vmem:[#allocation6 + $0xf0] sm:$0xff] }
 0x134   :  { %441 = vmatprep.mubr.f32.mxu1 %v374_v43  ;;  %v1098_v43 = vld [vmem:[#allocation6 + $0x70] sm:$0xff] }
 0x135   :  { %442 = vmatmul.mubr.f32.vlgmr.msra.gmra.mxu1 %v373_v46  ;;  %v1128_v46 = vld [vmem:[#allocation6 + $0x158] sm:$0xff] }
 0x136   :  { %2416 = vmatpush3.msra.mxu1 %v1099_v40  ;;  %v1121_v40 = vld [vmem:[#allocation6 + $0x120] sm:$0xff] }
 0x137   :  { %2417 = vmatprep.subr.mxu1 %v1114_v41  ;;  %v3351_v41 = vstv %s3293_s9 }
 0x138   :  { %2418 = vmatpush3.msra.mxu1 %v1098_v43 }
 0x1f5   :  { %v2368_v48 = vpop.f32.mrf.mxu1 }
 0x1f7   :  { %v2369_v49 = vpop.f32.mrf.mxu1 }
 0x1f8   :  { %v2370_v50 = vadd.f32 %v2369_v49, %v2368_v48  ;;  %v1113_v48 = vld [vmem:[#allocation6 + $0xe8] sm:$0xff] }
 0x1f9   :  { %v1097_v49 = vld [vmem:[#allocation6 + $0x68] sm:$0xff]  ;;  %2419 = vmatprep.subr.mxu1 %v1113_v48  ;;  %v1136_v48 = vld [vmem:[#allocation6 + $0x198] sm:$0xff] }
 0x1fa   :  { %v447_v51 = vmax.f32 %v2370_v50, 0.0  ;;  %v1143_v50 = vld [vmem:[#allocation6 + $0x1d0] sm:$0xff]  ;;  %2420 = vmatpush3.msra.mxu1 %v1097_v49  ;;  %v3361_v49 = vstv %s3297_s24 }
 0x1fc   :  { %2308 = vmatmul.mubr.msk.f32.vlgmr.msra.gmra.mxu0 %vm452_vm2, %v447_v51  ;;  %v1112_v51 = vld [vmem:[#allocation6 + $0xe0] sm:$0xff] }
 0x1fd   :  { %2421 = vmatprep.subr.mxu1 %v1112_v51  ;;  %v3367_v51 = vstv %s3302_s29 }
 0x2bc   :  { %v522_v53 = vpop.f32.mrf.mxu0 }
 0x2bd   :  { %v527_v56 = vsub.f32 0.0, %v522_v53  ;;  %v1127_v53 = vld [vmem:[#allocation6 + $0x150] sm:$0xff] }
 0x2be   :  { %v524_v60 = vpop.f32.mrf.mxu0 }
 0x2bf   :  { %v529_v62 = vmul.f32 1.442695, %v527_v56  ;;  %v528_v0 = vsub.f32 0.0, %v524_v60  ;;  %v1096_v56 = vld [vmem:[#allocation6 + $0x60] sm:$0xff]  ;;  %v1142_v60 = vld [vmem:[#allocation6 + $0x1c8] sm:$0xff] }
 0x2c0   :  { %2422 = vmatpush3.msra.mxu1 %v1096_v56  ;;  %v1120_v56 = vld [vmem:[#allocation6 + $0x118] sm:$0xff] }
 0x2c1   :  { %2763 = vpow2.f32 %v529_v62  ;;  %v531_v1 = vmul.f32 1.442695, %v528_v0  ;;  %v1111_v62 = vld [vmem:[#allocation6 + $0xd8] sm:$0xff]  ;;  %v1126_v0 = vld [vmem:[#allocation6 + $0x148] sm:$0xff] }
 0x2c2   :  { %2423 = vmatprep.subr.mxu1 %v1111_v62 }
 0x2c3   :  { %2765 = vpow2.f32 %v531_v1  ;;  %v1095_v1 = vld [vmem:[#allocation6 + $0x58] sm:$0xff] }
 0x2c4   :  { %2424 = vmatpush3.msra.mxu1 %v1095_v1  ;;  %v3372_v1 = vstv %s3304_s0 }
 0x2ce   :  { %v2764_v2 = vpop.eup %2763 }
 0x2cf   :  { %v533_v5 = vadd.f32 1.0, %v2764_v2  ;;  %v1141_v2 = vld [vmem:[#allocation6 + $0x1c0] sm:$0xff] }
 0x2d0   :  { %v2766_v6 = vpop.eup %2765 }
 0x2d1   :  { %v534_v9 = vadd.f32 1.0, %v2766_v6  ;;  %2767 = vrcp.f32 %v533_v5  ;;  %v1110_v5 = vld [vmem:[#allocation6 + $0xd0] sm:$0xff]  ;;  %v127_v6 = vadd.s32 24, %v3169_v44 }
 0x2d2   :  { %2425 = vmatprep.subr.mxu1 %v1110_v5  ;;  %v1135_v5 = vld [vmem:[#allocation6 + $0x190] sm:$0xff] }
 0x2d3   :  { %2769 = vrcp.f32 %v534_v9  ;;  %v1125_v9 = vld [vmem:[#allocation6 + $0x140] sm:$0xff]  ;;  %2426 = vmatpush3.msra.mxu1 %v1094_v10 }
 0x2d4   :  { %2427 = vmatprep.subr.mxu1 %v1109_v15  ;;  %v1119_v15 = vld [vmem:[#allocation6 + $0x110] sm:$0xff] }
 0x2de   :  { %v2768_v17 = vpop.eup %2767 }
 0x2e0   :  { %v2770_v20 = vpop.eup %2769 }
 0x2e1   :  { %v539_v21 = vcombine.low %v2768_v17, %v2770_v20  ;;  %v1124_v17 = vld [vmem:[#allocation6 + $0x138] sm:$0xff]  ;;  %v132_v20 = vand.u32 15, %v3169_v44 }
 0x2e3   :  { %v546_v22 = vrot.slane %v539_v21, %v545_v19  ;;  %v125_v21 = vadd.s32 8, %v3169_v44 }
 0x2e5   :  { %v554_v23 = vrot.slane %v546_v22, %v545_v19  ;;  %v547_v24 = vcombine.high %v546_v22, %v546_v22  ;;  %v1139_v22 = vld [vmem:[#allocation6 + $0x1b0] sm:$0xff] }
 0x2e7   :  { %v565_v25 = vrot.slane %v554_v23, %v3172_v45  ;;  %v569_v26 = vrot.slane %v554_v23, %v3178_v47  ;;  %v561_v27 = vrot.slane %v547_v24, %v545_v19  ;;  %v1093_v19 = vld [vmem:[#allocation6 + $0x48] sm:$0xff]  ;;  %v1108_v23 = vld [vmem:[#allocation6 + $0xc0] sm:$0xff]  ;;  %v3309_v24 = vstv %s3277_s4 }
 0x2e8   :  { %2428 = vmatpush3.msra.mxu1 %v1093_v19 }
 0x2e9   :  { %v3229_v28 = vmul.f32 %v565_v25, %v298_v58  ;;  %v3233_v29 = vmul.f32 %v569_v26, %v299_v63  ;;  %v3237_v30 = vmul.f32 %v565_v25, %v296_v57  ;;  %v3241_v31 = vmul.f32 %v569_v26, %v297_v61  ;;  %v1123_v26 = vld [vmem:[#allocation6 + $0x130] sm:$0xff]  ;;  %2429 = vmatprep.subr.mxu1 %v1108_v23 }
 0x2ea   :  { %v573_v32 = vrot.slane %v561_v27, %v3172_v45  ;;  %v577_v33 = vrot.slane %v561_v27, %v3178_v47  ;;  %v153_v25 = vand.u32 15, %v127_v6  ;;  %v1092_v27 = vld [vmem:[#allocation6 + $0x40] sm:$0xff] }
 0x2eb   :  { %4139 = vst [vmem:[#allocation21_spill] sm:$0xff] %v3229_v28  ;;  %4140 = vst [vmem:[#allocation22_spill] sm:$0xff] %v3233_v29  ;;  %v593_v55 = vadd.f32 %v3233_v29, %v3229_v28  ;;  %v590_v58 = vadd.f32 %v3241_v31, %v3237_v30  ;;  %v606_v54 = vmax.f32 %v3237_v30, %v3241_v31  ;;  %2430 = vmatpush3.msra.mxu1 %v1092_v27 }
 0x2ec   :  { %4141 = vst [vmem:[#allocation23_spill] sm:$0xff] %v3237_v30  ;;  %4142 = vst [vmem:[#allocation24_spill] sm:$0xff] %v3241_v31  ;;  %v3251_v59 = vmul.f32 %v573_v32, %v302_v13  ;;  %v3255_v52 = vmul.f32 %v577_v33, %v303_v18  ;;  %v3263_v61 = vmul.f32 %v573_v32, %v300_v12  ;;  %v1148_v12 = vld [vmem:[#allocation6 + $0x1f8] sm:$0xff]  ;;  %v1147_v18 = vld [vmem:[#allocation6 + $0x1f0] sm:$0xff]  ;;  %v3314_v32 = vstv %s3279_s26 }
 0x2ed   :  { %594 = vadd.xlane.f32.xlu1 %v593_v55  ;;  %591 = vadd.xlane.f32.xlu0 %v590_v58  ;;  %v3267_v63 = vmul.f32 %v577_v33, %v301_v16  ;;  %v609_v14 = vmax.f32 %v3229_v28, %v3233_v29  ;;  %v1132_v16 = vld [vmem:[#allocation6 + $0x178] sm:$0xff]  ;;  %v3318_v33 = vstv %s3281_s2  ;;  %v3321_v55 = vstv %s3283_s27  ;;  %v1138_v58 = vld [vmem:[#allocation6 + $0x1a8] sm:$0xff] }
 0x2ee   :  { %4143 = vst [vmem:[#allocation25_spill] sm:$0xff] %v3251_v59  ;;  %4144 = vst [vmem:[#allocation26_spill] sm:$0xff] %v3255_v52  ;;  %v599_v57 = vadd.f32 %v3255_v52, %v3251_v59  ;;  %v615_v8 = vmax.f32 %v3251_v59, %v3255_v52  ;;  %2371 = vmatprep.subr.mxu0 %v1148_v12  ;;  %v3335_v12 = vadd.s32 4294967293, %v132_v20  ;;  %v3356_v43 = vadd.s32 2, %v153_v25 }
 0x2ef   :  { %4145 = vst [vmem:[#allocation27_spill] sm:$0xff] %v3263_v61  ;;  %4146 = vst [vmem:[#allocation28_spill] sm:$0xff] %v3267_v63  ;;  %v596_v13 = vadd.f32 %v3267_v63, %v3263_v61  ;;  %v612_v4 = vmax.f32 %v3263_v61, %v3267_v63  ;;  %2372 = vmatpush3.msra.mxu0 %v1132_v16  ;;  %v3337_v16 = vadd.s32 4294967294, %v132_v20 }
 0x2f0   :  { %2373 = vmatprep.subr.mxu0 %v1147_v18  ;;  %v3339_v18 = vadd.s32 4294967295, %v132_v20  ;;  %vm632_vm8 = vcmp.ge.s32.totalorder %v3335_v12, 0  ;;  %vm805_vm12 = vcmp.le.s32.totalorder %v3356_v43, 15 }
 0x2f1   :  { %607 = vmax.xlane.f32.xlu1 %v606_v54  ;;  %600 = vadd.xlane.f32.xlu0 %v599_v57  ;;  %v3325_v54 = vstv %s3285_s21  ;;  %v3328_v57 = vstv %s3287_s22  ;;  %vm671_vm9 = vcmp.ge.s32.totalorder %v3337_v16, 0  ;;  %s2942_s22 = smov [#allocation13]  }
 0x2f2   :  { %2374 = vmatpush3.msra.mxu0 %v1131_v34  ;;  %4147 = vst [vmem:[#allocation29_spill] sm:$0xff] %v3339_v18  ;;  %v139_v34 = vand.u32 15, %v125_v21  ;;  %vm710_vm10 = vcmp.ge.s32.totalorder %v3339_v18, 0 }
 0x2f3   :  { %2375 = vmatprep.subr.mxu0 %v1146_v35  ;;  %v1137_v35 = vld [vmem:[#allocation6 + $0x1a0] sm:$0xff] }
 0x2f4   :  { %2376 = vmatpush3.msra.mxu0 %v1130_v36  ;;  %v3385_v20 = vadd.s32 2, %v139_v34  ;;  %v3387_v21 = vadd.s32 3, %v139_v34 }
 0x2f5   :  { %616 = vmax.xlane.f32.xlu0 %v615_v8  ;;  %597 = vadd.xlane.f32.xlu1 %v596_v13  ;;  %v3331_v8 = vstv %s3289_s23  ;;  %v126_v13 = vadd.s32 16, %v3169_v44  ;;  %v1866_v44 = vld [vmem:[%s4102_s7 + $0xe0] sm:$0xff]  ;;  %s2292_s23 = sshll.u32 %s2942_s22, 4  ;;  %s2293_s23 = int_to_ptr.vmem [resolvable:$true] %s2292_s23 }
 0x2f6   :  { %2377 = vmatprep.subr.mxu0 %v1145_v37  ;;  %vm803_vm0 = vcmp.le.s32.totalorder %v3385_v20, 15  ;;  %vm842_vm2 = vcmp.le.s32.totalorder %v3387_v21, 15  ;;  %s2899_s25 = scalar_lea.vmem %s2293_s23, 32  ;;  %p2904_p3 = scmp.lt.s32.totalorder %s2293_s23, %s2293_s23 }
 0x2f7   :  { %2378 = vmatpush3.msra.mxu0 %v1129_v39  ;;  %v3348_v39 = vadd.s32 1, %v153_v25  ;;  %p2900_p2 = scmp.ne.s32.totalorder %s2293_s23, %s2899_s25  ;;  %p2905_p4 = scmp.lt.s32.totalorder %s2899_s25, %s2899_s25 }
 0x2f8   :  { %2379 = vmatprep.subr.mxu0 %v1144_v42  ;;  %v3354_v42 = vstv %s3295_s1 }
 0x2f9   :  { %610 = vmax.xlane.f32.xlu0 %v609_v14  ;;  %613 = vmax.xlane.f32.xlu1 %v612_v4  ;;  %v1122_v14 = vld [vmem:[#allocation6 + $0x128] sm:$0xff]  ;;  %vm766_vm15 = vcmp.le.s32.totalorder %v3348_v39, 15  ;;  %v1865_v39 = vld [vmem:[%s4102_s7 + $0xd8] sm:$0xff]  ;;  %p2906_p5 = por %p2905_p4, %p2904_p3 }
 0x2fa   :  { %2380 = vmatpush3.msra.mxu0 %v1128_v46  ;;  %v3358_v46 = vadd.s32 3, %v153_v25 }
 0x2fb   :  { %2381 = vmatprep.subr.mxu0 %v1143_v50  ;;  %v3364_v50 = vstv %s3300_s28  ;;  %p2907_p6 = pnand %p2906_p5, %p2900_p2 }
 0x2fc   :  { %2382 = vmatpush3.msra.mxu0 %v1127_v53  ;;  %v146_v53 = vand.u32 15, %v126_v13  ;;  %vm844_vm13 = vcmp.le.s32.totalorder %v3358_v46, 15 }
 0x2fd   :  { %2383 = vmatprep.subr.mxu0 %v1142_v60 }
 0x2fe   :  { %2384 = vmatpush3.msra.mxu0 %v1126_v0  ;;  %v3395_v27 = vadd.s32 4294967294, %v146_v53 }
 0x2ff   :  { %2385 = vmatprep.subr.mxu0 %v1141_v2  ;;  %v3375_v2 = vadd.s32 1, %v139_v34 }
 0x300   :  { %2386 = vmatpush3.msra.mxu0 %v1125_v9 }
 0x301   :  { %2387 = vmatprep.subr.mxu0 %v1140_v11  ;;  %vm764_vm14 = vcmp.le.s32.totalorder %v3375_v2, 15  ;;  %v1867_v2 = vld [vmem:[%s4102_s7 + $0xe8] sm:$0xff] }
 0x302   :  { %2388 = vmatpush3.msra.mxu0 %v1124_v17 }
 0x303   :  { %2389 = vmatprep.subr.mxu0 %v1139_v22 }
 0x304   :  { %2390 = vmatpush3.msra.mxu0 %v1123_v26  ;;  %v3393_v26 = vadd.s32 4294967293, %v146_v53 }
 0x305   :  { %2391 = vmatprep.subr.mxu0 %v1138_v58 }
 0x306   :  { %2392 = vmatpush3.msra.mxu0 %v1122_v14 }
 0x307   :  { %2393 = vmatprep.subr.mxu0 %v1137_v35 }
 0x308   :  { %2394 = vmatpush3.msra.mxu0 %v1121_v40 }
 0x309   :  { %2395 = vmatprep.subr.mxu0 %v1136_v48 }
 0x30a   :  { %2396 = vmatpush3.msra.mxu0 %v1120_v56 }
 0x30b   :  { %2397 = vmatprep.subr.mxu0 %v1135_v5 }
 0x30c   :  { %2398 = vmatpush3.msra.mxu0 %v1119_v15 }
 0x376   :  { %v595_v4 = vpop.xlane.xlu1 %594  ;;  %v592_v7 = vpop.xlane.xlu0 %591 }
 0x377   :  { %v3341_v36 = vmul.f32 0.0052083335, %v595_v4  ;;  %v3343_v37 = vmul.f32 0.0052083335, %v592_v7  ;;  %v3412_v4 = vadd.s32 4294967295, %v146_v53 }
 0x379   :  { %v4111_v60 = vrot.slane %v3341_v36, 7  ;;  %v4113_v62 = vrot.slane %v3341_v36, 1  ;;  %v4110_v6 = vrot.slane %v3341_v36, 5  ;;  %v619_v9 = vrot.slane %v3343_v37, 5 }
 0x37a   :  { %v601_v0 = vpop.xlane.xlu0 %600  ;;  %v697_v10 = vrot.slane %v3343_v37, 7  ;;  %v4114_v11 = vrot.slane %v3343_v37, 1  ;;  %v4112_v17 = vrot.slane %v3341_v36, 6  ;;  %v658_v19 = vrot.slane %v3343_v37, 6  ;;  %v3391_v25 = vpop.xlane.xlu1 %607 }
 0x37b   :  { %v4115_v22 = vrot.slane %v3341_v36, 2  ;;  %v785_v23 = vrot.slane %v3343_v37, 2  ;;  %v3399_v58 = vmul.f32 %v3309_v24, %v3341_v36  ;;  %v626_v34 = vsel %vm623_vm4, %v619_v9, %v4110_v6 }
 0x37c   :  { %v704_v13 = vsel %vm701_vm3, %v697_v10, %v4111_v60  ;;  %v753_v14 = vsel %vm750_vm5, %v4114_v11, %v4113_v62  ;;  %v3421_v35 = vmul.f32 %v3309_v24, %v3343_v37  ;;  %v824_v40 = vrot.slane %v3343_v37, 3 }
 0x37d   :  { %v665_v48 = vsel %vm662_vm6, %v658_v19, %v4112_v17  ;;  %v3432_v5 = vmul.f32 0.0052083335, %v601_v0  ;;  %v3437_v3 = vmul.f32 %v3314_v32, %v704_v13  ;;  %v776_v6 = vmul.f32 %v3318_v33, %v753_v14 }
 0x37e   :  { %v3434_v15 = vpop.xlane.xlu0 %616  ;;  %v792_v60 = vsel %vm789_vm7, %v785_v23, %v4115_v22  ;;  %v3447_v62 = vmul.f32 %v3321_v55, %v3391_v25  ;;  %v650_v47 = vmul.f32 %v3325_v54, %v626_v34  ;;  %v4152_v14 = vrot.slane %v3391_v25, 6  ;;  %v598_v61 = vpop.xlane.xlu1 %597 }
 0x37f   :  { %v4119_v0 = vrot.slane %v3432_v5, 5  ;;  %v4120_v11 = vrot.slane %v3432_v5, 6  ;;  %v4118_v13 = vrot.slane %v3432_v5, 7  ;;  %v4148_v56 = vrot.slane %v3432_v5, 2 }
 0x380   :  { %v4149_v22 = vrot.slane %v3432_v5, 3  ;;  %v4128_v45 = vrot.slane %v3432_v5, 1  ;;  %v4156_v52 = vrot.slane %v3341_v36, 3  ;;  %v4157_v12 = vrot.slane %v3343_v37, 1 }
 0x381   :  { %v705_v17 = vsel %vm701_vm3, %v4118_v13, %v697_v10  ;;  %v627_v53 = vsel %vm623_vm4, %v4119_v0, %v619_v9  ;;  %v666_v7 = vsel %vm662_vm6, %v4120_v11, %v658_v19  ;;  %v689_v13 = vmul.f32 %v3328_v57, %v665_v48 }
 0x382   :  { %v644_v10 = vsel %vm632_vm8, %v627_v53, 0.0  ;;  %v683_v0 = vsel %vm671_vm9, %v666_v7, 0.0  ;;  %v722_v19 = vsel %vm710_vm10, %v705_v17, 0.0  ;;  %v793_v34 = vsel %vm789_vm7, %v4148_v56, %v785_v23 }
 0x383   :  { %v649_v9 = vmul.f32 %v3325_v54, %v644_v10  ;;  %v832_v48 = vsel %vm828_vm11, %v4149_v22, %v824_v40  ;;  %v688_v53 = vmul.f32 %v3328_v57, %v683_v0  ;;  %v815_v10 = vmul.f32 %v3331_v8, %v792_v60 }
 0x384   :  { %v4150_v7 = vrot.slane %v3391_v25, 5  ;;  %v4151_v17 = vrot.slane %v3434_v15, 5  ;;  %v4153_v23 = vrot.slane %v3434_v15, 6  ;;  %v4154_v22 = vrot.slane %v3391_v25, 7 }
 0x385   :  { %v4155_v0 = vrot.slane %v3434_v15, 7  ;;  %v727_v59 = vmul.f32 %v3314_v32, %v722_v19  ;;  %v813_v63 = vsel %vm805_vm12, %v793_v34, 0.0  ;;  %v4129_v19 = vrot.slane %v3434_v15, 2 }
 0x386   :  { %v870_v11 = vsel %vm623_vm4, %v4151_v17, %v4150_v7  ;;  %v892_v56 = vsel %vm662_vm6, %v4153_v23, %v4152_v14  ;;  %v831_v7 = vsel %vm828_vm11, %v824_v40, %v4156_v52  ;;  %v692_v17 = vadd.f32 %v688_v53, %v649_v9 }
 0x387   :  { %v914_v60 = vsel %vm701_vm3, %v4155_v0, %v4154_v22  ;;  %v3517_v14 = vmul.f32 %v3309_v24, %v3432_v5  ;;  %v693_v23 = vadd.f32 %v689_v13, %v650_v47  ;;  %v852_v22 = vsel %vm844_vm13, %v832_v48, 0.0 }
 0x388   :  { %v731_v0 = vadd.f32 %v727_v59, %v692_v17  ;;  %v871_v52 = vsel %vm632_vm8, %v870_v11, 0.0  ;;  %v893_v40 = vsel %vm671_vm9, %v892_v56, 0.0  ;;  %v915_v47 = vsel %vm710_vm10, %v914_v60, 0.0  ;;  %v3563_v17 = vpop.xlane.xlu0 %610 }
 0x389   :  { %v854_v13 = vmul.f32 %v3346_v38, %v831_v7  ;;  %v4127_v9 = vrot.slane %v3434_v15, 1  ;;  %v3535_v59 = vmul.f32 0.0052083335, %v598_v61  ;;  %v3544_v16 = vsel %vm750_vm5, %v4128_v45, %v4157_v12 }
 0x38a   :  { %v741_v11 = vadd.f32 %v3421_v35, %v731_v0  ;;  %v3548_v34 = vmul.f32 %v3331_v8, %v813_v63  ;;  %v3551_v48 = vmul.f32 %v3346_v38, %v852_v22  ;;  %v876_v61 = vmul.f32 %v3351_v41, %v871_v52 }
 0x38b   :  { %v898_v53 = vmul.f32 %v3354_v42, %v893_v40  ;;  %v920_v37 = vmul.f32 %v3361_v49, %v915_v47  ;;  %v621_v56 = vrot.slane %v3535_v59, 5  ;;  %v3559_v7 = vmul.f32 %v3321_v55, %v3434_v15 }
 0x38c   :  { %v780_v60 = vadd.f32 %v776_v6, %v741_v11  ;;  %v732_v63 = vadd.f32 %v3437_v3, %v693_v23  ;;  %v4158_v22 = vrot.slane %v3391_v25, 1  ;;  %v4159_v52 = vrot.slane %v3391_v25, 2 }
 0x38d   :  { %v4160_v40 = vrot.slane %v3432_v5, 5  ;;  %v660_v23 = vrot.slane %v3535_v59, 6  ;;  %v699_v12 = vrot.slane %v3535_v59, 7  ;;  %v748_v11 = vrot.slane %v3535_v59, 1 }
 0x38e   :  { %v946_v0 = vsel %vm750_vm5, %v4127_v9, %v4158_v22  ;;  %v968_v6 = vsel %vm789_vm7, %v4129_v19, %v4159_v52  ;;  %v819_v47 = vadd.f32 %v815_v10, %v780_v60  ;;  %v787_v22 = vrot.slane %v3535_v59, 2 }
 0x38f   :  { %v624_v3 = vsel %vm623_vm4, %v621_v56, %v4160_v40  ;;  %v4161_v9 = vrot.slane %v3432_v5, 6  ;;  %v826_v52 = vrot.slane %v3535_v59, 3  ;;  %v4162_v10 = vrot.slane %v3391_v25, 3 }
 0x390   :  { %v858_v35 = vadd.f32 %v854_v13, %v819_v47  ;;  %v4163_v60 = vrot.slane %v3434_v15, 3  ;;  %v652_v28 = vmul.f32 %v3325_v54, %v624_v3  ;;  %v3608_v40 = vsel %vm805_vm12, %v968_v6, 0.0 }
 0x391   :  { %v663_v45 = vsel %vm662_vm6, %v660_v23, %v4161_v9  ;;  %v3604_v9 = vsel %vm766_vm15, %v946_v0, 0.0  ;;  %v4164_v13 = vrot.slane %v3341_v36, 1  ;;  %vm634_vm8 = vcmp.ge.s32.totalorder %v3393_v26, 0 }
 0x392   :  { %v3598_v18 = vsel %vm828_vm11, %v4163_v60, %v4162_v10  ;;  %v691_v29 = vmul.f32 %v3328_v57, %v663_v45  ;;  %v4165_v10 = vrot.slane %v3341_v36, 2  ;;  %vm673_vm9 = vcmp.ge.s32.totalorder %v3395_v27, 0 }
 0x393   :  { %v752_v47 = vsel %vm750_vm5, %v4164_v13, %v748_v11  ;;  %v880_v45 = vadd.f32 %v876_v61, %v858_v35  ;;  %v4166_v0 = vrot.slane %v3432_v5, 7  ;;  %v3626_v6 = vmul.f32 %v3309_v24, %v3535_v59 }
 0x394   :  { %v791_v3 = vsel %vm789_vm7, %v4165_v10, %v787_v22  ;;  %v772_v60 = vsel %vm764_vm14, %v752_v47, 0.0  ;;  %vm712_vm12 = vcmp.ge.s32.totalorder %v3412_v4, 0  ;;  %v742_v13 = vadd.f32 %v3399_v58, %v732_v63  ;;  %v1713_v4 = vld [vmem:[#allocation7 + $0x118] sm:$0xff] }
 0x395   :  { %v702_v43 = vsel %vm701_vm3, %v699_v12, %v4166_v0  ;;  %v777_v10 = vmul.f32 %v3318_v33, %v772_v60  ;;  %v811_v61 = vsel %vm803_vm0, %v791_v3, 0.0  ;;  %v4167_v35 = vrot.slane %v3341_v36, 3 }
 0x396   :  { %v902_v0 = vadd.f32 %v898_v53, %v880_v45  ;;  %v695_v19 = vadd.f32 %v691_v29, %v652_v28  ;;  %v4168_v47 = vrot.slane %v3341_v36, 7  ;;  %v730_v63 = vmul.f32 %v3314_v32, %v702_v43 }
 0x397   :  { %v830_v24 = vsel %vm828_vm11, %v4167_v35, %v826_v52  ;;  %v4169_v3 = vrot.slane %v3432_v5, 1  ;;  %v781_v30 = vadd.f32 %v777_v10, %v742_v13  ;;  %v816_v35 = vmul.f32 %v3331_v8, %v811_v61 }
 0x398   :  { %v703_v31 = vsel %vm701_vm3, %v4168_v47, %v699_v12  ;;  %v850_v58 = vsel %vm842_vm2, %v830_v24, 0.0  ;;  %v924_v53 = vadd.f32 %v920_v37, %v902_v0  ;;  %v4170_v29 = vrot.slane %v3563_v17, 5 }
 0x399   :  { %v751_v60 = vsel %vm750_vm5, %v748_v11, %v4169_v3  ;;  %v855_v28 = vmul.f32 %v3346_v38, %v850_v58  ;;  %v4171_v12 = vrot.slane %v3391_v25, 5  ;;  %v908_v43 = vrot.slane %v3563_v17, 7 }
 0x39a   :  { %v820_v24 = vadd.f32 %v816_v35, %v781_v30  ;;  %v940_v47 = vrot.slane %v3563_v17, 1  ;;  %v962_v11 = vrot.slane %v3563_v17, 2  ;;  %v4136_v13 = vrot.slane %v3563_v17, 3 }
 0x39b   :  { %v869_v45 = vsel %vm623_vm4, %v4171_v12, %v4170_v29  ;;  %v734_v10 = vadd.f32 %v730_v63, %v695_v19  ;;  %v4172_v37 = vrot.slane %v3563_v17, 6  ;;  %v4173_v61 = vrot.slane %v3391_v25, 6 }
 0x39c   :  { %v934_v58 = vadd.f32 %v3447_v62, %v924_v53  ;;  %v4174_v3 = vrot.slane %v3341_v36, 5  ;;  %v859_v35 = vadd.f32 %v855_v28, %v820_v24  ;;  %v4175_v29 = vrot.slane %v3391_v25, 1 }
 0x39d   :  { %v891_v0 = vsel %vm662_vm6, %v4173_v61, %v4172_v37  ;;  %v4176_v63 = vrot.slane %v3391_v25, 2  ;;  %v4177_v53 = vrot.slane %v3341_v36, 6  ;;  %v778_v28 = vmul.f32 %v3318_v33, %v751_v60 }
 0x39e   :  { %v625_v30 = vsel %vm623_vm4, %v4174_v3, %v621_v56  ;;  %v945_v19 = vsel %vm750_vm5, %v4175_v29, %v940_v47  ;;  %v4178_v12 = vrot.slane %v3432_v5, 2  ;;  %v877_v37 = vmul.f32 %v3351_v41, %v869_v45 }
 0x39f   :  { %v967_v62 = vsel %vm789_vm7, %v4176_v63, %v962_v11  ;;  %v664_v56 = vsel %vm662_vm6, %v4177_v53, %v660_v23  ;;  %v952_v61 = vmul.f32 %v3364_v50, %v945_v19  ;;  %v899_v3 = vmul.f32 %v3354_v42, %v891_v0  ;;  %v3710_v63 = vpop.xlane.xlu1 %613 }
 0x3a0   :  { %v790_v24 = vsel %vm789_vm7, %v787_v22, %v4178_v12  ;;  %v4179_v29 = vrot.slane %v3391_v25, 7  ;;  %v974_v23 = vmul.f32 %v3367_v51, %v967_v62  ;;  %v4180_v60 = vrot.slane %v3391_v25, 3 }
 0x3a1   :  { %v881_v45 = vadd.f32 %v877_v37, %v859_v35  ;;  %v956_v19 = vadd.f32 %v952_v61, %v934_v58  ;;  %v646_v0 = vsel %vm634_vm8, %v625_v30, 0.0  ;;  %v685_v53 = vsel %vm673_vm9, %v664_v56, 0.0 }
 0x3a2   :  { %v913_v36 = vsel %vm701_vm3, %v4179_v29, %v908_v43  ;;  %v989_v22 = vsel %vm828_vm11, %v4180_v60, %v4136_v13  ;;  %v744_v12 = vadd.f32 %v3517_v14, %v734_v10  ;;  %v651_v62 = vmul.f32 %v3325_v54, %v646_v0 }
 0x3a3   :  { %v690_v29 = vmul.f32 %v3328_v57, %v685_v53  ;;  %v724_v25 = vsel %vm712_vm12, %v703_v31, 0.0  ;;  %v978_v60 = vadd.f32 %v974_v23, %v956_v19  ;;  %v996_v13 = vmul.f32 %v3372_v1, %v989_v22 }
 0x3a4   :  { %v774_v58 = vsel %vm766_vm15, %v3544_v16, 0.0  ;;  %v865_v30 = vrot.slane %v3710_v63, 5  ;;  %v729_v56 = vmul.f32 %v3314_v32, %v724_v25  ;;  %v887_v54 = vrot.slane %v3710_v63, 6 }
 0x3a5   :  { %v694_v35 = vadd.f32 %v690_v29, %v651_v62  ;;  %v779_v14 = vmul.f32 %v3318_v33, %v774_v58  ;;  %v903_v57 = vadd.f32 %v899_v3, %v881_v45  ;;  %v931_v31 = vmul.f32 %v3321_v55, %v3563_v17 }
 0x3a6   :  { %v1000_v10 = vadd.f32 %v996_v13, %v978_v60  ;;  %v4181_v37 = vrot.slane %v3432_v5, 3  ;;  %v4182_v32 = vrot.slane %v3563_v17, 5  ;;  %v909_v3 = vrot.slane %v3710_v63, 7 }
 0x3a7   :  { %v733_v61 = vadd.f32 %v729_v56, %v694_v35  ;;  %v783_v23 = vadd.f32 %v779_v14, %v744_v12  ;;  %v921_v22 = vmul.f32 %v3361_v49, %v913_v36  ;;  %v817_v13 = vmul.f32 %v3331_v8, %v790_v24 }
 0x3a8   :  { %v829_v16 = vsel %vm828_vm11, %v826_v52, %v4181_v37  ;;  %v868_v33 = vsel %vm623_vm4, %v4182_v32, %v865_v30  ;;  %v1004_v45 = vsub.f32 0.0, %v1000_v10  ;;  %v4183_v5 = vrot.slane %v3434_v15, 5 }
 0x3a9   :  { %v743_v52 = vadd.f32 %v3626_v6, %v733_v61  ;;  %v822_v19 = vadd.f32 %v3548_v34, %v783_v23  ;;  %v4184_v0 = vrot.slane %v3434_v15, 6  ;;  %v4185_v12 = vrot.slane %v3563_v17, 6 }
 0x3aa   :  { %v867_v59 = vsel %vm623_vm4, %v865_v30, %v4183_v5  ;;  %v925_v8 = vadd.f32 %v921_v22, %v903_v57  ;;  %v1008_v24 = vmul.f32 1.442695, %v1004_v45  ;;  %v856_v62 = vmul.f32 %v3346_v38, %v829_v16 }
 0x3ab   :  { %v889_v53 = vsel %vm662_vm6, %v887_v54, %v4184_v0  ;;  %v890_v36 = vsel %vm662_vm6, %v4185_v12, %v887_v54  ;;  %v873_v29 = vsel %vm634_vm8, %v868_v33, 0.0  ;;  %v782_v6 = vadd.f32 %v778_v28, %v743_v52 }
 0x3ac   :  { %v861_v34 = vadd.f32 %v3551_v48, %v822_v19  ;;  %v879_v25 = vmul.f32 %v3351_v41, %v867_v59  ;;  %v912_v60 = vsel %vm701_vm3, %v908_v43, %v909_v3  ;;  %2771 = vpow2.f32 %v1008_v24 }
 0x3ad   :  { %v895_v58 = vsel %vm673_vm9, %v890_v36, 0.0  ;;  %v901_v30 = vmul.f32 %v3354_v42, %v889_v53  ;;  %v4186_v35 = vrot.slane %v3434_v15, 7  ;;  %v821_v26 = vadd.f32 %v817_v13, %v782_v6 }
 0x3ae   :  { %v883_v28 = vadd.f32 %v879_v25, %v861_v34  ;;  %v941_v48 = vrot.slane %v3710_v63, 1  ;;  %v963_v56 = vrot.slane %v3710_v63, 2  ;;  %v935_v14 = vadd.f32 %v931_v31, %v925_v8 }
 0x3af   :  { %v911_v38 = vsel %vm701_vm3, %v909_v3, %v4186_v35  ;;  %v878_v43 = vmul.f32 %v3351_v41, %v873_v29  ;;  %v917_v27 = vsel %vm712_vm12, %v912_v60, 0.0  ;;  %v985_v54 = vrot.slane %v3710_v63, 3 }
 0x3b0   :  { %v860_v57 = vadd.f32 %v856_v62, %v821_v26  ;;  %v905_v10 = vadd.f32 %v901_v30, %v883_v28  ;;  %v923_v37 = vmul.f32 %v3361_v49, %v911_v38  ;;  %v944_v16 = vsel %vm750_vm5, %v940_v47, %v941_v48 }
 0x3b1   :  { %v994_v31 = vsel %vm844_vm13, %v3598_v18, 0.0  ;;  %v900_v41 = vmul.f32 %v3354_v42, %v895_v58  ;;  %v948_v61 = vsel %vm764_vm14, %v944_v16, 0.0  ;;  %v966_v23 = vsel %vm789_vm7, %v962_v11, %v963_v56  ;;  %v1091_v16 = vld [vmem:[#allocation6 + $0x38] sm:$0xff] }
 0x3b2   :  { %v882_v32 = vadd.f32 %v878_v43, %v860_v57  ;;  %v927_v33 = vadd.f32 %v923_v37, %v905_v10  ;;  %v953_v3 = vmul.f32 %v3364_v50, %v948_v61  ;;  %v970_v47 = vsel %vm803_vm0, %v966_v23, 0.0  ;;  %v1107_v57 = vld [vmem:[#allocation6 + $0xb8] sm:$0xff]  ;;  %v1118_v10 = vld [vmem:[#allocation6 + $0x108] sm:$0xff]  ;;  %v1117_v61 = vld [vmem:[#allocation6 + $0x100] sm:$0xff] }
 0x3b3   :  { %v955_v18 = vmul.f32 %v3364_v50, %v3604_v9  ;;  %v922_v42 = vmul.f32 %v3361_v49, %v917_v27  ;;  %v975_v46 = vmul.f32 %v3367_v51, %v970_v47  ;;  %v4187_v22 = vrot.slane %v3563_v17, 3  ;;  %2431 = vmatprep.subr.mxu1 %v1107_v57  ;;  %v1090_v23 = vld [vmem:[#allocation6 + $0x30] sm:$0xff]  ;;  %v1104_v47 = vld [vmem:[#allocation6 + $0xa0] sm:$0xff] }
 0x3b4   :  { %v904_v11 = vadd.f32 %v900_v41, %v882_v32  ;;  %v937_v13 = vadd.f32 %v3559_v7, %v927_v33  ;;  %v957_v5 = vadd.f32 %v953_v3, %v935_v14  ;;  %v977_v59 = vmul.f32 %v3367_v51, %v3608_v40  ;;  %v1106_v41 = vld [vmem:[#allocation6 + $0xb0] sm:$0xff]  ;;  %2432 = vmatpush3.msra.mxu1 %v1091_v16  ;;  %v1105_v32 = vld [vmem:[#allocation6 + $0xa8] sm:$0xff]  ;;  %v1383_v33 = vld [vmem:[#allocation6 + $0x2f8] sm:$0xff] }
 0x3b5   :  { %v988_v45 = vsel %vm828_vm11, %v4187_v22, %v985_v54  ;;  %v932_v49 = vmul.f32 %v3321_v55, %v3710_v63  ;;  %v4188_v9 = vrot.slane %v3434_v15, 1  ;;  %v999_v53 = vmul.f32 %v3372_v1, %v994_v31  ;;  %v1133_v31 = vld [vmem:[#allocation6 + $0x180] sm:$0xff]  ;;  %2433 = vmatprep.subr.mxu1 %v1106_v41  ;;  %v1089_v3 = vld [vmem:[#allocation6 + $0x28] sm:$0xff]  ;;  %v1087_v22 = vld [vmem:[#allocation6 + $0x18] sm:$0xff] }
 0x3b6   :  { %v992_v20 = vsel %vm842_vm2, %v988_v45, 0.0  ;;  %v926_v52 = vadd.f32 %v922_v42, %v904_v11  ;;  %v959_v19 = vadd.f32 %v955_v18, %v937_v13  ;;  %v979_v0 = vadd.f32 %v975_v46, %v957_v5  ;;  %2434 = vmatpush3.msra.mxu1 %v1090_v23  ;;  %v1088_v18 = vld [vmem:[#allocation6 + $0x20] sm:$0xff]  ;;  %v1103_v46 = vld [vmem:[#allocation6 + $0x98] sm:$0xff]  ;;  %v1102_v45 = vld [vmem:[#allocation6 + $0x90] sm:$0xff] }
 0x3b7   :  { %v943_v17 = vsel %vm750_vm5, %v941_v48, %v4188_v9  ;;  %v997_v7 = vmul.f32 %v3372_v1, %v992_v20  ;;  %v4189_v21 = vrot.slane %v3434_v15, 2  ;;  %v4190_v8 = vrot.slane %v3434_v15, 3  ;;  %2435 = vmatprep.subr.mxu1 %v1105_v32  ;;  %v1086_v11 = vld [vmem:[#allocation6 + $0x10] sm:$0xff]  ;;  %v1101_v5 = vld [vmem:[#allocation6 + $0x88] sm:$0xff]  ;;  %v1356_v57 = vld [vmem:[#allocation6 + $0x220] sm:$0xff] }
 0x3b8   :  { %v936_v12 = vadd.f32 %v932_v49, %v926_v52  ;;  %v954_v55 = vmul.f32 %v3364_v50, %v943_v17  ;;  %v981_v63 = vadd.f32 %v977_v59, %v959_v19  ;;  %2436 = vmatpush3.msra.mxu1 %v1089_v3  ;;  %v1085_v20 = vld [vmem:[#allocation6 + $0x8] sm:$0xff]  ;;  %v1100_v59 = vld [vmem:[#allocation6 + $0x80] sm:$0xff]  ;;  %v4197_v41 = vld [vmem:[#allocation25_spill] sm:$0xff] }
 0x3b9   :  { %v965_v40 = vsel %vm789_vm7, %v963_v56, %v4189_v21  ;;  %v1001_v36 = vadd.f32 %v997_v7, %v979_v0  ;;  %v987_v24 = vsel %vm828_vm11, %v985_v54, %v4190_v8  ;;  %v2772_v62 = vpop.eup %2771  ;;  %v1134_v54 = vld [vmem:[#allocation6 + $0x188] sm:$0xff]  ;;  %2437 = vmatprep.subr.mxu1 %v1104_v47  ;;  %v1084_v49 = vld [vmem:[#allocation6] sm:$0xff]  ;;  %v1367_v7 = vld [vmem:[#allocation6 + $0x278] sm:$0xff] }
 0x3ba   :  { %v958_v29 = vadd.f32 %v954_v55, %v936_v12  ;;  %v976_v6 = vmul.f32 %v3367_v51, %v965_v40  ;;  %v1003_v34 = vadd.f32 %v999_v53, %v981_v63  ;;  %v1016_v60 = vadd.f32 1.0, %v2772_v62  ;;  %2399 = vmatprep.subr.mxu0 %v1134_v54  ;;  %2438 = vmatpush3.msra.mxu1 %v1088_v18  ;;  %v4191_v17 = vld [vmem:[#allocation23_spill] sm:$0xff]  ;;  %v4192_v19 = vld [vmem:[#allocation24_spill] sm:$0xff]  ;;  %v1363_v8 = vld [vmem:[#allocation6 + $0x258] sm:$0xff] }
 0x3bb   :  { %v1005_v25 = vsub.f32 0.0, %v1001_v36  ;;  %v998_v30 = vmul.f32 %v3372_v1, %v987_v24  ;;  %2400 = vmatpush3.msra.mxu0 %v1118_v10  ;;  %2439 = vmatprep.subr.mxu1 %v1103_v46  ;;  %v1382_v53 = vld [vmem:[#allocation6 + $0x2f0] sm:$0xff]  ;;  %v1381_v40 = vld [vmem:[#allocation6 + $0x2e8] sm:$0xff]  ;;  %v1380_v55 = vld [vmem:[#allocation6 + $0x2e0] sm:$0xff] }
 0x3bc   :  { %v980_v58 = vadd.f32 %v976_v6, %v958_v29  ;;  %v1007_v35 = vsub.f32 0.0, %v1003_v34  ;;  %2773 = vrcp.f32 %v1016_v60  ;;  %2401 = vmatprep.subr.mxu0 %v1133_v31  ;;  %2440 = vmatpush3.msra.mxu1 %v1087_v22  ;;  %v1366_v21 = vld [vmem:[#allocation6 + $0x270] sm:$0xff]  ;;  %v1365_v12 = vld [vmem:[#allocation6 + $0x268] sm:$0xff]  ;;  %v1364_v63 = vld [vmem:[#allocation6 + $0x260] sm:$0xff] }
 0x3bd   :  { %v1010_v38 = vmul.f32 1.442695, %v1005_v25  ;;  %2402 = vmatpush3.msra.mxu0 %v1117_v61  ;;  %2441 = vmatprep.subr.mxu1 %v1102_v45  ;;  %v1379_v36 = vld [vmem:[#allocation6 + $0x2d8] sm:$0xff]  ;;  %v1378_v24 = vld [vmem:[#allocation6 + $0x2d0] sm:$0xff]  ;;  %v1377_v29 = vld [vmem:[#allocation6 + $0x2c8] sm:$0xff] }
 0x3be   :  { %v1002_v50 = vadd.f32 %v998_v30, %v980_v58  ;;  %v1014_v26 = vmul.f32 1.442695, %v1007_v35  ;;  %2459 = vmatprep.subr.mxu0 %v1383_v33  ;;  %2442 = vmatpush3.msra.mxu1 %v1086_v11  ;;  %v1362_v62 = vld [vmem:[#allocation6 + $0x250] sm:$0xff]  ;;  %v1361_v6 = vld [vmem:[#allocation6 + $0x248] sm:$0xff]  ;;  %v1376_v34 = vld [vmem:[#allocation6 + $0x2c0] sm:$0xff] }
 0x3bf   :  { %2775 = vpow2.f32 %v1010_v38  ;;  %2443 = vmatprep.subr.mxu1 %v1101_v5  ;;  %v1360_v25 = vld [vmem:[#allocation6 + $0x240] sm:$0xff]  ;;  %v1375_v58 = vld [vmem:[#allocation6 + $0x2b8] sm:$0xff]  ;;  %v1370_v33 = vld [vmem:[#allocation6 + $0x290] sm:$0xff] }
 0x3c0   :  { %v1006_v15 = vsub.f32 0.0, %v1002_v50  ;;  %2777 = vpow2.f32 %v1014_v26  ;;  %2444 = vmatpush3.msra.mxu1 %v1085_v20  ;;  %v4193_v30 = vld [vmem:[#allocation22_spill] sm:$0xff]  ;;  %v4194_v38 = vld [vmem:[#allocation21_spill] sm:$0xff]  ;;  %v1369_v11 = vld [vmem:[#allocation6 + $0x288] sm:$0xff] }
 0x3c1   :  { %2445 = vmatprep.subr.mxu1 %v1100_v59  ;;  %v1359_v26 = vld [vmem:[#allocation6 + $0x238] sm:$0xff]  ;;  %v1354_v22 = vld [vmem:[#allocation6 + $0x210] sm:$0xff]  ;;  %v1353_v59 = vld [vmem:[#allocation6 + $0x208] sm:$0xff] }
 0x3c2   :  { %v1012_v28 = vmul.f32 1.442695, %v1006_v15  ;;  %2446 = vmatpush3.msra.mxu1 %v1084_v49  ;;  %v1374_v15 = vld [vmem:[#allocation6 + $0x2b0] sm:$0xff]  ;;  %v1371_v10 = vld [vmem:[#allocation6 + $0x298] sm:$0xff] }
 0x3c3   :  { %v1355_v31 = vld [vmem:[#allocation6 + $0x218] sm:$0xff] }
 0x3c4   :  { %2779 = vpow2.f32 %v1012_v28  ;;  %v1358_v28 = vld [vmem:[#allocation6 + $0x230] sm:$0xff]  ;;  %v4198_v23 = vld [vmem:[#allocation26_spill] sm:$0xff] }
 0x3c9   :  { %v2774_v48 = vpop.eup %2773 }
 0x3ca   :  { %1026 = vperm.xlu0 %2761, %v2774_v48   ;;  %v1373_v48 = vld [vmem:[#allocation6 + $0x2a8] sm:$0xff] }
 0x3cc   :  { %v2776_v56 = vpop.eup %2775 }
 0x3cd   :  { %v1017_v51 = vadd.f32 1.0, %v2776_v56  ;;  %v2778_v14 = vpop.eup %2777 }
 0x3ce   :  { %v1019_v1 = vadd.f32 1.0, %v2778_v14  ;;  %v4195_v14 = vld [vmem:[#allocation28_spill] sm:$0xff] }
 0x3cf   :  { %2781 = vrcp.f32 %v1017_v51  ;;  %v1357_v51 = vld [vmem:[#allocation6 + $0x228] sm:$0xff] }
 0x3d1   :  { %v2780_v43 = vpop.eup %2779 }
 0x3d2   :  { %v1018_v27 = vadd.f32 1.0, %v2780_v43 }
 0x3d4   :  { %2783 = vrcp.f32 %v1018_v27  ;;  %v1372_v27 = vld [vmem:[#allocation6 + $0x2a0] sm:$0xff] }
 0x3d5   :  { %2785 = vrcp.f32 %v1019_v1  ;;  %v4196_v1 = vld [vmem:[#allocation27_spill] sm:$0xff] }
 0x3dc   :  { %v2782_v37 = vpop.eup %2781 }
 0x3dd   :  { %1031 = vperm.xlu1 %2762, %v2782_v37  }
 0x3e1   :  { %v2784_v42 = vpop.eup %2783 }
 0x3e2   :  { %1036 = vperm.xlu1 %2762, %v2784_v42   ;;  %v2786_v13 = vpop.eup %2785 }
 0x3e6   :  { %1041 = vperm.xlu1 %2762, %v2786_v13  }
 0x445   :  { %v1027_v9 = vpop.permute.xlu0 %1026 }
 0x446   :  { %v3829_v52 = vmul.f32 %v1027_v9, %v4191_v17  ;;  %v3832_v0 = vmul.f32 %v1027_v9, %v4192_v19  ;;  %v1368_v17 = vld [vmem:[#allocation6 + $0x280] sm:$0xff] }
 0x448   :  { %1213 = vmatprep.mubr.f32.mxu0 %v3832_v0  ;;  %v1320_v37 = vrot.slane %v3832_v0, 1  ;;  %v1052_v47 = vrot.slane %v3829_v52, 7  ;;  %v1053_v18 = vrot.slane %v3832_v0, 7  ;;  %v1319_v49 = vrot.slane %v3829_v52, 1  ;;  %v1523_v0 = vld [vmem:[#allocation7 + $0xe0] sm:$0xff] }
 0x449   :  { %1214 = vmatmul.mubr.f32.vlgmr.msra.gmra.mxu0 %v3829_v52 }
 0x44a   :  { %2460 = vmatpush3.msra.mxu0 %v1367_v7 }
 0x44b   :  { %2461 = vmatprep.subr.mxu0 %v1382_v53 }
 0x44c   :  { %2462 = vmatpush3.msra.mxu0 %v1366_v21  ;;  %v1352_v21 = vld [vmem:[#allocation6 + $0x200] sm:$0xff] }
 0x44d   :  { %2463 = vmatprep.subr.mxu0 %v1381_v40 }
 0x44e   :  { %2464 = vmatpush3.msra.mxu0 %v1365_v12 }
 0x44f   :  { %2465 = vmatprep.subr.mxu0 %v1380_v55 }
 0x450   :  { %2466 = vmatpush3.msra.mxu0 %v1364_v63 }
 0x451   :  { %2467 = vmatprep.subr.mxu0 %v1379_v36 }
 0x452   :  { %2468 = vmatpush3.msra.mxu0 %v1363_v8 }
 0x453   :  { %2469 = vmatprep.subr.mxu0 %v1378_v24 }
 0x454   :  { %2470 = vmatpush3.msra.mxu0 %v1362_v62 }
 0x455   :  { %2471 = vmatprep.subr.mxu0 %v1377_v29 }
 0x456   :  { %2472 = vmatpush3.msra.mxu0 %v1361_v6 }
 0x457   :  { %2473 = vmatprep.subr.mxu0 %v1376_v34 }
 0x458   :  { %v1032_v60 = vpop.permute.xlu1 %1031  ;;  %2474 = vmatpush3.msra.mxu0 %v1360_v25 }
 0x459   :  { %v3837_v35 = vmul.f32 %v1032_v60, %v4193_v30  ;;  %v3840_v50 = vmul.f32 %v1032_v60, %v4194_v38  ;;  %2475 = vmatprep.subr.mxu0 %v1375_v58 }
 0x45a   :  { %2476 = vmatpush3.msra.mxu0 %v1359_v26  ;;  %v1525_v26 = vld [vmem:[#allocation7 + $0xf0] sm:$0xff] }
 0x45b   :  { %1218 = vmatprep.mubr.f32.mxu0 %v3837_v35  ;;  %2477 = vmatprep.subr.mxu0 %v1374_v15  ;;  %v1322_v3 = vrot.slane %v3837_v35, 1  ;;  %v1055_v20 = vrot.slane %v3837_v35, 7  ;;  %v1321_v40 = vrot.slane %v3840_v50, 1  ;;  %v1054_v52 = vrot.slane %v3840_v50, 7  ;;  %v1524_v15 = vld [vmem:[#allocation7 + $0xe8] sm:$0xff] }
 0x45c   :  { %1219 = vmatmul.mubr.f32.gmra.mxu0 %v3840_v50  ;;  %v1526_v50 = vld [vmem:[#allocation7 + $0xf8] sm:$0xff] }
 0x45d   :  { %v1037_v56 = vpop.permute.xlu1 %1036  ;;  %2478 = vmatpush3.msra.mxu0 %v1358_v28  ;;  %v1332_v45 = vsel %vm750_vm5, %v1320_v37, %v1322_v3  ;;  %v1065_v53 = vsel %vm701_vm3, %v1053_v18, %v1055_v20  ;;  %v1064_v63 = vsel %vm701_vm3, %v1052_v47, %v1054_v52  ;;  %v1331_v36 = vsel %vm750_vm5, %v1319_v49, %v1321_v40  ;;  %v1522_v28 = vld [vmem:[#allocation7 + $0xd8] sm:$0xff] }
 0x45e   :  { %v3845_v43 = vmul.f32 %v1037_v56, %v4195_v14  ;;  %v3848_v54 = vmul.f32 %v1037_v56, %v4196_v1  ;;  %2479 = vmatprep.subr.mxu0 %v1373_v48  ;;  %2633 = vmatprep.subr.mxu1 %v1526_v50  ;;  %v1521_v48 = vld [vmem:[#allocation7 + $0xd0] sm:$0xff]  ;;  %v1520_v56 = vld [vmem:[#allocation7 + $0xc8] sm:$0xff]  ;;  %v1519_v14 = vld [vmem:[#allocation7 + $0xc0] sm:$0xff] }
 0x45f   :  { %2480 = vmatpush3.msra.mxu0 %v1357_v51  ;;  %v1509_v51 = vld [vmem:[#allocation7 + $0x78] sm:$0xff]  ;;  %v1507_v1 = vld [vmem:[#allocation7 + $0x68] sm:$0xff] }
 0x460   :  { %1223 = vmatprep.mubr.f32.mxu0 %v3845_v43  ;;  %2481 = vmatprep.subr.mxu0 %v1372_v27  ;;  %v1057_v19 = vrot.slane %v3845_v43, 7  ;;  %v1324_v7 = vrot.slane %v3845_v43, 1  ;;  %v1056_v12 = vrot.slane %v3848_v54, 7  ;;  %v1323_v55 = vrot.slane %v3848_v54, 1  ;;  %v1508_v43 = vld [vmem:[#allocation7 + $0x70] sm:$0xff]  ;;  %v1518_v27 = vld [vmem:[#allocation7 + $0xb8] sm:$0xff] }
 0x461   :  { %v1042_v16 = vpop.permute.xlu1 %1041  ;;  %1224 = vmatmul.mubr.f32.gmra.mxu0 %v3848_v54  ;;  %v1517_v54 = vld [vmem:[#allocation7 + $0xb0] sm:$0xff] }
 0x462   :  { %v3854_v61 = vmul.f32 %v1042_v16, %v4197_v41  ;;  %v3857_v32 = vmul.f32 %v1042_v16, %v4198_v23  ;;  %2482 = vmatpush3.msra.mxu0 %v1356_v57  ;;  %v1063_v24 = vsel %vm701_vm3, %v1055_v20, %v1057_v19  ;;  %v1330_v62 = vsel %vm750_vm5, %v1322_v3, %v1324_v7  ;;  %v1506_v57 = vld [vmem:[#allocation7 + $0x60] sm:$0xff]  ;;  %v1514_v41 = vld [vmem:[#allocation7 + $0x98] sm:$0xff]  ;;  %v1513_v23 = vld [vmem:[#allocation7 + $0x90] sm:$0xff] }
 0x463   :  { %2483 = vmatprep.subr.mxu0 %v1371_v10  ;;  %v1062_v6 = vsel %vm701_vm3, %v1054_v52, %v1056_v12  ;;  %v1329_v34 = vsel %vm750_vm5, %v1321_v40, %v1323_v55  ;;  %v1516_v10 = vld [vmem:[#allocation7 + $0xa8] sm:$0xff]  ;;  %v1515_v16 = vld [vmem:[#allocation7 + $0xa0] sm:$0xff]  ;;  %v1501_v3 = vld [vmem:[#allocation7 + $0x38] sm:$0xff] }
 0x464   :  { %v1058_v42 = vrot.slane %v3854_v61, 7  ;;  %v1059_v46 = vrot.slane %v3857_v32, 7  ;;  %1228 = vmatprep.mubr.f32.mxu0 %v3857_v32  ;;  %2484 = vmatpush3.msra.mxu0 %v1355_v31  ;;  %v1326_v8 = vrot.slane %v3857_v32, 1  ;;  %v1325_v29 = vrot.slane %v3854_v61, 1  ;;  %v1504_v31 = vld [vmem:[#allocation7 + $0x50] sm:$0xff]  ;;  %v1502_v32 = vld [vmem:[#allocation7 + $0x40] sm:$0xff] }
 0x465   :  { %1229 = vmatmul.mubr.f32.gmra.mxu0 %v3854_v61  ;;  %2485 = vmatprep.subr.mxu0 %v1370_v33  ;;  %v1503_v61 = vld [vmem:[#allocation7 + $0x48] sm:$0xff] }
 0x466   :  { %v1067_v13 = vsel %vm701_vm3, %v1059_v46, %v1053_v18  ;;  %v1066_v5 = vsel %vm701_vm3, %v1058_v42, %v1052_v47  ;;  %1448 = vmatprep.mubr.f32.mxu0 %v1332_v45  ;;  %2486 = vmatpush3.msra.mxu0 %v1354_v22  ;;  %v1061_v25 = vsel %vm701_vm3, %v1057_v19, %v1059_v46  ;;  %v1512_v33 = vld [vmem:[#allocation7 + $0x88] sm:$0xff]  ;;  %v1511_v47 = vld [vmem:[#allocation7 + $0x80] sm:$0xff]  ;;  %v1500_v18 = vld [vmem:[#allocation7 + $0x30] sm:$0xff] }
 0x467   :  { %2322 = vmatprep.mubr.msk.f32.mxu1 %vm710_vm10, %v1067_v13  ;;  %2487 = vmatprep.subr.mxu0 %v1369_v11  ;;  %v1328_v60 = vsel %vm750_vm5, %v1324_v7, %v1326_v8  ;;  %v1060_v58 = vsel %vm701_vm3, %v1056_v12, %v1058_v42  ;;  %v1327_v30 = vsel %vm750_vm5, %v1323_v55, %v1325_v29  ;;  %v3928_v42 = vld [vmem:[#allocation7 + $0x178] sm:$0xff]  ;;  %v1499_v46 = vld [vmem:[#allocation7 + $0x28] sm:$0xff]  ;;  %v1498_v22 = vld [vmem:[#allocation7 + $0x20] sm:$0xff] }
 0x468   :  { %2323 = vmatmul.mubr.msk.f32.vlgmr.msra.gmra.mxu1 %vm710_vm10, %v1066_v5  ;;  %2488 = vmatpush3.msra.mxu0 %v1353_v59  ;;  %v1334_v35 = vsel %vm750_vm5, %v1326_v8, %v1320_v37  ;;  %v1333_v38 = vsel %vm750_vm5, %v1325_v29, %v1319_v49  ;;  %v1505_v37 = vld [vmem:[#allocation7 + $0x58] sm:$0xff]  ;;  %v1496_v11 = vld [vmem:[#allocation7 + $0x10] sm:$0xff]  ;;  %v1495_v13 = vld [vmem:[#allocation7 + $0x8] sm:$0xff] }
 0x469   :  { %1303 = vmatprep.mubr.f32.mxu1 %v1065_v53  ;;  %2489 = vmatprep.subr.mxu0 %v1368_v17  ;;  %v1497_v45 = vld [vmem:[#allocation7 + $0x18] sm:$0xff]  ;;  %v1494_v5 = vld [vmem:[#allocation7] sm:$0xff] }
 0x46a   :  { %2490 = vmatpush3.msra.mxu0 %v1352_v21  ;;  %2634 = vmatpush3.msra.mxu1 %v1526_v50 }
 0x46b   :  { %1449 = vmatmul.mubr.f32.vlgmr.msra.gmra.mxu0 %v1331_v36  ;;  %2635 = vmatprep.subr.mxu1 %v1525_v26 }
 0x46c   :  { %1304 = vmatmul.mubr.f32.gmra.mxu1 %v1064_v63  ;;  %2326 = vmatprep.mubr.msk.f32.mxu0 %vm764_vm14, %v1330_v62 }
 0x46d   :  { %2324 = vmatprep.mubr.msk.f32.mxu1 %vm712_vm12, %v1063_v24  ;;  %2636 = vmatpush3.msra.mxu1 %v1525_v26 }
 0x46e   :  { %2637 = vmatprep.subr.mxu1 %v1524_v15  ;;  %2671 = vmatprep.subr.mxu0 %v1509_v51 }
 0x46f   :  { %2327 = vmatmul.mubr.msk.f32.gmra.mxu0 %vm764_vm14, %v1329_v34  ;;  %2638 = vmatpush3.msra.mxu1 %v1524_v15 }
 0x470   :  { %2325 = vmatmul.mubr.msk.f32.gmra.mxu1 %vm712_vm12, %v1062_v6  ;;  %1458 = vmatprep.mubr.f32.mxu0 %v1328_v60  ;;  %v1473_v60 = vld [vmem:[%s4106_s11 + $0x1] ss:$0 sm:$0xff] }
 0x471   :  { %1313 = vmatprep.mubr.f32.mxu1 %v1061_v25  ;;  %2639 = vmatprep.subr.mxu1 %v1523_v0 }
 0x472   :  { %2640 = vmatpush3.msra.mxu1 %v1523_v0  ;;  %2672 = vmatpush3.msra.mxu0 %v1509_v51 }
 0x473   :  { %1459 = vmatmul.mubr.f32.gmra.mxu0 %v1327_v30  ;;  %2641 = vmatprep.subr.mxu1 %v1522_v28 }
 0x474   :  { %1314 = vmatmul.mubr.f32.gmra.mxu1 %v1060_v58  ;;  %2328 = vmatprep.mubr.msk.f32.mxu0 %vm766_vm15, %v1334_v35 }
 0x475   :  { %2642 = vmatpush3.msra.mxu1 %v1522_v28  ;;  %2673 = vmatprep.subr.mxu0 %v1508_v43 }
 0x476   :  { %2643 = vmatprep.subr.mxu1 %v1521_v48  ;;  %2674 = vmatpush3.msra.mxu0 %v1508_v43 }
 0x477   :  { %2329 = vmatmul.mubr.msk.f32.gmra.mxu0 %vm766_vm15, %v1333_v38  ;;  %2644 = vmatpush3.msra.mxu1 %v1521_v48 }
 0x478   :  { %2645 = vmatprep.subr.mxu1 %v1520_v56  ;;  %2675 = vmatprep.subr.mxu0 %v1507_v1 }
 0x479   :  { %2646 = vmatpush3.msra.mxu1 %v1520_v56  ;;  %2676 = vmatpush3.msra.mxu0 %v1507_v1 }
 0x47a   :  { %2647 = vmatprep.subr.mxu1 %v1519_v14  ;;  %2677 = vmatprep.subr.mxu0 %v1506_v57 }
 0x47b   :  { %2648 = vmatpush3.msra.mxu1 %v1519_v14  ;;  %2678 = vmatpush3.msra.mxu0 %v1506_v57 }
 0x47c   :  { %2649 = vmatprep.subr.mxu1 %v1518_v27  ;;  %2679 = vmatprep.subr.mxu0 %v1505_v37 }
 0x47d   :  { %2650 = vmatpush3.msra.mxu1 %v1518_v27  ;;  %2680 = vmatpush3.msra.mxu0 %v1505_v37 }
 0x47e   :  { %2651 = vmatprep.subr.mxu1 %v1517_v54  ;;  %2681 = vmatprep.subr.mxu0 %v1504_v31 }
 0x47f   :  { %2652 = vmatpush3.msra.mxu1 %v1517_v54  ;;  %2682 = vmatpush3.msra.mxu0 %v1504_v31 }
 0x480   :  { %2653 = vmatprep.subr.mxu1 %v1516_v10  ;;  %2683 = vmatprep.subr.mxu0 %v1503_v61 }
 0x481   :  { %2654 = vmatpush3.msra.mxu1 %v1516_v10  ;;  %2684 = vmatpush3.msra.mxu0 %v1503_v61 }
 0x482   :  { %2655 = vmatprep.subr.mxu1 %v1515_v16  ;;  %2685 = vmatprep.subr.mxu0 %v1502_v32 }
 0x483   :  { %2656 = vmatpush3.msra.mxu1 %v1515_v16  ;;  %2686 = vmatpush3.msra.mxu0 %v1502_v32 }
 0x484   :  { %2657 = vmatprep.subr.mxu1 %v1514_v41  ;;  %2687 = vmatprep.subr.mxu0 %v1501_v3 }
 0x485   :  { %2658 = vmatpush3.msra.mxu1 %v1514_v41  ;;  %2688 = vmatpush3.msra.mxu0 %v1501_v3 }
 0x486   :  { %2659 = vmatprep.subr.mxu1 %v1513_v23  ;;  %2689 = vmatprep.subr.mxu0 %v1500_v18 }
 0x487   :  { %2660 = vmatpush3.msra.mxu1 %v1513_v23  ;;  %2690 = vmatpush3.msra.mxu0 %v1500_v18  ;;  %v1724_v23 = vld [vmem:[#allocation7 + $0x170] sm:$0xff] }
 0x488   :  { %2661 = vmatprep.subr.mxu1 %v1512_v33  ;;  %2691 = vmatprep.subr.mxu0 %v1499_v46 }
 0x489   :  { %2662 = vmatpush3.msra.mxu1 %v1512_v33  ;;  %2692 = vmatpush3.msra.mxu0 %v1499_v46 }
 0x48a   :  { %2663 = vmatprep.subr.mxu1 %v1511_v47  ;;  %2693 = vmatprep.subr.mxu0 %v1498_v22 }
 0x48b   :  { %2664 = vmatpush3.msra.mxu1 %v1511_v47  ;;  %2694 = vmatpush3.msra.mxu0 %v1498_v22  ;;  %v1723_v47 = vld [vmem:[#allocation7 + $0x168] sm:$0xff]  ;;  %v1722_v22 = vld [vmem:[#allocation7 + $0x160] sm:$0xff] }
 0x48c   :  { %2709 = vmatprep.subr.mxu1 %v3928_v42  ;;  %2695 = vmatprep.subr.mxu0 %v1497_v45 }
 0x48d   :  { %2696 = vmatpush3.msra.mxu0 %v1497_v45 }
 0x48e   :  { %2697 = vmatprep.subr.mxu0 %v1496_v11 }
 0x48f   :  { %2698 = vmatpush3.msra.mxu0 %v1496_v11 }
 0x490   :  { %2699 = vmatprep.subr.mxu0 %v1495_v13 }
 0x491   :  { %2700 = vmatpush3.msra.mxu0 %v1495_v13  ;;  %v1721_v13 = vld [vmem:[#allocation7 + $0x158] sm:$0xff] }
 0x492   :  { %2701 = vmatprep.subr.mxu0 %v1494_v5 }
 0x493   :  { %2702 = vmatpush3.msra.mxu0 %v1494_v5 }
 0x509   :  { %v2403_v20 = vpop.f32.mrf.mxu0 }
 0x50b   :  { %v2404_v59 = vpop.f32.mrf.mxu0 }
 0x50c   :  { %v2405_v36 = vadd.f32 %v2404_v59, %v2403_v20  ;;  %v1720_v59 = vld [vmem:[#allocation7 + $0x150] sm:$0xff] }
 0x51c   :  { %v2406_v49 = vpop.f32.mrf.mxu0 }
 0x51e   :  { %v2407_v17 = vpop.f32.mrf.mxu0 }
 0x51f   :  { %v2408_v58 = vadd.f32 %v2407_v17, %v2406_v49 }
 0x521   :  { %v2409_v19 = vpop.f32.mrf.mxu0 }
 0x523   :  { %v2410_v7 = vpop.f32.mrf.mxu0 }
 0x524   :  { %v2411_v56 = vadd.f32 %v2410_v7, %v2409_v19 }
 0x525   :  { %v2412_v53 = vpop.f32.mrf.mxu0 }
 0x527   :  { %v2413_v52 = vpop.f32.mrf.mxu0 }
 0x528   :  { %v2447_v21 = vpop.f32.mrf.mxu1  ;;  %v2414_v16 = vadd.f32 %v2413_v52, %v2412_v53  ;;  %v1719_v53 = vld [vmem:[#allocation7 + $0x148] sm:$0xff]  ;;  %v1718_v52 = vld [vmem:[#allocation7 + $0x140] sm:$0xff] }
 0x52a   :  { %v2448_v40 = vpop.f32.mrf.mxu1 }
 0x52b   :  { %v2449_v12 = vadd.f32 %v2448_v40, %v2447_v21  ;;  %v2491_v63 = vpop.f32.mrf.mxu0 }
 0x52c   :  { %v2450_v55 = vpop.f32.mrf.mxu1 }
 0x52d   :  { %v2492_v24 = vpop.f32.mrf.mxu0  ;;  %v1301_v62 = vadd.f32 %v2449_v12, %v2405_v36  ;;  %v1715_v36 = vld [vmem:[#allocation7 + $0x128] sm:$0xff] }
 0x52e   :  { %v2451_v8 = vpop.f32.mrf.mxu1  ;;  %v2493_v6 = vadd.f32 %v2492_v24, %v2491_v63  ;;  %v1716_v63 = vld [vmem:[#allocation7 + $0x130] sm:$0xff]  ;;  %v1714_v24 = vld [vmem:[#allocation7 + $0x120] sm:$0xff] }
 0x52f   :  { %v2452_v29 = vadd.f32 %v2451_v8, %v2450_v55  ;;  %v2494_v25 = vpop.f32.mrf.mxu0  ;;  %v1717_v55 = vld [vmem:[#allocation7 + $0x138] sm:$0xff]  ;;  %v4200_v8 = vmov 0.0  }
 0x530   :  { %v2453_v34 = vpop.f32.mrf.mxu1  ;;  %v1469_v30 = vadd.f32 %v2493_v6, %v1301_v62  ;;  %v1712_v62 = vld [vmem:[#allocation7 + $0x110] sm:$0xff] }
 0x531   :  { %v2495_v38 = vpop.f32.mrf.mxu0  ;;  %v1306_v50 = vadd.f32 %v2452_v29, %v2408_v58  ;;  %v1711_v29 = vld [vmem:[#allocation7 + $0x108] sm:$0xff] }
 0x532   :  { %v2454_v35 = vpop.f32.mrf.mxu1  ;;  %v2496_v15 = vadd.f32 %v2495_v38, %v2494_v25  ;;  %v1474_v0 = vadd.f32 %v1473_v60, %v1469_v30  ;;  %v1868_v38 = vld [vmem:[%s4102_s7 + $0xf0] sm:$0xff] }
 0x533   :  { %v2455_v26 = vadd.f32 %v2454_v35, %v2453_v34  ;;  %v2497_v48 = vpop.f32.mrf.mxu0  ;;  %v1710_v34 = vld [vmem:[#allocation7 + $0x100] sm:$0xff]  ;;  %v1869_v35 = vld [vmem:[%s4102_s7 + $0xf8] sm:$0xff] }
 0x534   :  { %v2456_v28 = vpop.f32.mrf.mxu1  ;;  %v1470_v51 = vadd.f32 %v2496_v15, %v1306_v50  ;;  %v3934_v14 = vmax.f32 %v1474_v0, 0.0  ;;  %1887 = vmatprep.subr.mxu0 %v1869_v35  ;;  %v1864_v50 = vld [vmem:[%s4102_s7 + $0xd0] sm:$0xff]  ;;  %v1862_v15 = vld [vmem:[%s4102_s7 + $0xc0] sm:$0xff]  ;;  %v1861_v0 = vld [vmem:[%s4102_s7 + $0xb8] sm:$0xff] }
 0x535   :  { %v2498_v27 = vpop.f32.mrf.mxu0  ;;  %v1311_v1 = vadd.f32 %v2455_v26, %v2411_v56  ;;  %v1863_v26 = vld [vmem:[%s4102_s7 + $0xc8] sm:$0xff]  ;;  %v1858_v56 = vld [vmem:[%s4102_s7 + $0xa0] sm:$0xff] }
 0x536   :  { %v2457_v43 = vpop.f32.mrf.mxu1  ;;  %v1475_v57 = vadd.f32 %v1473_v60, %v1470_v51  ;;  %v2499_v10 = vadd.f32 %v2498_v27, %v2497_v48  ;;  %2665 = vmatprep.mubr.f32.mxu1 %v3934_v14  ;;  %v1697_v20 = vrot.slane %v3934_v14, 1  ;;  %v1482_v17 = vrot.slane %v3934_v14, 7  ;;  %v1859_v48 = vld [vmem:[%s4102_s7 + $0xa8] sm:$0xff]  ;;  %v1857_v51 = vld [vmem:[%s4102_s7 + $0x98] sm:$0xff]  ;;  %v1856_v14 = vld [vmem:[%s4102_s7 + $0x90] sm:$0xff] }
 0x537   :  { %v2458_v54 = vadd.f32 %v2457_v43, %v2456_v28  ;;  %v2500_v37 = vpop.f32.mrf.mxu0  ;;  %v1860_v28 = vld [vmem:[%s4102_s7 + $0xb0] sm:$0xff]  ;;  %v1855_v43 = vld [vmem:[%s4102_s7 + $0x88] sm:$0xff]  ;;  %v1854_v27 = vld [vmem:[%s4102_s7 + $0x80] sm:$0xff] }
 0x538   :  { %v3937_v31 = vmax.f32 %v1475_v57, 0.0  ;;  %v1471_v41 = vadd.f32 %v2499_v10, %v1311_v1  ;;  %v1853_v1 = vld [vmem:[%s4102_s7 + $0x78] sm:$0xff]  ;;  %v1851_v57 = vld [vmem:[%s4102_s7 + $0x68] sm:$0xff]  ;;  %v1850_v10 = vld [vmem:[%s4102_s7 + $0x60] sm:$0xff] }
 0x539   :  { %v2501_v61 = vpop.f32.mrf.mxu0  ;;  %v1316_v32 = vadd.f32 %v2458_v54, %v2414_v16  ;;  %v1852_v54 = vld [vmem:[%s4102_s7 + $0x70] sm:$0xff]  ;;  %v1975_v16 = vld [vmem:[#allocation9 + $0x78] sm:$0xff] }
 0x53a   :  { %v2502_v33 = vadd.f32 %v2501_v61, %v2500_v37  ;;  %2666 = vmatmul.mubr.f32.vlgmr.msra.gmra.mxu1 %v3937_v31  ;;  %v1476_v3 = vadd.f32 %v1473_v60, %v1471_v41  ;;  %v1698_v11 = vrot.slane %v3937_v31, 1  ;;  %v1991_v37 = vld [vmem:[#allocation9 + $0xf8] sm:$0xff]  ;;  %v1990_v41 = vld [vmem:[#allocation9 + $0xf0] sm:$0xff] }
 0x53b   :  { %2710 = vmatpush3.msra.mxu1 %v3928_v42  ;;  %v1483_v42 = vrot.slane %v3937_v31, 7  ;;  %v1849_v31 = vld [vmem:[%s4102_s7 + $0x58] sm:$0xff]  ;;  %v1974_v61 = vld [vmem:[#allocation9 + $0x70] sm:$0xff] }
 0x53c   :  { %v1472_v18 = vadd.f32 %v2502_v33, %v1316_v32  ;;  %2711 = vmatprep.subr.mxu1 %v1724_v23  ;;  %v3941_v46 = vmax.f32 %v1476_v3, 0.0  ;;  %v1703_v49 = vsel %vm750_vm5, %v1697_v20, %v1698_v11  ;;  %v1989_v32 = vld [vmem:[#allocation9 + $0xe8] sm:$0xff] }
 0x53d   :  { %2712 = vmatpush3.msra.mxu1 %v1724_v23  ;;  %v1488_v40 = vsel %vm701_vm3, %v1482_v17, %v1483_v42  ;;  %v1848_v23 = vld [vmem:[%s4102_s7 + $0x50] sm:$0xff]  ;;  %v1847_v33 = vld [vmem:[%s4102_s7 + $0x48] sm:$0xff] }
 0x53e   :  { %2713 = vmatprep.subr.mxu1 %v1723_v47  ;;  %2668 = vmatprep.mubr.f32.mxu1 %v3941_v46  ;;  %v1477_v45 = vadd.f32 %v1473_v60, %v1472_v18  ;;  %v1484_v7 = vrot.slane %v3941_v46, 7  ;;  %v1699_v6 = vrot.slane %v3941_v46, 1  ;;  %v1973_v3 = vld [vmem:[#allocation9 + $0x68] sm:$0xff]  ;;  %v1988_v18 = vld [vmem:[#allocation9 + $0xe0] sm:$0xff]  ;;  %v1845_v46 = vld [vmem:[%s4102_s7 + $0x38] sm:$0xff] }
 0x53f   :  { %2714 = vmatpush3.msra.mxu1 %v1723_v47  ;;  %v1846_v47 = vld [vmem:[%s4102_s7 + $0x40] sm:$0xff] }
 0x540   :  { %2715 = vmatprep.subr.mxu1 %v1722_v22  ;;  %v1481_v5 = vmax.f32 %v1477_v45, 0.0  ;;  %v1487_v12 = vsel %vm701_vm3, %v1483_v42, %v1484_v7  ;;  %v1702_v60 = vsel %vm750_vm5, %v1698_v11, %v1699_v6  ;;  %v1844_v45 = vld [vmem:[%s4102_s7 + $0x30] sm:$0xff]  ;;  %v1987_v11 = vld [vmem:[#allocation9 + $0xd8] sm:$0xff] }
 0x541   :  { %2716 = vmatpush3.msra.mxu1 %v1722_v22  ;;  %v1972_v22 = vld [vmem:[#allocation9 + $0x60] sm:$0xff]  ;;  %v1986_v42 = vld [vmem:[#allocation9 + $0xd0] sm:$0xff] }
 0x542   :  { %2717 = vmatprep.subr.mxu1 %v1721_v13  ;;  %2669 = vmatmul.mubr.f32.gmra.mxu1 %v1481_v5  ;;  %v1485_v19 = vrot.slane %v1481_v5, 7  ;;  %v1700_v25 = vrot.slane %v1481_v5, 1  ;;  %v1971_v5 = vld [vmem:[#allocation9 + $0x58] sm:$0xff] }
 0x543   :  { %2718 = vmatpush3.msra.mxu1 %v1721_v13  ;;  %2741 = vmatprep.mubr.f32.mxu1 %v1703_v49  ;;  %v1843_v13 = vld [vmem:[%s4102_s7 + $0x28] sm:$0xff]  ;;  %v1970_v49 = vld [vmem:[#allocation9 + $0x50] sm:$0xff] }
 0x544   :  { %2719 = vmatprep.subr.mxu1 %v1720_v59  ;;  %v1489_v21 = vsel %vm701_vm3, %v1485_v19, %v1482_v17  ;;  %v1486_v9 = vsel %vm701_vm3, %v1484_v7, %v1485_v19  ;;  %v1701_v58 = vsel %vm750_vm5, %v1699_v6, %v1700_v25  ;;  %v1704_v30 = vsel %vm750_vm5, %v1700_v25, %v1697_v20  ;;  %v1842_v20 = vld [vmem:[%s4102_s7 + $0x20] sm:$0xff]  ;;  %v1840_v17 = vld [vmem:[%s4102_s7 + $0x10] sm:$0xff]  ;;  %v1985_v19 = vld [vmem:[#allocation9 + $0xc8] sm:$0xff] }
 0x545   :  { %2720 = vmatpush3.msra.mxu1 %v1720_v59  ;;  %2703 = vmatprep.mubr.msk.f32.mxu0 %vm710_vm10, %v1489_v21  ;;  %v1841_v59 = vld [vmem:[%s4102_s7 + $0x18] sm:$0xff]  ;;  %v1839_v7 = vld [vmem:[%s4102_s7 + $0x8] sm:$0xff]  ;;  %v1838_v21 = vld [vmem:[%s4102_s7] sm:$0xff] }
 0x546   :  { %2721 = vmatprep.subr.mxu1 %v1719_v53  ;;  %2704 = vmatmul.mubr.f32.vlgmr.msra.gmra.mxu0 %v1488_v40  ;;  %v1984_v40 = vld [vmem:[#allocation9 + $0xc0] sm:$0xff] }
 0x547   :  { %2722 = vmatpush3.msra.mxu1 %v1719_v53  ;;  %2706 = vmatprep.mubr.msk.f32.mxu0 %vm712_vm12, %v1487_v12  ;;  %v1969_v53 = vld [vmem:[#allocation9 + $0x48] sm:$0xff]  ;;  %v1983_v12 = vld [vmem:[#allocation9 + $0xb8] sm:$0xff] }
 0x548   :  { %2723 = vmatprep.subr.mxu1 %v1718_v52  ;;  %1888 = vmatpush1.msra.mxu0 %v1868_v38 }
 0x549   :  { %2724 = vmatpush3.msra.mxu1 %v1718_v52  ;;  %1889 = vmatprep.subr.mxu0 %v1867_v2  ;;  %v1968_v52 = vld [vmem:[#allocation9 + $0x40] sm:$0xff] }
 0x54a   :  { %2725 = vmatprep.subr.mxu1 %v1717_v55  ;;  %2707 = vmatmul.mubr.f32.gmra.mxu0 %v1486_v9  ;;  %v1982_v9 = vld [vmem:[#allocation9 + $0xb0] sm:$0xff]  ;;  %v1815_v2 = vld [vmem:[%s4106_s11 + $0x2] ss:$0 sm:$0xff] }
 0x54b   :  { %2726 = vmatpush3.msra.mxu1 %v1717_v55  ;;  %1951 = vmatprep.mubr.f32.mxu0 %v4200_v8  ;;  %v1967_v55 = vld [vmem:[#allocation9 + $0x38] sm:$0xff] }
 0x54c   :  { %2727 = vmatprep.subr.mxu1 %v1716_v63  ;;  %1890 = vmatpush1.msra.mxu0 %v1866_v44 }
 0x54d   :  { %2728 = vmatpush3.msra.mxu1 %v1716_v63  ;;  %1891 = vmatprep.subr.mxu0 %v1865_v39  ;;  %v1966_v63 = vld [vmem:[#allocation9 + $0x30] sm:$0xff] }
 0x54e   :  { %2729 = vmatprep.subr.mxu1 %v1715_v36  ;;  %1892 = vmatpush1.msra.mxu0 %v1864_v50 }
 0x54f   :  { %2730 = vmatpush3.msra.mxu1 %v1715_v36  ;;  %1893 = vmatprep.subr.mxu0 %v1863_v26  ;;  %v1981_v36 = vld [vmem:[#allocation9 + $0xa8] sm:$0xff] }
 0x550   :  { %2731 = vmatprep.subr.mxu1 %v1714_v24  ;;  %1894 = vmatpush1.msra.mxu0 %v1862_v15 }
 0x551   :  { %2732 = vmatpush3.msra.mxu1 %v1714_v24  ;;  %1895 = vmatprep.subr.mxu0 %v1861_v0  ;;  %v1965_v24 = vld [vmem:[#allocation9 + $0x28] sm:$0xff] }
 0x552   :  { %2733 = vmatprep.subr.mxu1 %v1713_v4  ;;  %1896 = vmatpush1.msra.mxu0 %v1860_v28 }
 0x553   :  { %2734 = vmatpush3.msra.mxu1 %v1713_v4  ;;  %1897 = vmatprep.subr.mxu0 %v1859_v48  ;;  %v1980_v4 = vld [vmem:[#allocation9 + $0xa0] sm:$0xff] }
 0x554   :  { %2735 = vmatprep.subr.mxu1 %v1712_v62  ;;  %1898 = vmatpush1.msra.mxu0 %v1858_v56 }
 0x555   :  { %2736 = vmatpush3.msra.mxu1 %v1712_v62  ;;  %1899 = vmatprep.subr.mxu0 %v1857_v51  ;;  %v1964_v62 = vld [vmem:[#allocation9 + $0x20] sm:$0xff] }
 0x556   :  { %2737 = vmatprep.subr.mxu1 %v1711_v29  ;;  %1900 = vmatpush1.msra.mxu0 %v1856_v14 }
 0x557   :  { %2738 = vmatpush3.msra.mxu1 %v1711_v29  ;;  %1901 = vmatprep.subr.mxu0 %v1855_v43 }
 0x558   :  { %2739 = vmatprep.subr.mxu1 %v1710_v34  ;;  %1902 = vmatpush1.msra.mxu0 %v1854_v27 }
 0x559   :  { %2740 = vmatpush3.msra.mxu1 %v1710_v34  ;;  %1903 = vmatprep.subr.mxu0 %v1853_v1 }
 0x55a   :  { %2742 = vmatmul.mubr.msk.f32.vlgmr.msra.gmra.mxu1 %vm764_vm14, %v1702_v60  ;;  %1904 = vmatpush1.msra.mxu0 %v1852_v54 }
 0x55b   :  { %2744 = vmatprep.mubr.f32.mxu1 %v1701_v58  ;;  %2563 = vmatprep.subr.mxu1 %v1991_v37 }
 0x55c   :  { %1905 = vmatprep.subr.mxu0 %v1851_v57  ;;  %2564 = vmatpush3.msra.mxu1 %v1975_v16 }
 0x55d   :  { %1906 = vmatpush1.msra.mxu0 %v1850_v10  ;;  %2565 = vmatprep.subr.mxu1 %v1990_v41 }
 0x55e   :  { %2745 = vmatmul.mubr.msk.f32.gmra.mxu1 %vm766_vm15, %v1704_v30  ;;  %1907 = vmatprep.subr.mxu0 %v1849_v31 }
 0x55f   :  { %2566 = vmatpush3.msra.mxu1 %v1974_v61  ;;  %1908 = vmatpush1.msra.mxu0 %v1848_v23 }
 0x560   :  { %2567 = vmatprep.subr.mxu1 %v1989_v32  ;;  %1909 = vmatprep.subr.mxu0 %v1847_v33 }
 0x561   :  { %2568 = vmatpush3.msra.mxu1 %v1973_v3  ;;  %1910 = vmatpush1.msra.mxu0 %v1846_v47 }
 0x562   :  { %2569 = vmatprep.subr.mxu1 %v1988_v18  ;;  %1911 = vmatprep.subr.mxu0 %v1845_v46 }
 0x563   :  { %2570 = vmatpush3.msra.mxu1 %v1972_v22  ;;  %1912 = vmatpush1.msra.mxu0 %v1844_v45 }
 0x564   :  { %2571 = vmatprep.subr.mxu1 %v1987_v11  ;;  %1913 = vmatprep.subr.mxu0 %v1843_v13 }
 0x565   :  { %2572 = vmatpush3.msra.mxu1 %v1971_v5  ;;  %1914 = vmatpush1.msra.mxu0 %v1842_v20  ;;  %v1979_v20 = vld [vmem:[#allocation9 + $0x98] sm:$0xff] }
 0x566   :  { %2573 = vmatprep.subr.mxu1 %v1986_v42  ;;  %1915 = vmatprep.subr.mxu0 %v1841_v59  ;;  %v1963_v42 = vld [vmem:[#allocation9 + $0x18] sm:$0xff]  ;;  %v1978_v59 = vld [vmem:[#allocation9 + $0x90] sm:$0xff] }
 0x567   :  { %2574 = vmatpush3.msra.mxu1 %v1970_v49  ;;  %1916 = vmatpush1.msra.mxu0 %v1840_v17  ;;  %v1962_v49 = vld [vmem:[#allocation9 + $0x10] sm:$0xff]  ;;  %v1977_v17 = vld [vmem:[#allocation9 + $0x88] sm:$0xff] }
 0x568   :  { %2575 = vmatprep.subr.mxu1 %v1985_v19  ;;  %1917 = vmatprep.subr.mxu0 %v1839_v7  ;;  %v1961_v19 = vld [vmem:[#allocation9 + $0x8] sm:$0xff]  ;;  %v1976_v7 = vld [vmem:[#allocation9 + $0x80] sm:$0xff] }
 0x569   :  { %2576 = vmatpush3.msra.mxu1 %v1969_v53  ;;  %1918 = vmatpush1.msra.mxu0 %v1838_v21  ;;  %v1960_v53 = vld [vmem:[#allocation9] sm:$0xff]  ;;  %v2095_v21 = vld [vmem:[#allocation10 + $0xf8] sm:$0xff] }
 0x56a   :  { %2577 = vmatprep.subr.mxu1 %v1984_v40  ;;  %v2094_v40 = vld [vmem:[#allocation10 + $0xf0] sm:$0xff]  ;;  %2109 = vmatprep.subr.mxu0 %v2095_v21  ;;  %v2187_v21 = vld [vmem:[#allocation12 + $0x28] sm:$0xff] }
 0x56b   :  { %2578 = vmatpush3.msra.mxu1 %v1968_v52  ;;  %v2093_v52 = vld [vmem:[#allocation10 + $0xe8] sm:$0xff] }
 0x56c   :  { %2579 = vmatprep.subr.mxu1 %v1983_v12  ;;  %v2092_v12 = vld [vmem:[#allocation10 + $0xe0] sm:$0xff] }
 0x56d   :  { %2580 = vmatpush3.msra.mxu1 %v1967_v55  ;;  %v2090_v55 = vld [vmem:[#allocation10 + $0xd0] sm:$0xff] }
 0x56e   :  { %2581 = vmatprep.subr.mxu1 %v1982_v9  ;;  %v2089_v9 = vld [vmem:[#allocation10 + $0xc8] sm:$0xff] }
 0x56f   :  { %2582 = vmatpush3.msra.mxu1 %v1966_v63  ;;  %v2088_v63 = vld [vmem:[#allocation10 + $0xc0] sm:$0xff] }
 0x570   :  { %2583 = vmatprep.subr.mxu1 %v1981_v36  ;;  %v2087_v36 = vld [vmem:[#allocation10 + $0xb8] sm:$0xff] }
 0x571   :  { %2584 = vmatpush3.msra.mxu1 %v1965_v24  ;;  %v2086_v24 = vld [vmem:[#allocation10 + $0xb0] sm:$0xff] }
 0x572   :  { %2585 = vmatprep.subr.mxu1 %v1980_v4  ;;  %v2085_v4 = vld [vmem:[#allocation10 + $0xa8] sm:$0xff] }
 0x573   :  { %2586 = vmatpush3.msra.mxu1 %v1964_v62  ;;  %v2084_v62 = vld [vmem:[#allocation10 + $0xa0] sm:$0xff] }
 0x574   :  { %2587 = vmatprep.subr.mxu1 %v1979_v20  ;;  %v2191_v20 = vld [vmem:[#allocation12 + $0x48] sm:$0xff] }
 0x575   :  { %2588 = vmatpush3.msra.mxu1 %v1963_v42  ;;  %v2206_v42 = vld [vmem:[#allocation12 + $0xc0] sm:$0xff] }
 0x576   :  { %2589 = vmatprep.subr.mxu1 %v1978_v59  ;;  %v2190_v59 = vld [vmem:[#allocation12 + $0x40] sm:$0xff] }
 0x577   :  { %2590 = vmatpush3.msra.mxu1 %v1962_v49  ;;  %v2205_v49 = vld [vmem:[#allocation12 + $0xb8] sm:$0xff] }
 0x578   :  { %2591 = vmatprep.subr.mxu1 %v1977_v17  ;;  %v2189_v17 = vld [vmem:[#allocation12 + $0x38] sm:$0xff] }
 0x579   :  { %2592 = vmatpush3.msra.mxu1 %v1961_v19  ;;  %v2204_v19 = vld [vmem:[#allocation12 + $0xb0] sm:$0xff] }
 0x57a   :  { %2593 = vmatprep.subr.mxu1 %v1976_v7  ;;  %v2188_v7 = vld [vmem:[#allocation12 + $0x30] sm:$0xff] }
 0x57b   :  { %2594 = vmatpush3.msra.mxu1 %v1960_v53  ;;  %v2203_v53 = vld [vmem:[#allocation12 + $0xa8] sm:$0xff] }
 0x5fa   :  { %v2667_v29 = vpop.f32.mrf.mxu1 }
 0x5fc   :  { %v1593_v34 = vpop.f32.mrf.mxu1 }
 0x602   :  { %v2670_v25 = vpop.f32.mrf.mxu1 }
 0x604   :  { %v1603_v58 = vpop.f32.mrf.mxu1 }
 0x606   :  { %v2705_v6 = vpop.f32.mrf.mxu0 }
 0x607   :  { %v1684_v35 = vadd.f32 %v2705_v6, %v2667_v29  ;;  %v2083_v29 = vld [vmem:[#allocation10 + $0x98] sm:$0xff]  ;;  %v2082_v6 = vld [vmem:[#allocation10 + $0x90] sm:$0xff] }
 0x608   :  { %v1678_v60 = vpop.f32.mrf.mxu0 }
 0x609   :  { %v1679_v44 = vadd.f32 %v1678_v60, %v1593_v34  ;;  %v2081_v34 = vld [vmem:[#allocation10 + $0x88] sm:$0xff]  ;;  %v2079_v60 = vld [vmem:[#allocation10 + $0x78] sm:$0xff] }
 0x60a   :  { %v2708_v30 = vpop.f32.mrf.mxu0 }
 0x60b   :  { %v1694_v15 = vadd.f32 %v2708_v30, %v2670_v25  ;;  %v2080_v25 = vld [vmem:[#allocation10 + $0x80] sm:$0xff]  ;;  %v2077_v30 = vld [vmem:[#allocation10 + $0x68] sm:$0xff] }
 0x60c   :  { %v1688_v50 = vpop.f32.mrf.mxu0 }
 0x60d   :  { %v1689_v56 = vadd.f32 %v1688_v50, %v1603_v58  ;;  %v2078_v58 = vld [vmem:[#allocation10 + $0x70] sm:$0xff]  ;;  %v4201_v50 = vld [vmem:[#allocation19_spill] sm:$0xff] }
 0x61a   :  { %v2743_v38 = vpop.f32.mrf.mxu1 }
 0x61b   :  { %v1812_v39 = vadd.f32 %v2743_v38, %v1684_v35  ;;  %v2076_v35 = vld [vmem:[#allocation10 + $0x60] sm:$0xff]  ;;  %v2075_v38 = vld [vmem:[#allocation10 + $0x58] sm:$0xff] }
 0x61c   :  { %v1792_v26 = vpop.f32.mrf.mxu1 }
 0x61d   :  { %v1817_v0 = vadd.f32 %v1815_v2, %v1812_v39  ;;  %v1811_v28 = vadd.f32 %v1792_v26, %v1679_v44  ;;  %v2073_v44 = vld [vmem:[#allocation10 + $0x48] sm:$0xff] }
 0x61e   :  { %v2746_v48 = vpop.f32.mrf.mxu1  ;;  %v2334_v39 = vld [vmem:[%s4106_s11 + $0x3] ss:$8 sm:$0x3] }
 0x61f   :  { %v1816_v51 = vadd.f32 %v1815_v2, %v1811_v28  ;;  %v1814_v14 = vadd.f32 %v2746_v48, %v1694_v15  ;;  %v1821_v27 = vmax.f32 %v1817_v0, 0.0  ;;  %v1876_v26 = vrot.slane %v2334_v39, %v4201_v50  ;;  %v4202_v15 = vld [vmem:[#allocation20_spill] sm:$0xff] }
 0x620   :  { %v1802_v43 = vpop.f32.mrf.mxu1  ;;  %v1880_v0 = vrot.slane %v2334_v39, %v4202_v15 }
 0x621   :  { %v1820_v1 = vmax.f32 %v1816_v51, 0.0  ;;  %v1819_v54 = vadd.f32 %v1815_v2, %v1814_v14  ;;  %v1813_v57 = vadd.f32 %v1802_v43, %v1689_v56 }
 0x623   :  { %v1824_v10 = vmax.f32 %v1820_v1, %v1821_v27  ;;  %v1818_v37 = vadd.f32 %v1815_v2, %v1813_v57  ;;  %v1823_v31 = vmax.f32 %v1819_v54, 0.0  ;;  %v2074_v2 = vld [vmem:[#allocation10 + $0x50] sm:$0xff]  ;;  %v2072_v27 = vld [vmem:[#allocation10 + $0x40] sm:$0xff]  ;;  %v2071_v1 = vld [vmem:[#allocation10 + $0x38] sm:$0xff] }
 0x624   :  { %v2070_v54 = vld [vmem:[#allocation10 + $0x30] sm:$0xff]  ;;  %v2069_v57 = vld [vmem:[#allocation10 + $0x28] sm:$0xff] }
 0x625   :  { %v1825_v16 = vrot.slane %v1824_v10, 4  ;;  %v1822_v41 = vmax.f32 %v1818_v37, 0.0  ;;  %v2067_v37 = vld [vmem:[#allocation10 + $0x18] sm:$0xff] }
 0x627   :  { %v1826_v61 = vmax.f32 %v1824_v10, %v1825_v16  ;;  %v1831_v23 = vmax.f32 %v1822_v41, %v1823_v31  ;;  %v2068_v10 = vld [vmem:[#allocation10 + $0x20] sm:$0xff]  ;;  %v2066_v16 = vld [vmem:[#allocation10 + $0x10] sm:$0xff]  ;;  %v2213_v31 = vld [vmem:[#allocation12 + $0xf8] sm:$0xff] }
 0x628   :  { %v2197_v41 = vld [vmem:[#allocation12 + $0x78] sm:$0xff]  ;;  %2598 = vmatprep.subr.mxu1 %v2213_v31 }
 0x629   :  { %v1827_v32 = vrot.slane %v1826_v61, 2  ;;  %v1832_v33 = vrot.slane %v1831_v23, 4 }
 0x62b   :  { %v1828_v3 = vmax.f32 %v1826_v61, %v1827_v32  ;;  %v1833_v47 = vmax.f32 %v1831_v23, %v1832_v33  ;;  %v2065_v61 = vld [vmem:[#allocation10 + $0x8] sm:$0xff]  ;;  %v2212_v23 = vld [vmem:[#allocation12 + $0xf0] sm:$0xff]  ;;  %v2064_v33 = vld [vmem:[#allocation10] sm:$0xff] }
 0x62c   :  { %v2196_v32 = vld [vmem:[#allocation12 + $0x70] sm:$0xff] }
 0x62d   :  { %v1834_v18 = vrot.slane %v1833_v47, 2  ;;  %v1829_v46 = vrot.slane %v1828_v3, 1 }
 0x62f   :  { %v1835_v22 = vmax.f32 %v1833_v47, %v1834_v18  ;;  %v1830_v11 = vmax.f32 %v1828_v3, %v1829_v46  ;;  %v2211_v3 = vld [vmem:[#allocation12 + $0xe8] sm:$0xff]  ;;  %v2210_v18 = vld [vmem:[#allocation12 + $0xe0] sm:$0xff] }
 0x630   :  { %v2195_v47 = vld [vmem:[#allocation12 + $0x68] sm:$0xff]  ;;  %v2194_v46 = vld [vmem:[#allocation12 + $0x60] sm:$0xff] }
 0x631   :  { %v1836_v45 = vrot.slane %v1835_v22, 1 }
 0x633   :  { %v1837_v13 = vmax.f32 %v1835_v22, %v1836_v45  ;;  %v2209_v22 = vld [vmem:[#allocation12 + $0xd8] sm:$0xff] }
 0x634   :  { %v2193_v45 = vld [vmem:[#allocation12 + $0x58] sm:$0xff] }
 0x635   :  { %v1885_v5 = vsel %vm372_vm1, %v1837_v13, %v1830_v11  ;;  %v2208_v11 = vld [vmem:[#allocation12 + $0xd0] sm:$0xff] }
 0x636   :  { %1952 = vmatmul.mubr.f32.vlgmr.msra.gmra.mxu0 %v1885_v5  ;;  %v2192_v13 = vld [vmem:[#allocation12 + $0x50] sm:$0xff]  ;;  %v2207_v5 = vld [vmem:[#allocation12 + $0xc8] sm:$0xff] }
 0x637   :  { %2173 = vmatprep.mubr.f32.mxu0 %v4200_v8  ;;  %2110 = vmatpush1.msra.mxu0 %v2094_v40  ;;  %v2091_v8 = vld [vmem:[#allocation10 + $0xd8] sm:$0xff]  ;;  %v2202_v40 = vld [vmem:[#allocation12 + $0xa0] sm:$0xff] }
 0x638   :  { %2111 = vmatprep.subr.mxu0 %v2093_v52  ;;  %v2186_v52 = vld [vmem:[#allocation12 + $0x20] sm:$0xff] }
 0x639   :  { %2112 = vmatpush1.msra.mxu0 %v2092_v12 }
 0x63a   :  { %2113 = vmatprep.subr.mxu0 %v2091_v8  ;;  %v1992_v8 = vld [vmem:[%s4106_s11 + $0x4] ss:$0 sm:$0xff] }
 0x63b   :  { %2114 = vmatpush1.msra.mxu0 %v2090_v55 }
 0x63c   :  { %2115 = vmatprep.subr.mxu0 %v2089_v9 }
 0x63d   :  { %2116 = vmatpush1.msra.mxu0 %v2088_v63 }
 0x63e   :  { %2117 = vmatprep.subr.mxu0 %v2087_v36 }
 0x63f   :  { %2118 = vmatpush1.msra.mxu0 %v2086_v24  ;;  %v2201_v24 = vld [vmem:[#allocation12 + $0x98] sm:$0xff] }
 0x640   :  { %2119 = vmatprep.subr.mxu0 %v2085_v4  ;;  %v2185_v4 = vld [vmem:[#allocation12 + $0x18] sm:$0xff] }
 0x641   :  { %2120 = vmatpush1.msra.mxu0 %v2084_v62  ;;  %v2200_v62 = vld [vmem:[#allocation12 + $0x90] sm:$0xff] }
 0x642   :  { %2121 = vmatprep.subr.mxu0 %v2083_v29  ;;  %v2184_v29 = vld [vmem:[#allocation12 + $0x10] sm:$0xff] }
 0x643   :  { %2122 = vmatpush1.msra.mxu0 %v2082_v6  ;;  %v2199_v6 = vld [vmem:[#allocation12 + $0x88] sm:$0xff] }
 0x644   :  { %2123 = vmatprep.subr.mxu0 %v2081_v34  ;;  %v2183_v34 = vld [vmem:[#allocation12 + $0x8] sm:$0xff] }
 0x645   :  { %2124 = vmatpush1.msra.mxu0 %v2080_v25  ;;  %v2198_v25 = vld [vmem:[#allocation12 + $0x80] sm:$0xff] }
 0x646   :  { %2125 = vmatprep.subr.mxu0 %v2079_v60  ;;  %v2182_v60 = vld [vmem:[#allocation12] sm:$0xff] }
 0x647   :  { %2126 = vmatpush1.msra.mxu0 %v2078_v58  ;;  %v2335_v58 = vld [vmem:[%s4106_s11 + $0x5] ss:$8 sm:$0x3] }
 0x648   :  { %2127 = vmatprep.subr.mxu0 %v2077_v30  ;;  %v2102_v30 = vrot.slane %v2335_v58, %v4201_v50 }
 0x649   :  { %2128 = vmatpush1.msra.mxu0 %v2076_v35  ;;  %v2106_v35 = vrot.slane %v2335_v58, %v4202_v15 }
 0x64a   :  { %2129 = vmatprep.subr.mxu0 %v2075_v38 }
 0x64b   :  { %2130 = vmatpush1.msra.mxu0 %v2074_v2 }
 0x64c   :  { %2131 = vmatprep.subr.mxu0 %v2073_v44 }
 0x64d   :  { %2132 = vmatpush1.msra.mxu0 %v2072_v27 }
 0x64e   :  { %2133 = vmatprep.subr.mxu0 %v2071_v1 }
 0x64f   :  { %2134 = vmatpush1.msra.mxu0 %v2070_v54 }
 0x650   :  { %2135 = vmatprep.subr.mxu0 %v2069_v57 }
 0x651   :  { %2136 = vmatpush1.msra.mxu0 %v2068_v10 }
 0x652   :  { %2137 = vmatprep.subr.mxu0 %v2067_v37 }
 0x653   :  { %2138 = vmatpush1.msra.mxu0 %v2066_v16 }
 0x654   :  { %2139 = vmatprep.subr.mxu0 %v2065_v61 }
 0x655   :  { %2140 = vmatpush1.msra.mxu0 %v2064_v33 }
 0x6f6   :  { %v1953_v28 = vpop.f32.mrf.mxu0 }
 0x6f7   :  { %v1954_v48 = vadd.f32 %v1953_v28, %v1876_v26 }
 0x6f8   :  { %v1955_v56 = vpop.f32.mrf.mxu0 }
 0x6f9   :  { %v1956_v51 = vadd.f32 %v1955_v56, %v1880_v0  ;;  %v1958_v43 = vmax.f32 %v1954_v48, 0.0  ;;  %v2214_v56 = vld [vmem:[%s4106_s11 + $0x6] ss:$0 sm:$0xff] }
 0x6fb   :  { %v1959_v14 = vmax.f32 %v1956_v51, 0.0 }
 0x6fd   :  { %2057 = vmatprep.mubr.f32.mxu1 %v1959_v14 }
 0x6fe   :  { %2058 = vmatmul.mubr.f32.vlgmr.msra.gmra.mxu1 %v1958_v43 }
 0x6ff   :  { %2599 = vmatpush3.msra.mxu1 %v2197_v41 }
 0x700   :  { %2600 = vmatprep.subr.mxu1 %v2212_v23 }
 0x701   :  { %2601 = vmatpush3.msra.mxu1 %v2196_v32 }
 0x702   :  { %2602 = vmatprep.subr.mxu1 %v2211_v3 }
 0x703   :  { %2603 = vmatpush3.msra.mxu1 %v2195_v47 }
 0x704   :  { %2604 = vmatprep.subr.mxu1 %v2210_v18 }
 0x705   :  { %2605 = vmatpush3.msra.mxu1 %v2194_v46 }
 0x706   :  { %2606 = vmatprep.subr.mxu1 %v2209_v22 }
 0x707   :  { %2607 = vmatpush3.msra.mxu1 %v2193_v45 }
 0x708   :  { %2608 = vmatprep.subr.mxu1 %v2208_v11 }
 0x709   :  { %2609 = vmatpush3.msra.mxu1 %v2192_v13 }
 0x70a   :  { %2610 = vmatprep.subr.mxu1 %v2207_v5 }
 0x70b   :  { %2611 = vmatpush3.msra.mxu1 %v2191_v20 }
 0x70c   :  { %2612 = vmatprep.subr.mxu1 %v2206_v42 }
 0x70d   :  { %2613 = vmatpush3.msra.mxu1 %v2190_v59 }
 0x70e   :  { %2614 = vmatprep.subr.mxu1 %v2205_v49 }
 0x70f   :  { %2615 = vmatpush3.msra.mxu1 %v2189_v17 }
 0x710   :  { %2616 = vmatprep.subr.mxu1 %v2204_v19 }
 0x711   :  { %2617 = vmatpush3.msra.mxu1 %v2188_v7 }
 0x712   :  { %2618 = vmatprep.subr.mxu1 %v2203_v53 }
 0x713   :  { %2619 = vmatpush3.msra.mxu1 %v2187_v21 }
 0x714   :  { %2620 = vmatprep.subr.mxu1 %v2202_v40 }
 0x715   :  { %2621 = vmatpush3.msra.mxu1 %v2186_v52 }
 0x716   :  { %2622 = vmatprep.subr.mxu1 %v2201_v24 }
 0x717   :  { %2623 = vmatpush3.msra.mxu1 %v2185_v4 }
 0x718   :  { %2624 = vmatprep.subr.mxu1 %v2200_v62 }
 0x719   :  { %2625 = vmatpush3.msra.mxu1 %v2184_v29 }
 0x71a   :  { %2626 = vmatprep.subr.mxu1 %v2199_v6 }
 0x71b   :  { %2627 = vmatpush3.msra.mxu1 %v2183_v34 }
 0x71c   :  { %2628 = vmatprep.subr.mxu1 %v2198_v25 }
 0x71d   :  { %2629 = vmatpush3.msra.mxu1 %v2182_v60 }
 0x7be   :  { %v2595_v12 = vpop.f32.mrf.mxu1 }
 0x7c0   :  { %v2596_v55 = vpop.f32.mrf.mxu1 }
 0x7c1   :  { %v2597_v9 = vadd.f32 %v2596_v55, %v2595_v12 }
 0x7c3   :  { %v2060_v63 = vadd.f32 %v2597_v9, %v1992_v8 }
 0x7c5   :  { %v2063_v36 = vmax.f32 %v2060_v63, 0.0 }
 0x7c7   :  { %2174 = vmatmul.mubr.f32.vlgmr.msra.gmra.mxu0 %v2063_v36 }
 0x887   :  { %v2175_v38 = vpop.f32.mrf.mxu0 }
 0x888   :  { %v2176_v2 = vadd.f32 %v2175_v38, %v2102_v30 }
 0x889   :  { %v2177_v44 = vpop.f32.mrf.mxu0 }
 0x88a   :  { %v2178_v39 = vadd.f32 %v2177_v44, %v2106_v35  ;;  %v2180_v0 = vmax.f32 %v2176_v2, 0.0 }
 0x88c   :  { %v2181_v26 = vmax.f32 %v2178_v39, 0.0 }
 0x88e   :  { %2279 = vmatprep.mubr.f32.mxu1 %v2181_v26 }
 0x88f   :  { %2280 = vmatmul.mubr.f32.vlgmr.msra.gmra.mxu1 %v2180_v0 }
 0x94f   :  { %v2630_v28 = vpop.f32.mrf.mxu1 }
 0x951   :  { %v2631_v48 = vpop.f32.mrf.mxu1 }
 0x952   :  { %v2632_v51 = vadd.f32 %v2631_v48, %v2630_v28 }
 0x954   :  { %v2282_v50 = vadd.f32 %v2632_v51, %v2214_v56 }
 0x956   :  { %2285 = vst [vmem:[#allocation13] sm:$0x3] %v2282_v50 }
 0x957   :  { %2910 = shalt.err (!%p2907_p6)
}
 0x958   :  { %2295 = dma.vmem_to_hbm [thread:$0]  %s2293_s23, 32, %s4107_s12, [#allocation4]  }
 0x959   :  { %2927 = dma.done.wait [#allocation4], 32  }
 0x95a   :  { %2928 = vsyncadd [#allocation4], 4294967264 }
 0x95b   :  { %2299 = vsyncpa [#allocation3], 1 }
 0x95c   :  { %2300 = vsyncpa [#allocation8], 1 }
 0x95d   :  { %2301 = vsyncpa [#allocation11], 1 }
 0x95e   :  { %2302 = vsyncpa [#allocation4], 1 }
 0x95f   :  { %2303 = vsyncpa [#allocation5], 1 }

</bundles_post_ra>
